<compile_context>
chip_gen: v5e
topology: v5e:2x2
jax: 0.10.0
libtpu: 0.0.40
codegen_flags: <defaults>
</compile_context>

<pallas_src>
import functools

import jax
import jax.numpy as jnp
from jax import lax
from jax.experimental import pallas as pl
from jax.experimental.pallas import tpu as pltpu


# ----------------------------- in-kernel helpers -----------------------------

def _layer_norm(x, g, b, eps=1e-5):
    # PyTorch nn.LayerNorm semantics: biased variance over the last dim, f32.
    mean = jnp.mean(x, axis=-1, keepdims=True)
    var = jnp.mean(jnp.square(x - mean), axis=-1, keepdims=True)
    return (x - mean) * lax.rsqrt(var + eps) * g + b


def _gelu_tanh(x):
    # tanh-approximate GELU (EUP) instead of exact-erf GELU (small numeric diff).
    c = 0.7978845608028654  # sqrt(2/pi)
    return 0.5 * x * (1.0 + jnp.tanh(c * (x + 0.044715 * x * x * x)))


# --------------------------------- kernel ------------------------------------

def _transformer_kernel(x_ref,
                        ag_ref, ab_ref, wq_ref, wk_ref, wv_ref, wo_ref, bo_ref,
                        fg_ref, fb_ref, w1_ref, b1_ref, w2_ref, b2_ref,
                        lg_ref, lb_ref,
                        o_ref, h_ref,
                        *, heads, dim_head):
    """One grid step = one transformer layer applied to a group of G sequences.

    grid = (num_groups, depth); the residual stream for the current group is
    carried in `h_ref` (VMEM f32 scratch) across the layer axis.
    """
    layer = pl.program_id(1)
    n_layers = pl.num_programs(1)
    G, N, D = x_ref.shape
    M = G * N
    inner = heads * dim_head

    # Layer 0: pull this group's residual stream from the HBM-fed input block
    # into the VMEM carry; later layer steps read the carry written by l-1.
    @pl.when(layer == 0)
    def _():
        h_ref[...] = x_ref[...].reshape(M, D).astype(jnp.float32)

    x = h_ref[...]

    # ------------------------------ attention --------------------------------
    # LN in f32, cast once to bf16 and reuse for all three projections.
    xn = _layer_norm(x, ag_ref[0], ab_ref[0]).astype(wq_ref.dtype)
    # w_q already carries the 1/sqrt(dim_head) scale (folded outside the kernel).
    q = jnp.dot(xn, wq_ref[0], preferred_element_type=jnp.float32)
    k = jnp.dot(xn, wk_ref[0], preferred_element_type=jnp.float32)
    v = jnp.dot(xn, wv_ref[0], preferred_element_type=jnp.float32)
    q = q.reshape(G, N, inner).astype(jnp.bfloat16)     # leading-dim split only
    k = k.reshape(G, N, inner).astype(jnp.bfloat16)
    v = v.reshape(G, N, inner).astype(jnp.bfloat16)

    # TODO(synk): fold all heads into ONE lax.dot_general with (group, head)
    # batch dims (dropping the per-head lane slices) once multi-batch-dim dots
    # and sublane transposes lower reliably at dim_head < 128; at realistic
    # head dims (>=128 lanes) these slices become full-vreg and this loop is
    # the safe, equivalent form.
    head_outs = []
    for h in range(heads):                               # static unroll
        lo = h * dim_head
        qh = q[:, :, lo:lo + dim_head]
        kh = k[:, :, lo:lo + dim_head]
        vh = v[:, :, lo:lo + dim_head]
        # batched q @ k^T: contract last dims directly (no explicit transpose).
        s = lax.dot_general(qh, kh, (((2,), (2,)), ((0,), (0,))),
                            preferred_element_type=jnp.float32)      # (G, N, N)
        s = s - jnp.max(s, axis=-1, keepdims=True)
        e = jnp.exp(s)
        p = e * pl.reciprocal(jnp.sum(e, axis=-1, keepdims=True), approx=True)
        head_outs.append(
            lax.dot_general(p.astype(jnp.bfloat16), vh,
                            (((2,), (1,)), ((0,), (0,))),
                            preferred_element_type=jnp.float32))     # (G, N, dh)

    # Single output projection over all heads: one (M, inner) @ (inner, D) dot.
    attn = jnp.concatenate(head_outs, axis=-1).reshape(M, inner)
    y = jnp.dot(attn.astype(wo_ref.dtype), wo_ref[0],
                preferred_element_type=jnp.float32) + bo_ref[0]
    x = x + y                                                        # residual

    # ----------------------------- feed-forward ------------------------------
    xn = _layer_norm(x, fg_ref[0], fb_ref[0]).astype(w1_ref.dtype)
    h1 = jnp.dot(xn, w1_ref[0], preferred_element_type=jnp.float32) + b1_ref[0]
    h1 = _gelu_tanh(h1)
    y = jnp.dot(h1.astype(w2_ref.dtype), w2_ref[0],
                preferred_element_type=jnp.float32) + b2_ref[0]
    x = x + y                                                        # residual

    h_ref[...] = x                       # carry to the next layer step

    # Last layer: final LayerNorm + single writeback of this group's block.
    @pl.when(layer == n_layers - 1)
    def _():
        out = _layer_norm(x, lg_ref[...], lb_ref[...])
        # TODO(synk): with D < 128 this is a masked store; at realistic dims
        # (D a multiple of 128) it becomes a lane-dense vst.  Amortized here:
        # one store per group for the whole depth sweep.
        o_ref[...] = out.reshape(G, N, D).astype(o_ref.dtype)


# ------------------------------ pallas wrapper --------------------------------

def _pick_group(batch, seq, *, dim, inner, heads, mlp_hidden,
                target_rows=512, act_budget_bytes=8 << 20):
    """Sequences per grid step: fill the MXU M-dim (512 rows targets v6e's
    2x256 MXU; v5e is satisfied earlier), stay within an activation budget
    sized for v7x's 64 MiB/TC, and leave >= 2 grid steps so v7x's two
    TensorCores both get work."""
    per_token = 4 * (3 * inner + heads * seq + mlp_hidden + 4 * dim)  # f32 bytes
    g_rows = max(1, target_rows // max(seq, 1))
    g_act = max(1, act_budget_bytes // max(1, per_token * seq))
    g = max(1, min(batch, g_rows, g_act))
    if batch >= 2:
        g = min(g, max(1, batch // 2))   # guarantee >= 2 grid steps (megacore)
    while batch % g:
        g -= 1
    return g


def transformer(x, params, *, heads, dim_head):
    """x: (B, N, D); params: dict of depth-stacked layer params + final LN."""
    B, N, D = x.shape
    depth = params["w_q"].shape[0]
    H = params["w1"].shape[-1]
    inner = heads * dim_head
    scale = dim_head ** -0.5

    G = _pick_group(B, N, dim=D, inner=inner, heads=heads, mlp_hidden=H)
    n_groups = B // G

    # Fold the attention scale into w_q once, outside the kernel (one-time op).
    w_q = (params["w_q"].astype(jnp.float32) * scale).astype(params["w_q"].dtype)

    kernel = functools.partial(_transformer_kernel, heads=heads, dim_head=dim_head)

    xspec = pl.BlockSpec((G, N, D), lambda i, l: (i, 0, 0))
    # Per-layer (depth-stacked) params: block index follows the layer grid axis,
    # so double-buffering == automatic next-layer weight prefetch.
    layer3 = lambda a, b: pl.BlockSpec((1, a, b), lambda i, l: (l, 0, 0))
    fixed2 = lambda a, b: pl.BlockSpec((a, b), lambda i, l: (0, 0))

    in_specs = [
        xspec,
        layer3(1, D), layer3(1, D),                               # attn LN
        layer3(D, inner), layer3(D, inner), layer3(D, inner),     # w_q, w_k, w_v
        layer3(inner, D), layer3(1, D),                           # w_out, b_out
        layer3(1, D), layer3(1, D),                               # ff LN
        layer3(D, H), layer3(1, H), layer3(H, D), layer3(1, D),   # MLP
        fixed2(1, D), fixed2(1, D),                               # final LN
    ]
    args = [x,
            params["attn_ln_g"], params["attn_ln_b"],
            w_q, params["w_k"], params["w_v"],
            params["w_out"], params["b_out"],
            params["ff_ln_g"], params["ff_ln_b"],
            params["w1"], params["b1"], params["w2"], params["b2"],
            params["ln_g"], params["ln_b"]]

    # Explicit VMEM budget: double-buffered layer blocks + x/out blocks + carry
    # + headroom for the in-kernel f32 intermediates; floor at 32 MiB (>= every
    # generation's default scoped limit), cap at 48 MiB (safe on v7x 64 MiB/TC).
    wbytes = params["w_q"].dtype.itemsize * (3 * D * inner + inner * D + 2 * D * H)
    vbytes = 4 * (8 * D + H)
    iobytes = x.dtype.itemsize * G * N * D * 2
    interm = 4 * G * N * (3 * inner + heads * N + H + 4 * D)
    vmem_bytes = int(min(48 << 20,
                         max(32 << 20, 2 * (2 * (wbytes + vbytes + iobytes)
                                            + 4 * G * N * D + interm))))

    return pl.pallas_call(
        kernel,
        out_shape=jax.ShapeDtypeStruct((B, N, D), x.dtype),
        grid=(n_groups, depth),
        in_specs=in_specs,
        out_specs=xspec,
        scratch_shapes=[pltpu.VMEM((G * N, D), jnp.float32)],   # residual carry
        compiler_params=pltpu.CompilerParams(
            dimension_semantics=("parallel", "arbitrary"),
            vmem_limit_bytes=vmem_bytes),
    )(*args)


# ------------------------------- params / reference ---------------------------

def init_params(key, *, dim, depth, heads, dim_head, mlp_dim):
    inner = heads * dim_head
    wdt = jnp.bfloat16   # bf16 weights; f32 accumulation inside the kernel

    def w(i, shape):
        g = jax.random.normal(jax.random.fold_in(key, i), shape, jnp.float32)
        return (0.05 * g).astype(wdt)

    return dict(
        attn_ln_g=jnp.ones((depth, 1, dim), jnp.float32),
        attn_ln_b=jnp.zeros((depth, 1, dim), jnp.float32),
        w_q=w(1, (depth, dim, inner)),
        w_k=w(2, (depth, dim, inner)),
        w_v=w(3, (depth, dim, inner)),
        w_out=w(4, (depth, inner, dim)),
        b_out=jnp.zeros((depth, 1, dim), jnp.float32),
        ff_ln_g=jnp.ones((depth, 1, dim), jnp.float32),
        ff_ln_b=jnp.zeros((depth, 1, dim), jnp.float32),
        w1=w(5, (depth, dim, mlp_dim)),
        b1=jnp.zeros((depth, 1, mlp_dim), jnp.float32),
        w2=w(6, (depth, mlp_dim, dim)),
        b2=jnp.zeros((depth, 1, dim), jnp.float32),
        ln_g=jnp.ones((1, dim), jnp.float32),
        ln_b=jnp.zeros((1, dim), jnp.float32),
    )


def transformer_ref(x, params, *, heads, dim_head):
    """Pure-JAX f32 reference matching the PyTorch module's forward."""
    depth = params["w_q"].shape[0]
    scale = dim_head ** -0.5
    f32 = lambda a: a.astype(jnp.float32)

    def ln(v, g, b):
        m = jnp.mean(v, -1, keepdims=True)
        s = jnp.mean(jnp.square(v - m), -1, keepdims=True)
        return (v - m) * lax.rsqrt(s + 1e-5) * g + b

    B, N, D = x.shape
    for l in range(depth):
        xn = ln(x, params["attn_ln_g"][l], params["attn_ln_b"][l])
        q = (xn @ f32(params["w_q"][l])) * scale
        k = xn @ f32(params["w_k"][l])
        v = xn @ f32(params["w_v"][l])
        split = lambda t: t.reshape(B, N, heads, dim_head).transpose(0, 2, 1, 3)
        qh, kh, vh = split(q), split(k), split(v)
        s = jnp.einsum("bhid,bhjd->bhij", qh, kh)
        p = jax.nn.softmax(s, axis=-1)
        o = jnp.einsum("bhij,bhjd->bhid", p, vh)
        o = o.transpose(0, 2, 1, 3).reshape(B, N, heads * dim_head)
        x = x + o @ f32(params["w_out"][l]) + params["b_out"][l]
        xn = ln(x, params["ff_ln_g"][l], params["ff_ln_b"][l])
        h1 = _gelu_tanh(xn @ f32(params["w1"][l]) + params["b1"][l])
        x = x + h1 @ f32(params["w2"][l]) + params["b2"][l]
    return ln(x, params["ln_g"], params["ln_b"])


# ----------------------------------- main --------------------------------------

if __name__ == "__main__":
    # small config: dim=64, depth=2, heads=4, dim_head=16, mlp_dim=128
    dim, depth, heads, dim_head, mlp_dim = 64, 2, 4, 16, 128
    B, N = 4, 32   # -> G=2 sequences/step, grid=(2 groups, 2 layers)

    key = jax.random.PRNGKey(0)
    x = jax.random.normal(jax.random.fold_in(key, 999), (B, N, dim), jnp.float32)
    params = init_params(key, dim=dim, depth=depth, heads=heads,
                         dim_head=dim_head, mlp_dim=mlp_dim)

    fwd = jax.jit(functools.partial(transformer, heads=heads, dim_head=dim_head))
    out = fwd(x, params)
    jax.block_until_ready(out)

    assert out.shape == (B, N, dim)
    assert bool(jnp.all(jnp.isfinite(out)))

    ref = transformer_ref(x, params, heads=heads, dim_head=dim_head)
    err = float(jnp.max(jnp.abs(out - ref)))
    assert err < 0.1, f"max |kernel - reference| too large: {err}"
    print("KERNEL_OK")
</pallas_src>

<mosaic_0001>
module attributes {stable_mosaic.version = 11 : i64} {
  func.func @_transformer_kernel(%arg0: i32, %arg1: i32, %arg2: memref<2x32x64xf32, #tpu.memory_space<vmem>>, %arg3: memref<1x1x64xf32, #tpu.memory_space<vmem>>, %arg4: memref<1x1x64xf32, #tpu.memory_space<vmem>>, %arg5: memref<1x64x64xbf16, #tpu.memory_space<vmem>>, %arg6: memref<1x64x64xbf16, #tpu.memory_space<vmem>>, %arg7: memref<1x64x64xbf16, #tpu.memory_space<vmem>>, %arg8: memref<1x64x64xbf16, #tpu.memory_space<vmem>>, %arg9: memref<1x1x64xf32, #tpu.memory_space<vmem>>, %arg10: memref<1x1x64xf32, #tpu.memory_space<vmem>>, %arg11: memref<1x1x64xf32, #tpu.memory_space<vmem>>, %arg12: memref<1x64x128xbf16, #tpu.memory_space<vmem>>, %arg13: memref<1x1x128xf32, #tpu.memory_space<vmem>>, %arg14: memref<1x128x64xbf16, #tpu.memory_space<vmem>>, %arg15: memref<1x1x64xf32, #tpu.memory_space<vmem>>, %arg16: memref<1x64xf32, #tpu.memory_space<vmem>>, %arg17: memref<1x64xf32, #tpu.memory_space<vmem>>, %arg18: memref<2x32x64xf32, #tpu.memory_space<vmem>>, %arg19: memref<64x64xf32, #tpu.memory_space<vmem>>) attributes {dimension_semantics = [#tpu.dimension_semantics<parallel>, #tpu.dimension_semantics<arbitrary>], iteration_bounds = array<i64: 2, 2>, scalar_prefetch = 0 : i64, scratch_operands = 1 : i64, tpu.core_type = #tpu.core_type<tc>, window_params = [{transform_indices = @transform_0, window_bounds = array<i64: 2, 32, 64>}, {transform_indices = @transform_1, window_bounds = array<i64: 1, 1, 64>}, {transform_indices = @transform_2, window_bounds = array<i64: 1, 1, 64>}, {transform_indices = @transform_3, window_bounds = array<i64: 1, 64, 64>}, {transform_indices = @transform_4, window_bounds = array<i64: 1, 64, 64>}, {transform_indices = @transform_5, window_bounds = array<i64: 1, 64, 64>}, {transform_indices = @transform_6, window_bounds = array<i64: 1, 64, 64>}, {transform_indices = @transform_7, window_bounds = array<i64: 1, 1, 64>}, {transform_indices = @transform_8, window_bounds = array<i64: 1, 1, 64>}, {transform_indices = @transform_9, window_bounds = array<i64: 1, 1, 64>}, {transform_indices = @transform_10, window_bounds = array<i64: 1, 64, 128>}, {transform_indices = @transform_11, window_bounds = array<i64: 1, 1, 128>}, {transform_indices = @transform_12, window_bounds = array<i64: 1, 128, 64>}, {transform_indices = @transform_13, window_bounds = array<i64: 1, 1, 64>}, {pipeline_mode = #tpu.pipeline_mode<synchronous>, transform_indices = @transform_14, window_bounds = array<i64: 1, 64>}, {pipeline_mode = #tpu.pipeline_mode<synchronous>, transform_indices = @transform_15, window_bounds = array<i64: 1, 64>}, {transform_indices = @transform_16, window_bounds = array<i64: 2, 32, 64>}]} {
    %c0_i32 = arith.constant 0 : i32
    %0 = arith.cmpi eq, %arg1, %c0_i32 : i32
    %1 = arith.extui %0 : i1 to i32
    %c0_i32_0 = arith.constant 0 : i32
    %2 = arith.cmpi ne, %1, %c0_i32_0 : i32
    scf.if %2 {
      %c0_79 = arith.constant 0 : index
      %c0_80 = arith.constant 0 : index
      %c0_81 = arith.constant 0 : index
      %181 = vector.load %arg2[%c0_79, %c0_80, %c0_81] : memref<2x32x64xf32, #tpu.memory_space<vmem>>, vector<2x32x64xf32>
      %182 = vector.shape_cast %181 : vector<2x32x64xf32> to vector<64x64xf32>
      %c0_82 = arith.constant 0 : index
      %c0_83 = arith.constant 0 : index
      %183 = vector.load %arg19[%c0_82, %c0_83] : memref<64x64xf32, #tpu.memory_space<vmem>>, vector<64x64xf32>
      tpu.vector_store %arg19[%c0_82, %c0_83], %182 {strides = array<i32>} : memref<64x64xf32, #tpu.memory_space<vmem>>, vector<64x64xf32>,
    } else {
    }
    %c0 = arith.constant 0 : index
    %c0_1 = arith.constant 0 : index
    %3 = vector.load %arg19[%c0, %c0_1] : memref<64x64xf32, #tpu.memory_space<vmem>>, vector<64x64xf32>
    %c0_2 = arith.constant 0 : index
    %c0_3 = arith.constant 0 : index
    %c0_4 = arith.constant 0 : index
    %4 = vector.load %arg3[%c0_2, %c0_3, %c0_4] : memref<1x1x64xf32, #tpu.memory_space<vmem>>, vector<1x1x64xf32>
    %5 = vector.shape_cast %4 : vector<1x1x64xf32> to vector<1x64xf32>
    %c0_5 = arith.constant 0 : index
    %c0_6 = arith.constant 0 : index
    %c0_7 = arith.constant 0 : index
    %6 = vector.load %arg4[%c0_5, %c0_6, %c0_7] : memref<1x1x64xf32, #tpu.memory_space<vmem>>, vector<1x1x64xf32>
    %7 = vector.shape_cast %6 : vector<1x1x64xf32> to vector<1x64xf32>
    %cst = arith.constant dense<0.000000e+00> : vector<64xf32>
    %8 = vector.multi_reduction <add>, %3, %cst [1] : vector<64x64xf32> to vector<64xf32>
    %9 = vector.shape_cast %8 : vector<64xf32> to vector<64x1xf32>
    %cst_8 = arith.constant 6.400000e+01 : f32
    %10 = vector.broadcast %cst_8 : f32 to vector<64x1xf32>
    %11 = arith.divf %9, %10 : vector<64x1xf32>
    %12 = vector.broadcast %11 : vector<64x1xf32> to vector<64x64xf32>
    %13 = arith.subf %3, %12 : vector<64x64xf32>
    %14 = arith.mulf %13, %13 : vector<64x64xf32>
    %cst_9 = arith.constant dense<0.000000e+00> : vector<64xf32>
    %15 = vector.multi_reduction <add>, %14, %cst_9 [1] : vector<64x64xf32> to vector<64xf32>
    %16 = vector.shape_cast %15 : vector<64xf32> to vector<64x1xf32>
    %cst_10 = arith.constant 6.400000e+01 : f32
    %17 = vector.broadcast %cst_10 : f32 to vector<64x1xf32>
    %18 = arith.divf %16, %17 : vector<64x1xf32>
    %19 = vector.broadcast %11 : vector<64x1xf32> to vector<64x64xf32>
    %20 = arith.subf %3, %19 : vector<64x64xf32>
    %cst_11 = arith.constant 9.99999974E-6 : f32
    %21 = vector.broadcast %cst_11 : f32 to vector<64x1xf32>
    %22 = arith.addf %18, %21 : vector<64x1xf32>
    %23 = math.rsqrt %22 : vector<64x1xf32>
    %24 = vector.broadcast %23 : vector<64x1xf32> to vector<64x64xf32>
    %25 = arith.mulf %20, %24 : vector<64x64xf32>
    %26 = vector.broadcast %5 : vector<1x64xf32> to vector<64x64xf32>
    %27 = arith.mulf %25, %26 : vector<64x64xf32>
    %28 = vector.broadcast %7 : vector<1x64xf32> to vector<64x64xf32>
    %29 = arith.addf %27, %28 : vector<64x64xf32>
    %30 = arith.truncf %29 : vector<64x64xf32> to vector<64x64xbf16>
    %c0_12 = arith.constant 0 : index
    %c0_13 = arith.constant 0 : index
    %c0_14 = arith.constant 0 : index
    %31 = vector.load %arg5[%c0_12, %c0_13, %c0_14] : memref<1x64x64xbf16, #tpu.memory_space<vmem>>, vector<1x64x64xbf16>
    %32 = vector.shape_cast %31 : vector<1x64x64xbf16> to vector<64x64xbf16>
    %cst_15 = arith.constant dense<0.000000e+00> : vector<64x64xf32>
    %33 = tpu.matmul %30, %32, %cst_15 {dimension_numbers = #tpu.dot_dimension_numbers<[1], [0], [0], [1], [0, 0, 1, 1], [], []>} : vector<64x64xbf16>, vector<64x64xbf16>, vector<64x64xf32> -> vector<64x64xf32>
    %c0_16 = arith.constant 0 : index
    %c0_17 = arith.constant 0 : index
    %c0_18 = arith.constant 0 : index
    %34 = vector.load %arg6[%c0_16, %c0_17, %c0_18] : memref<1x64x64xbf16, #tpu.memory_space<vmem>>, vector<1x64x64xbf16>
    %35 = vector.shape_cast %34 : vector<1x64x64xbf16> to vector<64x64xbf16>
    %cst_19 = arith.constant dense<0.000000e+00> : vector<64x64xf32>
    %36 = tpu.matmul %30, %35, %cst_19 {dimension_numbers = #tpu.dot_dimension_numbers<[1], [0], [0], [1], [0, 0, 1, 1], [], []>} : vector<64x64xbf16>, vector<64x64xbf16>, vector<64x64xf32> -> vector<64x64xf32>
    %c0_20 = arith.constant 0 : index
    %c0_21 = arith.constant 0 : index
    %c0_22 = arith.constant 0 : index
    %37 = vector.load %arg7[%c0_20, %c0_21, %c0_22] : memref<1x64x64xbf16, #tpu.memory_space<vmem>>, vector<1x64x64xbf16>
    %38 = vector.shape_cast %37 : vector<1x64x64xbf16> to vector<64x64xbf16>
    %cst_23 = arith.constant dense<0.000000e+00> : vector<64x64xf32>
    %39 = tpu.matmul %30, %38, %cst_23 {dimension_numbers = #tpu.dot_dimension_numbers<[1], [0], [0], [1], [0, 0, 1, 1], [], []>} : vector<64x64xbf16>, vector<64x64xbf16>, vector<64x64xf32> -> vector<64x64xf32>
    %40 = vector.shape_cast %33 : vector<64x64xf32> to vector<2x32x64xf32>
    %41 = arith.truncf %40 : vector<2x32x64xf32> to vector<2x32x64xbf16>
    %42 = vector.shape_cast %36 : vector<64x64xf32> to vector<2x32x64xf32>
    %43 = arith.truncf %42 : vector<2x32x64xf32> to vector<2x32x64xbf16>
    %44 = vector.shape_cast %39 : vector<64x64xf32> to vector<2x32x64xf32>
    %45 = arith.truncf %44 : vector<2x32x64xf32> to vector<2x32x64xbf16>
    %46 = vector.extract_strided_slice %41 {offsets = [0, 0, 0], sizes = [2, 32, 16], strides = [1, 1, 1]} : vector<2x32x64xbf16> to vector<2x32x16xbf16>
    %47 = vector.extract_strided_slice %43 {offsets = [0, 0, 0], sizes = [2, 32, 16], strides = [1, 1, 1]} : vector<2x32x64xbf16> to vector<2x32x16xbf16>
    %48 = vector.extract_strided_slice %45 {offsets = [0, 0, 0], sizes = [2, 32, 16], strides = [1, 1, 1]} : vector<2x32x64xbf16> to vector<2x32x16xbf16>
    %cst_24 = arith.constant dense<0.000000e+00> : vector<2x32x32xf32>
    %49 = tpu.matmul %46, %47, %cst_24 {dimension_numbers = #tpu.dot_dimension_numbers<[2], [2], [1], [1], [0, 0, 0, 1, 1, 1], [0], [0]>} : vector<2x32x16xbf16>, vector<2x32x16xbf16>, vector<2x32x32xf32> -> vector<2x32x32xf32>
    %cst_25 = arith.constant dense<0xFF800000> : vector<2x32xf32>
    %50 = vector.multi_reduction <maximumf>, %49, %cst_25 [2] : vector<2x32x32xf32> to vector<2x32xf32>
    %51 = vector.shape_cast %50 : vector<2x32xf32> to vector<2x32x1xf32>
    %52 = vector.broadcast %51 : vector<2x32x1xf32> to vector<2x32x32xf32>
    %53 = arith.subf %49, %52 : vector<2x32x32xf32>
    %54 = math.exp %53 : vector<2x32x32xf32>
    %cst_26 = arith.constant dense<0.000000e+00> : vector<2x32xf32>
    %55 = vector.multi_reduction <add>, %54, %cst_26 [2] : vector<2x32x32xf32> to vector<2x32xf32>
    %56 = vector.shape_cast %55 : vector<2x32xf32> to vector<2x32x1xf32>
    %57 = tpu.reciprocal %56 {approx = true} : vector<2x32x1xf32> -> vector<2x32x1xf32>
    %58 = vector.broadcast %57 : vector<2x32x1xf32> to vector<2x32x32xf32>
    %59 = arith.mulf %54, %58 : vector<2x32x32xf32>
    %60 = arith.truncf %59 : vector<2x32x32xf32> to vector<2x32x32xbf16>
    %cst_27 = arith.constant dense<0.000000e+00> : vector<2x32x16xf32>
    %61 = tpu.matmul %60, %48, %cst_27 {dimension_numbers = #tpu.dot_dimension_numbers<[2], [1], [1], [2], [0, 0, 0, 1, 1, 2], [0], [0]>} : vector<2x32x32xbf16>, vector<2x32x16xbf16>, vector<2x32x16xf32> -> vector<2x32x16xf32>
    %62 = vector.extract_strided_slice %41 {offsets = [0, 0, 16], sizes = [2, 32, 16], strides = [1, 1, 1]} : vector<2x32x64xbf16> to vector<2x32x16xbf16>
    %63 = vector.extract_strided_slice %43 {offsets = [0, 0, 16], sizes = [2, 32, 16], strides = [1, 1, 1]} : vector<2x32x64xbf16> to vector<2x32x16xbf16>
    %64 = vector.extract_strided_slice %45 {offsets = [0, 0, 16], sizes = [2, 32, 16], strides = [1, 1, 1]} : vector<2x32x64xbf16> to vector<2x32x16xbf16>
    %cst_28 = arith.constant dense<0.000000e+00> : vector<2x32x32xf32>
    %65 = tpu.matmul %62, %63, %cst_28 {dimension_numbers = #tpu.dot_dimension_numbers<[2], [2], [1], [1], [0, 0, 0, 1, 1, 1], [0], [0]>} : vector<2x32x16xbf16>, vector<2x32x16xbf16>, vector<2x32x32xf32> -> vector<2x32x32xf32>
    %cst_29 = arith.constant dense<0xFF800000> : vector<2x32xf32>
    %66 = vector.multi_reduction <maximumf>, %65, %cst_29 [2] : vector<2x32x32xf32> to vector<2x32xf32>
    %67 = vector.shape_cast %66 : vector<2x32xf32> to vector<2x32x1xf32>
    %68 = vector.broadcast %67 : vector<2x32x1xf32> to vector<2x32x32xf32>
    %69 = arith.subf %65, %68 : vector<2x32x32xf32>
    %70 = math.exp %69 : vector<2x32x32xf32>
    %cst_30 = arith.constant dense<0.000000e+00> : vector<2x32xf32>
    %71 = vector.multi_reduction <add>, %70, %cst_30 [2] : vector<2x32x32xf32> to vector<2x32xf32>
    %72 = vector.shape_cast %71 : vector<2x32xf32> to vector<2x32x1xf32>
    %73 = tpu.reciprocal %72 {approx = true} : vector<2x32x1xf32> -> vector<2x32x1xf32>
    %74 = vector.broadcast %73 : vector<2x32x1xf32> to vector<2x32x32xf32>
    %75 = arith.mulf %70, %74 : vector<2x32x32xf32>
    %76 = arith.truncf %75 : vector<2x32x32xf32> to vector<2x32x32xbf16>
    %cst_31 = arith.constant dense<0.000000e+00> : vector<2x32x16xf32>
    %77 = tpu.matmul %76, %64, %cst_31 {dimension_numbers = #tpu.dot_dimension_numbers<[2], [1], [1], [2], [0, 0, 0, 1, 1, 2], [0], [0]>} : vector<2x32x32xbf16>, vector<2x32x16xbf16>, vector<2x32x16xf32> -> vector<2x32x16xf32>
    %78 = vector.extract_strided_slice %41 {offsets = [0, 0, 32], sizes = [2, 32, 16], strides = [1, 1, 1]} : vector<2x32x64xbf16> to vector<2x32x16xbf16>
    %79 = vector.extract_strided_slice %43 {offsets = [0, 0, 32], sizes = [2, 32, 16], strides = [1, 1, 1]} : vector<2x32x64xbf16> to vector<2x32x16xbf16>
    %80 = vector.extract_strided_slice %45 {offsets = [0, 0, 32], sizes = [2, 32, 16], strides = [1, 1, 1]} : vector<2x32x64xbf16> to vector<2x32x16xbf16>
    %cst_32 = arith.constant dense<0.000000e+00> : vector<2x32x32xf32>
    %81 = tpu.matmul %78, %79, %cst_32 {dimension_numbers = #tpu.dot_dimension_numbers<[2], [2], [1], [1], [0, 0, 0, 1, 1, 1], [0], [0]>} : vector<2x32x16xbf16>, vector<2x32x16xbf16>, vector<2x32x32xf32> -> vector<2x32x32xf32>
    %cst_33 = arith.constant dense<0xFF800000> : vector<2x32xf32>
    %82 = vector.multi_reduction <maximumf>, %81, %cst_33 [2] : vector<2x32x32xf32> to vector<2x32xf32>
    %83 = vector.shape_cast %82 : vector<2x32xf32> to vector<2x32x1xf32>
    %84 = vector.broadcast %83 : vector<2x32x1xf32> to vector<2x32x32xf32>
    %85 = arith.subf %81, %84 : vector<2x32x32xf32>
    %86 = math.exp %85 : vector<2x32x32xf32>
    %cst_34 = arith.constant dense<0.000000e+00> : vector<2x32xf32>
    %87 = vector.multi_reduction <add>, %86, %cst_34 [2] : vector<2x32x32xf32> to vector<2x32xf32>
    %88 = vector.shape_cast %87 : vector<2x32xf32> to vector<2x32x1xf32>
    %89 = tpu.reciprocal %88 {approx = true} : vector<2x32x1xf32> -> vector<2x32x1xf32>
    %90 = vector.broadcast %89 : vector<2x32x1xf32> to vector<2x32x32xf32>
    %91 = arith.mulf %86, %90 : vector<2x32x32xf32>
    %92 = arith.truncf %91 : vector<2x32x32xf32> to vector<2x32x32xbf16>
    %cst_35 = arith.constant dense<0.000000e+00> : vector<2x32x16xf32>
    %93 = tpu.matmul %92, %80, %cst_35 {dimension_numbers = #tpu.dot_dimension_numbers<[2], [1], [1], [2], [0, 0, 0, 1, 1, 2], [0], [0]>} : vector<2x32x32xbf16>, vector<2x32x16xbf16>, vector<2x32x16xf32> -> vector<2x32x16xf32>
    %94 = vector.extract_strided_slice %41 {offsets = [0, 0, 48], sizes = [2, 32, 16], strides = [1, 1, 1]} : vector<2x32x64xbf16> to vector<2x32x16xbf16>
    %95 = vector.extract_strided_slice %43 {offsets = [0, 0, 48], sizes = [2, 32, 16], strides = [1, 1, 1]} : vector<2x32x64xbf16> to vector<2x32x16xbf16>
    %96 = vector.extract_strided_slice %45 {offsets = [0, 0, 48], sizes = [2, 32, 16], strides = [1, 1, 1]} : vector<2x32x64xbf16> to vector<2x32x16xbf16>
    %cst_36 = arith.constant dense<0.000000e+00> : vector<2x32x32xf32>
    %97 = tpu.matmul %94, %95, %cst_36 {dimension_numbers = #tpu.dot_dimension_numbers<[2], [2], [1], [1], [0, 0, 0, 1, 1, 1], [0], [0]>} : vector<2x32x16xbf16>, vector<2x32x16xbf16>, vector<2x32x32xf32> -> vector<2x32x32xf32>
    %cst_37 = arith.constant dense<0xFF800000> : vector<2x32xf32>
    %98 = vector.multi_reduction <maximumf>, %97, %cst_37 [2] : vector<2x32x32xf32> to vector<2x32xf32>
    %99 = vector.shape_cast %98 : vector<2x32xf32> to vector<2x32x1xf32>
    %100 = vector.broadcast %99 : vector<2x32x1xf32> to vector<2x32x32xf32>
    %101 = arith.subf %97, %100 : vector<2x32x32xf32>
    %102 = math.exp %101 : vector<2x32x32xf32>
    %cst_38 = arith.constant dense<0.000000e+00> : vector<2x32xf32>
    %103 = vector.multi_reduction <add>, %102, %cst_38 [2] : vector<2x32x32xf32> to vector<2x32xf32>
    %104 = vector.shape_cast %103 : vector<2x32xf32> to vector<2x32x1xf32>
    %105 = tpu.reciprocal %104 {approx = true} : vector<2x32x1xf32> -> vector<2x32x1xf32>
    %106 = vector.broadcast %105 : vector<2x32x1xf32> to vector<2x32x32xf32>
    %107 = arith.mulf %102, %106 : vector<2x32x32xf32>
    %108 = arith.truncf %107 : vector<2x32x32xf32> to vector<2x32x32xbf16>
    %cst_39 = arith.constant dense<0.000000e+00> : vector<2x32x16xf32>
    %109 = tpu.matmul %108, %96, %cst_39 {dimension_numbers = #tpu.dot_dimension_numbers<[2], [1], [1], [2], [0, 0, 0, 1, 1, 2], [0], [0]>} : vector<2x32x32xbf16>, vector<2x32x16xbf16>, vector<2x32x16xf32> -> vector<2x32x16xf32>
    %110 = tpu.concatenate %61, %77, %93, %109 in 2 : vector<2x32x16xf32>, vector<2x32x16xf32>, vector<2x32x16xf32>, vector<2x32x16xf32> -> vector<2x32x64xf32>
    %111 = vector.shape_cast %110 : vector<2x32x64xf32> to vector<64x64xf32>
    %112 = arith.truncf %111 : vector<64x64xf32> to vector<64x64xbf16>
    %c0_40 = arith.constant 0 : index
    %c0_41 = arith.constant 0 : index
    %c0_42 = arith.constant 0 : index
    %113 = vector.load %arg8[%c0_40, %c0_41, %c0_42] : memref<1x64x64xbf16, #tpu.memory_space<vmem>>, vector<1x64x64xbf16>
    %114 = vector.shape_cast %113 : vector<1x64x64xbf16> to vector<64x64xbf16>
    %cst_43 = arith.constant dense<0.000000e+00> : vector<64x64xf32>
    %115 = tpu.matmul %112, %114, %cst_43 {dimension_numbers = #tpu.dot_dimension_numbers<[1], [0], [0], [1], [0, 0, 1, 1], [], []>} : vector<64x64xbf16>, vector<64x64xbf16>, vector<64x64xf32> -> vector<64x64xf32>
    %c0_44 = arith.constant 0 : index
    %c0_45 = arith.constant 0 : index
    %c0_46 = arith.constant 0 : index
    %116 = vector.load %arg9[%c0_44, %c0_45, %c0_46] : memref<1x1x64xf32, #tpu.memory_space<vmem>>, vector<1x1x64xf32>
    %117 = vector.shape_cast %116 : vector<1x1x64xf32> to vector<1x64xf32>
    %118 = vector.broadcast %117 : vector<1x64xf32> to vector<64x64xf32>
    %119 = arith.addf %115, %118 : vector<64x64xf32>
    %120 = arith.addf %3, %119 : vector<64x64xf32>
    %c0_47 = arith.constant 0 : index
    %c0_48 = arith.constant 0 : index
    %c0_49 = arith.constant 0 : index
    %121 = vector.load %arg10[%c0_47, %c0_48, %c0_49] : memref<1x1x64xf32, #tpu.memory_space<vmem>>, vector<1x1x64xf32>
    %122 = vector.shape_cast %121 : vector<1x1x64xf32> to vector<1x64xf32>
    %c0_50 = arith.constant 0 : index
    %c0_51 = arith.constant 0 : index
    %c0_52 = arith.constant 0 : index
    %123 = vector.load %arg11[%c0_50, %c0_51, %c0_52] : memref<1x1x64xf32, #tpu.memory_space<vmem>>, vector<1x1x64xf32>
    %124 = vector.shape_cast %123 : vector<1x1x64xf32> to vector<1x64xf32>
    %cst_53 = arith.constant dense<0.000000e+00> : vector<64xf32>
    %125 = vector.multi_reduction <add>, %120, %cst_53 [1] : vector<64x64xf32> to vector<64xf32>
    %126 = vector.shape_cast %125 : vector<64xf32> to vector<64x1xf32>
    %cst_54 = arith.constant 6.400000e+01 : f32
    %127 = vector.broadcast %cst_54 : f32 to vector<64x1xf32>
    %128 = arith.divf %126, %127 : vector<64x1xf32>
    %129 = vector.broadcast %128 : vector<64x1xf32> to vector<64x64xf32>
    %130 = arith.subf %120, %129 : vector<64x64xf32>
    %131 = arith.mulf %130, %130 : vector<64x64xf32>
    %cst_55 = arith.constant dense<0.000000e+00> : vector<64xf32>
    %132 = vector.multi_reduction <add>, %131, %cst_55 [1] : vector<64x64xf32> to vector<64xf32>
    %133 = vector.shape_cast %132 : vector<64xf32> to vector<64x1xf32>
    %cst_56 = arith.constant 6.400000e+01 : f32
    %134 = vector.broadcast %cst_56 : f32 to vector<64x1xf32>
    %135 = arith.divf %133, %134 : vector<64x1xf32>
    %136 = vector.broadcast %128 : vector<64x1xf32> to vector<64x64xf32>
    %137 = arith.subf %120, %136 : vector<64x64xf32>
    %cst_57 = arith.constant 9.99999974E-6 : f32
    %138 = vector.broadcast %cst_57 : f32 to vector<64x1xf32>
    %139 = arith.addf %135, %138 : vector<64x1xf32>
    %140 = math.rsqrt %139 : vector<64x1xf32>
    %141 = vector.broadcast %140 : vector<64x1xf32> to vector<64x64xf32>
    %142 = arith.mulf %137, %141 : vector<64x64xf32>
    %143 = vector.broadcast %122 : vector<1x64xf32> to vector<64x64xf32>
    %144 = arith.mulf %142, %143 : vector<64x64xf32>
    %145 = vector.broadcast %124 : vector<1x64xf32> to vector<64x64xf32>
    %146 = arith.addf %144, %145 : vector<64x64xf32>
    %147 = arith.truncf %146 : vector<64x64xf32> to vector<64x64xbf16>
    %c0_58 = arith.constant 0 : index
    %c0_59 = arith.constant 0 : index
    %c0_60 = arith.constant 0 : index
    %148 = vector.load %arg12[%c0_58, %c0_59, %c0_60] : memref<1x64x128xbf16, #tpu.memory_space<vmem>>, vector<1x64x128xbf16>
    %149 = vector.shape_cast %148 : vector<1x64x128xbf16> to vector<64x128xbf16>
    %cst_61 = arith.constant dense<0.000000e+00> : vector<64x128xf32>
    %150 = tpu.matmul %147, %149, %cst_61 {dimension_numbers = #tpu.dot_dimension_numbers<[1], [0], [0], [1], [0, 0, 1, 1], [], []>} : vector<64x64xbf16>, vector<64x128xbf16>, vector<64x128xf32> -> vector<64x128xf32>
    %c0_62 = arith.constant 0 : index
    %c0_63 = arith.constant 0 : index
    %c0_64 = arith.constant 0 : index
    %151 = vector.load %arg13[%c0_62, %c0_63, %c0_64] : memref<1x1x128xf32, #tpu.memory_space<vmem>>, vector<1x1x128xf32>
    %152 = vector.shape_cast %151 : vector<1x1x128xf32> to vector<1x128xf32>
    %153 = vector.broadcast %152 : vector<1x128xf32> to vector<64x128xf32>
    %154 = arith.addf %150, %153 : vector<64x128xf32>
    %cst_65 = arith.constant 5.000000e-01 : f32
    %155 = vector.broadcast %cst_65 : f32 to vector<64x128xf32>
    %156 = arith.mulf %155, %154 : vector<64x128xf32>
    %cst_66 = arith.constant 4.471500e-02 : f32
    %157 = vector.broadcast %cst_66 : f32 to vector<64x128xf32>
    %158 = arith.mulf %157, %154 : vector<64x128xf32>
    %159 = arith.mulf %158, %154 : vector<64x128xf32>
    %160 = arith.mulf %159, %154 : vector<64x128xf32>
    %161 = arith.addf %154, %160 : vector<64x128xf32>
    %cst_67 = arith.constant 0.797884583 : f32
    %162 = vector.broadcast %cst_67 : f32 to vector<64x128xf32>
    %163 = arith.mulf %162, %161 : vector<64x128xf32>
    %164 = math.tanh %163 : vector<64x128xf32>
    %cst_68 = arith.constant 1.000000e+00 : f32
    %165 = vector.broadcast %cst_68 : f32 to vector<64x128xf32>
    %166 = arith.addf %165, %164 : vector<64x128xf32>
    %167 = arith.mulf %156, %166 : vector<64x128xf32>
    %168 = arith.truncf %167 : vector<64x128xf32> to vector<64x128xbf16>
    %c0_69 = arith.constant 0 : index
    %c0_70 = arith.constant 0 : index
    %c0_71 = arith.constant 0 : index
    %169 = vector.load %arg14[%c0_69, %c0_70, %c0_71] : memref<1x128x64xbf16, #tpu.memory_space<vmem>>, vector<1x128x64xbf16>
    %170 = vector.shape_cast %169 : vector<1x128x64xbf16> to vector<128x64xbf16>
    %cst_72 = arith.constant dense<0.000000e+00> : vector<64x64xf32>
    %171 = tpu.matmul %168, %170, %cst_72 {dimension_numbers = #tpu.dot_dimension_numbers<[1], [0], [0], [1], [0, 0, 1, 1], [], []>} : vector<64x128xbf16>, vector<128x64xbf16>, vector<64x64xf32> -> vector<64x64xf32>
    %c0_73 = arith.constant 0 : index
    %c0_74 = arith.constant 0 : index
    %c0_75 = arith.constant 0 : index
    %172 = vector.load %arg15[%c0_73, %c0_74, %c0_75] : memref<1x1x64xf32, #tpu.memory_space<vmem>>, vector<1x1x64xf32>
    %173 = vector.shape_cast %172 : vector<1x1x64xf32> to vector<1x64xf32>
    %174 = vector.broadcast %173 : vector<1x64xf32> to vector<64x64xf32>
    %175 = arith.addf %171, %174 : vector<64x64xf32>
    %176 = arith.addf %120, %175 : vector<64x64xf32>
    %c0_76 = arith.constant 0 : index
    %c0_77 = arith.constant 0 : index
    %177 = vector.load %arg19[%c0_76, %c0_77] : memref<64x64xf32, #tpu.memory_space<vmem>>, vector<64x64xf32>
    tpu.vector_store %arg19[%c0_76, %c0_77], %176 {strides = array<i32>} : memref<64x64xf32, #tpu.memory_space<vmem>>, vector<64x64xf32>,
    %c1_i32 = arith.constant 1 : i32
    %178 = arith.cmpi eq, %arg1, %c1_i32 : i32
    %179 = arith.extui %178 : i1 to i32
    %c0_i32_78 = arith.constant 0 : i32
    %180 = arith.cmpi ne, %179, %c0_i32_78 : i32
    scf.if %180 {
      %c0_79 = arith.constant 0 : index
      %c0_80 = arith.constant 0 : index
      %181 = vector.load %arg16[%c0_79, %c0_80] : memref<1x64xf32, #tpu.memory_space<vmem>>, vector<1x64xf32>
      %c0_81 = arith.constant 0 : index
      %c0_82 = arith.constant 0 : index
      %182 = vector.load %arg17[%c0_81, %c0_82] : memref<1x64xf32, #tpu.memory_space<vmem>>, vector<1x64xf32>
      %cst_83 = arith.constant dense<0.000000e+00> : vector<64xf32>
      %183 = vector.multi_reduction <add>, %176, %cst_83 [1] : vector<64x64xf32> to vector<64xf32>
      %184 = vector.shape_cast %183 : vector<64xf32> to vector<64x1xf32>
      %cst_84 = arith.constant 6.400000e+01 : f32
      %185 = vector.broadcast %cst_84 : f32 to vector<64x1xf32>
      %186 = arith.divf %184, %185 : vector<64x1xf32>
      %187 = vector.broadcast %186 : vector<64x1xf32> to vector<64x64xf32>
      %188 = arith.subf %176, %187 : vector<64x64xf32>
      %189 = arith.mulf %188, %188 : vector<64x64xf32>
      %cst_85 = arith.constant dense<0.000000e+00> : vector<64xf32>
      %190 = vector.multi_reduction <add>, %189, %cst_85 [1] : vector<64x64xf32> to vector<64xf32>
      %191 = vector.shape_cast %190 : vector<64xf32> to vector<64x1xf32>
      %cst_86 = arith.constant 6.400000e+01 : f32
      %192 = vector.broadcast %cst_86 : f32 to vector<64x1xf32>
      %193 = arith.divf %191, %192 : vector<64x1xf32>
      %194 = vector.broadcast %186 : vector<64x1xf32> to vector<64x64xf32>
      %195 = arith.subf %176, %194 : vector<64x64xf32>
      %cst_87 = arith.constant 9.99999974E-6 : f32
      %196 = vector.broadcast %cst_87 : f32 to vector<64x1xf32>
      %197 = arith.addf %193, %196 : vector<64x1xf32>
      %198 = math.rsqrt %197 : vector<64x1xf32>
      %199 = vector.broadcast %198 : vector<64x1xf32> to vector<64x64xf32>
      %200 = arith.mulf %195, %199 : vector<64x64xf32>
      %201 = vector.broadcast %181 : vector<1x64xf32> to vector<64x64xf32>
      %202 = arith.mulf %200, %201 : vector<64x64xf32>
      %203 = vector.broadcast %182 : vector<1x64xf32> to vector<64x64xf32>
      %204 = arith.addf %202, %203 : vector<64x64xf32>
      %205 = vector.shape_cast %204 : vector<64x64xf32> to vector<2x32x64xf32>
      %c0_88 = arith.constant 0 : index
      %c0_89 = arith.constant 0 : index
      %c0_90 = arith.constant 0 : index
      %206 = vector.load %arg18[%c0_88, %c0_89, %c0_90] : memref<2x32x64xf32, #tpu.memory_space<vmem>>, vector<2x32x64xf32>
      tpu.vector_store %arg18[%c0_88, %c0_89, %c0_90], %205 {strides = array<i32>} : memref<2x32x64xf32, #tpu.memory_space<vmem>>, vector<2x32x64xf32>,
    } else {
    }
    return
  }
  func.func @transform_0(%arg0: i32, %arg1: i32) -> (i32, i32, i32) {
    %c0_i32 = arith.constant 0 : i32
    %c0_i32_0 = arith.constant 0 : i32
    %c0_i32_1 = arith.constant 0 : i32
    return %arg0, %c0_i32, %c0_i32_0 : i32, i32, i32
  }
  func.func @transform_1(%arg0: i32, %arg1: i32) -> (i32, i32, i32) {
    %c0_i32 = arith.constant 0 : i32
    %c0_i32_0 = arith.constant 0 : i32
    %c0_i32_1 = arith.constant 0 : i32
    return %arg1, %c0_i32, %c0_i32_0 : i32, i32, i32
  }
  func.func @transform_2(%arg0: i32, %arg1: i32) -> (i32, i32, i32) {
    %c0_i32 = arith.constant 0 : i32
    %c0_i32_0 = arith.constant 0 : i32
    %c0_i32_1 = arith.constant 0 : i32
    return %arg1, %c0_i32, %c0_i32_0 : i32, i32, i32
  }
  func.func @transform_3(%arg0: i32, %arg1: i32) -> (i32, i32, i32) {
    %c0_i32 = arith.constant 0 : i32
    %c0_i32_0 = arith.constant 0 : i32
    %c0_i32_1 = arith.constant 0 : i32
    return %arg1, %c0_i32, %c0_i32_0 : i32, i32, i32
  }
  func.func @transform_4(%arg0: i32, %arg1: i32) -> (i32, i32, i32) {
    %c0_i32 = arith.constant 0 : i32
    %c0_i32_0 = arith.constant 0 : i32
    %c0_i32_1 = arith.constant 0 : i32
    return %arg1, %c0_i32, %c0_i32_0 : i32, i32, i32
  }
  func.func @transform_5(%arg0: i32, %arg1: i32) -> (i32, i32, i32) {
    %c0_i32 = arith.constant 0 : i32
    %c0_i32_0 = arith.constant 0 : i32
    %c0_i32_1 = arith.constant 0 : i32
    return %arg1, %c0_i32, %c0_i32_0 : i32, i32, i32
  }
  func.func @transform_6(%arg0: i32, %arg1: i32) -> (i32, i32, i32) {
    %c0_i32 = arith.constant 0 : i32
    %c0_i32_0 = arith.constant 0 : i32
    %c0_i32_1 = arith.constant 0 : i32
    return %arg1, %c0_i32, %c0_i32_0 : i32, i32, i32
  }
  func.func @transform_7(%arg0: i32, %arg1: i32) -> (i32, i32, i32) {
    %c0_i32 = arith.constant 0 : i32
    %c0_i32_0 = arith.constant 0 : i32
    %c0_i32_1 = arith.constant 0 : i32
    return %arg1, %c0_i32, %c0_i32_0 : i32, i32, i32
  }
  func.func @transform_8(%arg0: i32, %arg1: i32) -> (i32, i32, i32) {
    %c0_i32 = arith.constant 0 : i32
    %c0_i32_0 = arith.constant 0 : i32
    %c0_i32_1 = arith.constant 0 : i32
    return %arg1, %c0_i32, %c0_i32_0 : i32, i32, i32
  }
  func.func @transform_9(%arg0: i32, %arg1: i32) -> (i32, i32, i32) {
    %c0_i32 = arith.constant 0 : i32
    %c0_i32_0 = arith.constant 0 : i32
    %c0_i32_1 = arith.constant 0 : i32
    return %arg1, %c0_i32, %c0_i32_0 : i32, i32, i32
  }
  func.func @transform_10(%arg0: i32, %arg1: i32) -> (i32, i32, i32) {
    %c0_i32 = arith.constant 0 : i32
    %c0_i32_0 = arith.constant 0 : i32
    %c0_i32_1 = arith.constant 0 : i32
    return %arg1, %c0_i32, %c0_i32_0 : i32, i32, i32
  }
  func.func @transform_11(%arg0: i32, %arg1: i32) -> (i32, i32, i32) {
    %c0_i32 = arith.constant 0 : i32
    %c0_i32_0 = arith.constant 0 : i32
    %c0_i32_1 = arith.constant 0 : i32
    return %arg1, %c0_i32, %c0_i32_0 : i32, i32, i32
  }
  func.func @transform_12(%arg0: i32, %arg1: i32) -> (i32, i32, i32) {
    %c0_i32 = arith.constant 0 : i32
    %c0_i32_0 = arith.constant 0 : i32
    %c0_i32_1 = arith.constant 0 : i32
    return %arg1, %c0_i32, %c0_i32_0 : i32, i32, i32
  }
  func.func @transform_13(%arg0: i32, %arg1: i32) -> (i32, i32, i32) {
    %c0_i32 = arith.constant 0 : i32
    %c0_i32_0 = arith.constant 0 : i32
    %c0_i32_1 = arith.constant 0 : i32
    return %arg1, %c0_i32, %c0_i32_0 : i32, i32, i32
  }
  func.func @transform_14(%arg0: i32, %arg1: i32) -> (i32, i32) {
    %c0_i32 = arith.constant 0 : i32
    %c0_i32_0 = arith.constant 0 : i32
    %c0_i32_1 = arith.constant 0 : i32
    return %c0_i32, %c0_i32_0 : i32, i32
  }
  func.func @transform_15(%arg0: i32, %arg1: i32) -> (i32, i32) {
    %c0_i32 = arith.constant 0 : i32
    %c0_i32_0 = arith.constant 0 : i32
    %c0_i32_1 = arith.constant 0 : i32
    return %c0_i32, %c0_i32_0 : i32, i32
  }
  func.func @transform_16(%arg0: i32, %arg1: i32) -> (i32, i32, i32) {
    %c0_i32 = arith.constant 0 : i32
    %c0_i32_0 = arith.constant 0 : i32
    %c0_i32_1 = arith.constant 0 : i32
    return %arg0, %c0_i32, %c0_i32_0 : i32, i32, i32
  }
}

</mosaic_0001>

<bundles_post_ra>
// kernel: transformer.1
= control target key start
LH: loop header
LB: loop body
LE: loop exit
PB: predicated region body
PF: predicated region fallthrough
CT: control target
= control target key end

     0   :  { %s6119_s0 = inlined_call_operand.vmem [shape: f32[4,32,64], index: 0, kind: input, shape index: {}]   ;;  %s6120_s1 = inlined_call_operand.hbm [shape: f32[2,1,64], index: 1, kind: input, shape index: {}]   ;;  %s6121_s2 = inlined_call_operand.hbm [shape: f32[2,1,64], index: 2, kind: input, shape index: {}]   ;;  %s6122_s3 = inlined_call_operand.vmem [shape: bf16[2,64,64], index: 3, kind: input, shape index: {}]   ;;  %s6123_s4 = inlined_call_operand.vmem [shape: bf16[2,64,64], index: 4, kind: input, shape index: {}]   ;;  %s6124_s5 = inlined_call_operand.vmem [shape: bf16[2,64,64], index: 5, kind: input, shape index: {}]   ;;  %s6125_s6 = inlined_call_operand.hbm [shape: bf16[2,64,64], index: 6, kind: input, shape index: {}]   ;;  %s6126_s7 = inlined_call_operand.vmem [shape: f32[2,1,64], index: 7, kind: input, shape index: {}]   ;;  %s6127_s8 = inlined_call_operand.hbm [shape: f32[2,1,64], index: 8, kind: input, shape index: {}]   ;;  %s6128_s9 = inlined_call_operand.hbm [shape: f32[2,1,64], index: 9, kind: input, shape index: {}]   ;;  %s6129_s10 = inlined_call_operand.hbm [shape: bf16[2,64,128], index: 10, kind: input, shape index: {}]   ;;  %s6130_s11 = inlined_call_operand.hbm [shape: f32[2,1,128], index: 11, kind: input, shape index: {}]   ;;  %s6131_s12 = inlined_call_operand.vmem [shape: bf16[2,128,64], index: 12, kind: input, shape index: {}]   ;;  %s6132_s13 = inlined_call_operand.hbm [shape: f32[2,1,64], index: 13, kind: input, shape index: {}]   ;;  %s6133_s14 = inlined_call_operand.vmem [shape: f32[1,64], index: 14, kind: input, shape index: {}]   ;;  %s6134_s15 = inlined_call_operand.vmem [shape: f32[1,64], index: 15, kind: input, shape index: {}]   ;;  %s6135_s16 = inlined_call_operand.hbm [shape: f32[4,32,64], index: 16, kind: output, shape index: {}]  }
   0x1   :  { %6151 = sst [smem:[#allocation35_spill]] %s6119_s0 }
   0x2   :  { %6152 = sst [smem:[#allocation36_spill]] %s6120_s1 }
   0x3   :  { %6153 = sst [smem:[#allocation37_spill]] %s6121_s2 }
   0x4   :  { %6154 = sst [smem:[#allocation38_spill]] %s6122_s3 }
   0x5   :  { %6155 = sst [smem:[#allocation39_spill]] %s6123_s4 }
   0x6   :  { %6156 = sst [smem:[#allocation40_spill]] %s6124_s5 }
   0x7   :  { %6157 = sst [smem:[#allocation41_spill]] %s6125_s6 }
   0x8   :  { %6158 = sst [smem:[#allocation42_spill]] %s6126_s7 }
   0x9   :  { %6159 = sst [smem:[#allocation43_spill]] %s6127_s8 }
   0xa   :  { %6160 = sst [smem:[#allocation44_spill]] %s6128_s9 }
   0xb   :  { %6161 = sst [smem:[#allocation45_spill]] %s6129_s10 }
   0xc   :  { %6162 = sst [smem:[#allocation46_spill]] %s6130_s11 }
   0xd   :  { %6163 = sst [smem:[#allocation47_spill]] %s6131_s12 }
   0xe   :  { %6164 = sst [smem:[#allocation48_spill]] %s6132_s13 }
   0xf   :  { %6165 = sst [smem:[#allocation49_spill]] %s6133_s14 }
  0x10   :  { %6166 = sst [smem:[#allocation50_spill]] %s6134_s15 }
  0x11   :  { %6167 = sst [smem:[#allocation51_spill]] %s6135_s16 }
  0x12   :  { %21 = vsyncpa [#allocation4], 0 }
  0x13   :  { %23 = vsyncpa [#allocation4 + $0x1], 0 }
  0x14   :  { %24 = vsyncpa [#allocation7], 0 }
  0x15   :  { %26 = vsyncpa [#allocation7 + $0x1], 0 }
  0x16   :  { %27 = vsyncpa [#allocation10], 0 }
  0x17   :  { %29 = vsyncpa [#allocation10 + $0x1], 0 }
  0x18   :  { %30 = vsyncpa [#allocation13], 0 }
  0x19   :  { %32 = vsyncpa [#allocation13 + $0x1], 0 }
  0x1a   :  { %33 = vsyncpa [#allocation16], 0 }
  0x1b   :  { %35 = vsyncpa [#allocation16 + $0x1], 0 }
  0x1c   :  { %36 = vsyncpa [#allocation5], 0 }
  0x1d   :  { %38 = vsyncpa [#allocation5 + $0x1], 0  ;;  %s4763_s21 = smov 0   ;;  %s4765_s22 = smov 0  }
  0x1e   :  { %s4767_s23 = smov 0   ;;  %s4769_s24 = smov 0  }
  0x1f   :  { %s4771_s25 = smov 0   ;;  %s4773_s26 = smov 0  }
  0x20   :  { %s4775_s27 = smov 0   ;;  %s4777_s28 = smov 0  }
  0x21   :  { %s4779_s29 = smov 0   ;;  %s4781_s30 = smov 0  }
  0x22   :  { %s4783_s0 = smov 0  }
  0x23 LB: > { %6168 = sst [smem:[#allocation24_spill]] %s4625_s21  ;;  %s4817_s17 = sadd.s32 4294967295, %s4665_s0   ;;  %s4665_s0 = sphi %s4783_s0, %s44_s0   ;;  %s4661_s30 = sphi %s4781_s30, %s6228_s30   ;;  %s4657_s29 = sphi %s4779_s29, %s6234_s29   ;;  %s4653_s28 = sphi %s4777_s28, %s6226_s28   ;;  %s4649_s27 = sphi %s4775_s27, %s6233_s27   ;;  %s4645_s26 = sphi %s4773_s26, %s6225_s26   ;;  %s4641_s25 = sphi %s4771_s25, %s6232_s25   ;;  %s4637_s24 = sphi %s4769_s24, %s6231_s24   ;;  %s4633_s23 = sphi %s4767_s23, %s6223_s23   ;;  %s4629_s22 = sphi %s4765_s22, %s6230_s22   ;;  %s4625_s21 = sphi %s4763_s21, %s6229_s21  }
  0x24   : > { %6169 = sst [smem:[#allocation25_spill]] %s4633_s23  ;;  %s3631_s18 = sadd.s32 4294967294, %s4665_s0  }
  0x25   : > { %6170 = sst [smem:[#allocation26_spill]] %s4645_s26  ;;  %s53_s19 = sadd.s32 1, %s4657_s29 }
  0x26   : > { %6171 = sst [smem:[#allocation27_spill]] %s4661_s30  ;;  %s56_s20 = sadd.s32 1, %s4661_s30 }
  0x27   : > { %6172 = sst [smem:[#allocation28_spill]] %s4665_s0  ;;  %p54_p0 = scmp.ge.s32.totalorder %s53_s19, 2 }
  0x28   : > { %s89_s16 = sadd.s32 1, %s4645_s26  ;;  %p96_p1 = scmp.ne.s32.totalorder %s4645_s26, %s4641_s25 }
  0x29   : > { %p97_p2 = scmp.eq.s32.totalorder %s4665_s0, 0  ;;  %s6236_s19 = smov (%p54_p0, %s53_s19), 0 }
  0x2a   : > { %6173 = sst [smem:[#allocation29_spill]] %s6236_s19  ;;  %s6238_s20 = smov (!%p54_p0, %s56_s20), %s4661_s30 }
  0x2b   : > { %s86_s15 = ssub.s32 %s4657_s29, %s6236_s19  ;;  %p4831_p3 = por %p97_p2, %p96_p1 }
  0x2c   : > { %p58_p4 = scmp.ge.s32.totalorder %s6238_s20, 2  ;;  %p87_p5 = scmp.eq.s32.totalorder %s86_s15, 0 }
  0x2d   : > { %p102_p6 = scmp.ne.s32.totalorder %s4641_s25, %s4637_s24  ;;  %p103_p7 = scmp.eq.s32.totalorder %s4817_s17, 0 }
  0x2e   : > { %s6240_s20 = smov (%p58_p4, %s6238_s20), 0  ;;  %s469_s5 = sadd.s32 1, %s4633_s23 }
  0x2f   : > { %6175 = sst [smem:[#allocation30_spill]] %s6240_s20  ;;  %p4842_p8 = por %p103_p7, %p102_p6 }
  0x30   : > { %s4840_s12 = scalar_select %p87_p5, %s4645_s26, %s89_s16  }
  0x31   : > { %s466_s7 = ssub.s32 %s4661_s30, %s6240_s20  ;;  %p479_p10 = scmp.ne.s32.totalorder %s4633_s23, %s4629_s22 }
  0x32   : > { %6176 = sst [smem:[#allocation31_spill]] %s4840_s12  ;;  %p467_p9 = scmp.eq.s32.totalorder %s466_s7, 0 }
  0x33   : > { %p480_p11 = scmp.eq.s32.totalorder %s4817_s17, 3  ;;  %p485_p13 = scmp.ne.s32.totalorder %s4629_s22, %s4625_s21 }
  0x34   : > { %s4853_s15 = scalar_select %p467_p9, %s4633_s23, %s469_s5  }
  0x35   : > { %p4855_p12 = por %p480_p11, %p479_p10  ;;  %p486_p0 = scmp.eq.s32.totalorder %s3631_s18, 3 }
  0x36   : > { %6178 = sst [smem:[#allocation32_spill]] %s4853_s15  ;;  %p3915_p1 = scmp.lt.s32.totalorder %s4665_s0, 4 }
  0x37   : > { %s6179_s24 = scalar_select %p4855_p12, 1, 0 }
  0x38   : > { %s4863_s16 = sand.u32 1, %s4645_s26   ;;  %p4865_p2 = por %p486_p0, %p485_p13 }
  0x39   : > { %6180 = sst [smem:[#allocation33_spill]] %s6179_s24  ;;  %s4870_s5 = sand.u32 1, %s4665_s0  }
  0x3a   : > { %s6181_s7 = scalar_select %p4865_p2, 1, 0 }
  0x3b   : > { %p4874_p4 = pnand %p3915_p1, %p4831_p3  ;;  %s6184_s2 = sld [smem:[#allocation37_spill]] }
  0x3c   : > { %6182 = sst [smem:[#allocation34_spill]] %s6181_s7  ;;  %s542_s15 = scalar_lea.vmem [#allocation6], %s4863_s16 }
  0x3d   : > { %s549_s23 = sshll.u32 %s542_s15, 4  ;;  %s6146_s14 = scalar_lea.sflag [#allocation7], %s4870_s5  ;;  %s550_s23 = int_to_ptr.vmem [resolvable:$true] %s549_s23 }
  0x3e   : > { %p3640_p3 = scmp.ge.s32.totalorder %s4665_s0, 1  ;;  %p704_p5 = scmp.lt.s32.totalorder %s4665_s0, 5 }
  0x3f   : > { %s6186_s8 = sld [smem:[#allocation43_spill]]  ;;  %s611_s21 = scalar_lea.vmem [#allocation9], %s4863_s16 }
  0x40   : > { %p4890_p6 = pnand %p3640_p3, %p704_p5  ;;  %s618_s24 = sshll.u32 %s611_s21, 4  ;;  %s619_s24 = int_to_ptr.vmem [resolvable:$true] %s618_s24 }
  0x41   : > { %s545_s12 = scalar_lea.hbm %s6184_s2, %s4657_s29  ;;  %s6149_s15 = scalar_lea.sflag [#allocation10], %s4870_s5 }
  0x42   : > { %s547_s26 = sshll.u32 %s545_s12, 4  ;;  %s6187_s6 = sld [smem:[#allocation41_spill]]  ;;  %s548_s26 = int_to_ptr.hbm [resolvable:$true] %s547_s26 }
  0x43   : > { %3892 = dma.hbm_to_vmem [thread:$0]  (!%p4874_p4), %s548_s26, 16, %s550_s23, %s6146_s14  }
  0x44   : > { %s3634_s23 = sshll.u32 %s4863_s16, 5  ;;  %s3827_s26 = sshll.u32 %s4657_s29, 5 }
  0x45   : > { %s614_s2 = scalar_lea.hbm %s6186_s8, %s4657_s29  ;;  %s6188_s10 = sld [smem:[#allocation45_spill]] }
  0x46   : > { %s616_s7 = sshll.u32 %s614_s2, 4  ;;  %s584_s2 = scalar_lea.vmem [#allocation8], %s3634_s23  ;;  %s617_s7 = int_to_ptr.hbm [resolvable:$true] %s616_s7 }
  0x47   : > { %3898 = dma.hbm_to_vmem [thread:$0]  (!%p4874_p4), %s617_s7, 16, %s619_s24, %s6149_s15  }
  0x48   : > { %s589_s4 = scalar_lea.hbm %s6187_s6, %s3827_s26  ;;  %s592_s18 = sshll.u32 %s584_s2, 4  ;;  %s593_s18 = int_to_ptr.vmem [resolvable:$true] %s592_s18 }
  0x49   : > { %s590_s12 = sshll.u32 %s589_s4, 4  ;;  %s646_s7 = scalar_lea.vmem [#allocation12], %s3634_s23  ;;  %s591_s12 = int_to_ptr.hbm [resolvable:$true] %s590_s12 }
  0x4a   : > { %s654_s0 = sshll.u32 %s646_s7, 4  ;;  %s643_s4 = scalar_lea.sflag [#allocation13], %s4870_s5  ;;  %s655_s0 = int_to_ptr.vmem [resolvable:$true] %s654_s0 }
  0x4b   : > { %s651_s3 = scalar_lea.hbm %s6188_s10, %s3827_s26  ;;  %s4667_s14 = smov 64  }
  0x4c   : > { %s652_s24 = sshll.u32 %s651_s3, 4  ;;  %s4668_s2 = smov 4   ;;  %s653_s24 = int_to_ptr.hbm [resolvable:$true] %s652_s24 }
  0x4d   : > { %3904 = dma.hbm_to_vmem [thread:$0]  (!%p4874_p4), %s653_s24, 512, %s655_s0, %s643_s4, %s4667_s14, %s4667_s14, %s4668_s2  }
  0x4e   : > { %s6189_s1 = sld [smem:[#allocation36_spill]]  ;;  %s525_s8 = scalar_lea.vmem [#allocation3], %s4863_s16 }
  0x4f   : > { %s532_s23 = sshll.u32 %s525_s8, 4  ;;  %s523_s21 = scalar_lea.sflag [#allocation4], %s4863_s16  ;;  %s533_s23 = int_to_ptr.vmem [resolvable:$true] %s532_s23 }
  0x50   : > { %s6190_s7 = scalar_lea.sflag [#allocation7], %s4870_s5  ;;  %s6191_s9 = sld [smem:[#allocation44_spill]] }
  0x51   : > { %3895 = dma.hbm_to_vmem [thread:$0]  (!%p4874_p4), %s591_s12, 512, %s593_s18, %s6190_s7, %s4667_s14, %s4667_s14, %s4668_s2  }
  0x52   : > { %s628_s0 = scalar_lea.vmem [#allocation11], %s4863_s16  ;;  %s6193_s11 = sld [smem:[#allocation46_spill]] }
  0x53   : > { %s667_s12 = scalar_lea.vmem [#allocation14], %s4863_s16  ;;  %s6194_s13 = sld [smem:[#allocation48_spill]] }
  0x54   : > { %s528_s3 = scalar_lea.hbm %s6189_s1, %s4657_s29  ;;  %s635_s1 = sshll.u32 %s628_s0, 4  ;;  %s636_s1 = int_to_ptr.vmem [resolvable:$true] %s635_s1 }
  0x55   : > { %s530_s26 = sshll.u32 %s528_s3, 4  ;;  %s6192_s3 = scalar_lea.sflag [#allocation10], %s4870_s5  ;;  %s531_s26 = int_to_ptr.hbm [resolvable:$true] %s530_s26 }
  0x56   : > { %3889 = dma.hbm_to_vmem [thread:$0]  (!%p4874_p4), %s531_s26, 16, %s533_s23, %s523_s21  }
  0x57   : > { %s631_s15 = scalar_lea.hbm %s6191_s9, %s4657_s29  ;;  %s674_s18 = sshll.u32 %s667_s12, 4  ;;  %s675_s18 = int_to_ptr.vmem [resolvable:$true] %s674_s18 }
  0x58   : > { %s633_s10 = sshll.u32 %s631_s15, 4  ;;  %s670_s26 = scalar_lea.hbm %s6193_s11, %s4657_s29  ;;  %s634_s10 = int_to_ptr.hbm [resolvable:$true] %s633_s10 }
  0x59   : > { %3901 = dma.hbm_to_vmem [thread:$0]  (!%p4874_p4), %s634_s10, 16, %s636_s1, %s6192_s3  }
  0x5a   : > { %s672_s14 = sshll.u32 %s670_s26, 4  ;;  %s695_s7 = scalar_lea.hbm %s6194_s13, %s4657_s29  ;;  %s673_s14 = int_to_ptr.hbm [resolvable:$true] %s672_s14 }
  0x5b   : > { %3907 = dma.hbm_to_vmem [thread:$0]  (!%p4874_p4), %s673_s14, 16, %s675_s18, %s643_s4  }
  0x5c   : > { %s697_s24 = sshll.u32 %s695_s7, 4  ;;  %s692_s6 = scalar_lea.vmem [#allocation15], %s4863_s16  ;;  %s698_s24 = int_to_ptr.hbm [resolvable:$true] %s697_s24 }
  0x5d   : > { %s699_s5 = sshll.u32 %s692_s6, 4  ;;  %s690_s1 = scalar_lea.sflag [#allocation16], %s4863_s16  ;;  %s700_s5 = int_to_ptr.vmem [resolvable:$true] %s699_s5 }
  0x5e   : > { %3910 = dma.hbm_to_vmem [thread:$0]  (!%p4874_p4), %s698_s24, 16, %s700_s5, %s690_s1  }
  0x5f   : > { %708 = sbr.rel (%p4890_p6) target bundleno = 2737 (0xab1), region = 84  ;;  %s4954_s10 = sand.u32 (!%p4890_p6), 1, %s4641_s25  }
  0x60   : > { %s711_s4 = scalar_lea.sflag (!%p4890_p6), [#allocation4], %s4954_s10 }
  0x64   : > { %4600 = dma.done.wait (%p4842_p8), %s711_s4, 16  }
  0x65   : > { %4602 = vsyncadd (%p4842_p8), %s711_s4, 4294967280  ;;  %s719_s20 = sand.u32 1, %s4817_s17  }
  0x66   : > { %s720_s16 = scalar_lea.sflag [#allocation7], %s719_s20 }
  0x67   : > { %4604 = dma.done.wait (%p4842_p8), %s720_s16, 528  }
  0x68   : > { %4606 = vsyncadd (%p4842_p8), %s720_s16, 4294966768  ;;  %s3641_s0 = sshll.u32 %s4954_s10, 5  ;;  %s739_s8 = scalar_lea.sflag [#allocation10], %s719_s20 }
  0x69   : > { %s4969_s3 = scalar_lea.vmem [#allocation8], %s3641_s0 }
  0x6a   : > { %4608 = dma.done.wait (%p4842_p8), %s739_s8, 32  }
  0x6b   : > { %4610 = vsyncadd (%p4842_p8), %s739_s8, 4294967264  ;;  %s757_s26 = scalar_lea.sflag [#allocation13], %s719_s20  ;;  %s4977_s12 = scalar_lea.vmem [#allocation12], %s3641_s0 }
  0x6c   : > { %4612 = dma.done.wait (%p4842_p8), %s757_s26, 528  }
  0x6d   : > { %4614 = vsyncadd (%p4842_p8), %s757_s26, 4294966768  ;;  %s776_s14 = scalar_lea.sflag [#allocation16], %s4954_s10 }
  0x6e   : > { %4616 = dma.done.wait (%p4842_p8), %s776_s14, 16  }
  0x6f   : > { %4618 = vsyncadd (%p4842_p8), %s776_s14, 4294967280  ;;  %s6150_s21 = sand.u32 1, %s4629_s22   ;;  %s3644_s7 = sshll.u32 %s4653_s28, 1 }
  0x70   : > { %s3643_s24 = sshll.u32 %s6150_s21, 6  ;;  %p887_p7 = scmp.lt.s32.totalorder %s3644_s7, 3 }
  0x71   : > { %p893_p9 = scmp.lt.s32.totalorder %s4649_s27, 1  ;;  %s6195_s4 = sld [smem:[#allocation35_spill]] }
  0x72   : > { %s6242_s7 = smov (!%p887_p7, %s3644_s7), 3  ;;  %s6196_s26 = sld [smem:[#allocation38_spill]] }
  0x73   : > { %s4996_s6 = scalar_select %p893_p9, %s4649_s27, 1 }
  0x74   : > { %s3829_s5 = sshll.u32 %s6242_s7, 5  ;;  %s6197_s18 = sld [smem:[#allocation39_spill]] }
  0x75   : > { %s3830_s16 = sshll.u32 %s4996_s6, 5  ;;  %s6198_s15 = sld [smem:[#allocation40_spill]] }
  0x76   : > { %s6199_s19 = sld [smem:[#allocation42_spill]]  ;;  %s3833_s1 = sshll.u32 %s4996_s6, 6 }
  0x77   : > { %s891_s20 = scalar_lea.vmem %s6195_s4, %s3829_s5  ;;  %s6200_s0 = sld [smem:[#allocation47_spill]] }
  0x78   : > { %s5005_s14 = scalar_lea.vmem %s6196_s26, %s3830_s16  ;;  %s5027_s26 = scalar_lea.vmem [#allocation17], %s3643_s24 }
  0x79   : > { %p3655_p8 = scmp.ne.s32.totalorder %s4649_s27, 0 }
  0x7a   : > { %s5010_s17 = scalar_lea.vmem %s6197_s18, %s3830_s16 }
  0x7b   : > { %s5015_s9 = scalar_lea.vmem %s6198_s15, %s3830_s16  ;;  %921 = sbr.rel (%p3655_p8) target bundleno = 137 (0x89), region = 120 }
  0x7c   : > { %s910_s5 = scalar_lea.vmem %s6199_s19, %s4996_s6 }
  0x7d   : > { %s5025_s8 = scalar_lea.vmem %s6200_s0, %s3833_s1 }
  0x80   : > { %v922_v0 = vld [vmem:[%s891_s20] sm:$0xff]  ;;  %vm930_vm0 = vcmask 523264   ;;  %v923_v1 = vld [vmem:[%s891_s20 + $0x8] sm:$0xff]  ;;  %v924_v2 = vld [vmem:[%s891_s20 + $0x10] sm:$0xff] }
  0x81   : > { %931 = vst.msk [vmem:[#allocation2] sm:$0xff] %vm930_vm0, %v922_v0  ;;  %v925_v3 = vld [vmem:[%s891_s20 + $0x18] sm:$0xff]  ;;  %v926_v4 = vld [vmem:[%s891_s20 + $0x20] sm:$0xff]  ;;  %v927_v5 = vld [vmem:[%s891_s20 + $0x28] sm:$0xff] }
  0x82   : > { %932 = vst.msk [vmem:[#allocation2 + $0x8] sm:$0xff] %vm930_vm0, %v923_v1  ;;  %v928_v6 = vld [vmem:[%s891_s20 + $0x30] sm:$0xff]  ;;  %v929_v7 = vld [vmem:[%s891_s20 + $0x38] sm:$0xff] }
  0x83   : > { %933 = vst.msk [vmem:[#allocation2 + $0x10] sm:$0xff] %vm930_vm0, %v924_v2 }
  0x84   : > { %934 = vst.msk [vmem:[#allocation2 + $0x18] sm:$0xff] %vm930_vm0, %v925_v3 }
  0x85   : > { %935 = vst.msk [vmem:[#allocation2 + $0x20] sm:$0xff] %vm930_vm0, %v926_v4 }
  0x86   : > { %936 = vst.msk [vmem:[#allocation2 + $0x28] sm:$0xff] %vm930_vm0, %v927_v5 }
  0x87   : > { %937 = vst.msk [vmem:[#allocation2 + $0x30] sm:$0xff] %vm930_vm0, %v928_v6 }
  0x88   : > { %938 = vst.msk [vmem:[#allocation2 + $0x38] sm:$0xff] %vm930_vm0, %v929_v7 }
  0x89 PF: > { %vm949_vm1 = vcmask 523264   ;;  %v939_v10 = vld [vmem:[#allocation2] sm:$0xff]  ;;  %v940_v16 = vld [vmem:[#allocation2 + $0x8] sm:$0xff]  ;;  %v4669_v22 = vmov 64.0   ;;  %v3837_v2 = vld [vmem:[%s5005_s14 + $0x18] sm:$0xff]  ;;  %s6202_s11 = scalar_lea.vmem [#allocation6], %s4954_s10 }
  0x8a   : > { %v950_v13 = vsel %vm949_vm1, %v939_v10, 0.0  ;;  %v953_v19 = vsel %vm949_vm1, %v940_v16, 0.0  ;;  %v941_v20 = vld [vmem:[#allocation2 + $0x10] sm:$0xff]  ;;  %4083 = vrcp.f32 %v4669_v22  ;;  %3864 = vmatpush.bf16.msra.mxu1 %v3837_v2  ;;  %1207 = vmatpush.bf16.msra.mxu0 %v3837_v2  ;;  %v3835_v5 = vld [vmem:[%s5005_s14 + $0x8] sm:$0xff]  ;;  %s4670_s13 = smov 112   ;;  %s4671_s15 = smov 96  }
  0x8b   : > { %951 = vadd.xlane.f32.xlu2 %v950_v13  ;;  %v956_v21 = vsel %vm949_vm1, %v941_v20, 0.0  ;;  %v942_v43 = vld [vmem:[#allocation2 + $0x18] sm:$0xff]  ;;  %v3836_v3 = vld [vmem:[%s5005_s14 + $0x10] sm:$0xff]  ;;  %s4672_s30 = smov 80   ;;  %s4673_s23 = smov 16  }
  0x8c   : > { %v943_v9 = vld [vmem:[#allocation2 + $0x20] sm:$0xff]  ;;  %v959_v46 = vsel %vm949_vm1, %v942_v43, 0.0  ;;  %s4675_s18 = smov 48   ;;  %s6209_s24 = scalar_lea.vmem [#allocation11], %s4954_s10 }
  0x8d   : > { %v962_v12 = vsel %vm949_vm1, %v943_v9, 0.0  ;;  %v944_v15 = vld [vmem:[#allocation2 + $0x28] sm:$0xff]  ;;  %s6210_s6 = scalar_lea.vmem [#allocation14], %s4954_s10  ;;  %s6211_s20 = scalar_lea.vmem [#allocation15], %s4954_s10 }
  0x8e   : > { %v945_v8 = vld [vmem:[#allocation2 + $0x30] sm:$0xff]  ;;  %963 = vadd.xlane.f32.xlu0 %v962_v12  ;;  %v965_v18 = vsel %vm949_vm1, %v944_v15, 0.0  ;;  %3865 = vmatpush.bf16.msra.mxu1 %v3836_v3  ;;  %p3820_p10 = scmp.ne.s32.totalorder %s4649_s27, 1 }
  0x8f   : > { %v968_v11 = vsel %vm949_vm1, %v945_v8, 0.0  ;;  %v946_v14 = vld [vmem:[#allocation2 + $0x38] sm:$0xff]  ;;  %1208 = vmatpush.bf16.msra.mxu0 %v3836_v3  ;;  %s6212_s16 = sld [smem:[#allocation49_spill]] (!%p3820_p10) }
  0x90   : > { %969 = vadd.xlane.f32.xlu1 %v968_v11  ;;  %v971_v17 = vsel %vm949_vm1, %v946_v14, 0.0  ;;  %v4084_v23 = vpop.eup %4083  ;;  %v3845_v11 = vld [vmem:[%s5015_s9 + $0x18] sm:$0xff]  ;;  %s6213_s19 = sld [smem:[#allocation50_spill]] (!%p3820_p10) }
  0x91   : > { %v975_v24 = vmul.f32 64.0, %v4084_v23  ;;  %vm979_vm2 = vweird.f32 %v4084_v23  ;;  %1329 = vmatpush.bf16.msra.mxu2 %v3845_v11 }
  0x92   : > { %3866 = vmatpush.bf16.msra.mxu1 %v3835_v5 }
  0x93   : > { %954 = vadd.xlane.f32.xlu2 %v953_v19  ;;  %v976_v25 = vsub.f32 1.0, %v975_v24  ;;  %1209 = vmatpush.bf16.msra.mxu0 %v3835_v5 }
  0x95   : > { %v977_v26 = vmul.f32 %v4084_v23, %v976_v25  ;;  %v3843_v25 = vld [vmem:[%s5015_s9 + $0x8] sm:$0xff] }
  0x96   : > { %966 = vadd.xlane.f32.xlu0 %v965_v18 }
  0x97   : > { %v978_v27 = vadd.f32 %v4084_v23, %v977_v26 }
  0x98   : > { %972 = vadd.xlane.f32.xlu1 %v971_v17 }
  0x99   : > { %v5037_v28 = vsel %vm979_vm2, %v4084_v23, %v978_v27 }
  0x9b   : > { %957 = vadd.xlane.f32.xlu2 %v956_v21  ;;  %v3844_v21 = vld [vmem:[%s5015_s9 + $0x10] sm:$0xff] }
  0x9c   : > { %1330 = vmatpush.bf16.msra.mxu2 %v3844_v21 }
  0xa0   : > { %1331 = vmatpush.bf16.msra.mxu2 %v3843_v25 }
  0xfe   : > { %v952_v32 = vpop.xlane.xlu2 %951 }
  0xff   : > { %v981_v39 = vmul.f32 %v5037_v28, %v952_v32 }
 0x101   : > { %v964_v30 = vpop.xlane.xlu0 %963  ;;  %v5056_v48 = vsub.f32 %v939_v10, %v981_v39 }
 0x102   : > { %v985_v31 = vmul.f32 %v5037_v28, %v964_v30 }
 0x103   : > { %v970_v29 = vpop.xlane.xlu1 %969  ;;  %v997_v56 = vmul.f32 %v5056_v48, %v5056_v48 }
 0x104   : > { %v5040_v33 = vsub.f32 %v943_v9, %v985_v31  ;;  %v987_v38 = vmul.f32 %v5037_v28, %v970_v29 }
 0x105   : > { %v1005_v61 = vsel %vm949_vm1, %v997_v56, 0.0 }
 0x106   : > { %v1001_v34 = vmul.f32 %v5040_v33, %v5040_v33  ;;  %v955_v42 = vpop.xlane.xlu2 %954  ;;  %v5054_v47 = vsub.f32 %v945_v8, %v987_v38  ;;  %v3834_v8 = vld [vmem:[%s5005_s14] sm:$0xff] }
 0x107   : > { %v982_v53 = vmul.f32 %v5037_v28, %v955_v42  ;;  %3867 = vmatpush.bf16.msra.mxu1 %v3834_v8  ;;  %1210 = vmatpush.bf16.msra.mxu0 %v3834_v8  ;;  %v5126_v8 = vld [vmem:[%s6202_s11] ss:$0 sm:$0xff] }
 0x108   : > { %v1017_v35 = vsel %vm949_vm1, %v1001_v34, 0.0  ;;  %v1003_v55 = vmul.f32 %v5054_v47, %v5054_v47  ;;  %v3842_v34 = vld [vmem:[%s5015_s9] sm:$0xff]  ;;  %s6201_s9 = scalar_lea.vmem [#allocation3], %s4954_s10 }
 0x109   : > { %1018 = vadd.xlane.f32.xlu0 %v1017_v35  ;;  %v967_v37 = vpop.xlane.xlu0 %966  ;;  %v5072_v59 = vsub.f32 %v940_v16, %v982_v53  ;;  %1332 = vmatpush.bf16.msra.mxu2 %v3842_v34 }
 0x10a   : > { %v986_v41 = vmul.f32 %v5037_v28, %v967_v37  ;;  %v1023_v60 = vsel %vm949_vm1, %v1003_v55, 0.0 }
 0x10b   : > { %v973_v36 = vpop.xlane.xlu1 %972  ;;  %v998_v0 = vmul.f32 %v5072_v59, %v5072_v59 }
 0x10c   : > { %v988_v40 = vmul.f32 %v5037_v28, %v973_v36  ;;  %v5051_v45 = vsub.f32 %v944_v15, %v986_v41 }
 0x10d   : > { %v1008_v1 = vsel %vm949_vm1, %v998_v0, 0.0 }
 0x10e   : > { %v5049_v44 = vsub.f32 %v946_v14, %v988_v40  ;;  %v1002_v49 = vmul.f32 %v5051_v45, %v5051_v45  ;;  %v958_v54 = vpop.xlane.xlu2 %957 }
 0x10f   : > { %v983_v57 = vmul.f32 %v5037_v28, %v958_v54  ;;  %v3840_v54 = vld [vmem:[%s5010_s17 + $0x10] sm:$0xff] }
 0x110   : > { %v1004_v50 = vmul.f32 %v5049_v44, %v5049_v44  ;;  %v1020_v51 = vsel %vm949_vm1, %v1002_v49, 0.0 }
 0x111   : > { %1021 = vadd.xlane.f32.xlu1 %v1020_v51  ;;  %960 = vadd.xlane.f32.xlu0 %v959_v46  ;;  %v5070_v58 = vsub.f32 %v941_v20, %v983_v57  ;;  %v3841_v51 = vld [vmem:[%s5010_s17 + $0x18] sm:$0xff] }
 0x112   : > { %v1026_v52 = vsel %vm949_vm1, %v1004_v50, 0.0  ;;  %1268 = vmatpush.bf16.msrb.mxu1 %v3841_v51 }
 0x113   : > { %1027 = vadd.xlane.f32.xlu2 %v1026_v52  ;;  %v999_v62 = vmul.f32 %v5070_v58, %v5070_v58 }
 0x115   : > { %v1011_v63 = vsel %vm949_vm1, %v999_v62, 0.0 }
 0x116   : > { %1269 = vmatpush.bf16.msrb.mxu1 %v3840_v54 }
 0x119   : > { %1024 = vadd.xlane.f32.xlu1 %v1023_v60  ;;  %1006 = vadd.xlane.f32.xlu0 %v1005_v61  ;;  %v5118_v61 = vld [vmem:[%s6201_s9] ss:$0 sm:$0xff] }
 0x11b   : > { %1012 = vadd.xlane.f32.xlu2 %v1011_v63 }
 0x121   : > { %1009 = vadd.xlane.f32.xlu1 %v1008_v1 }
 0x17c   : > { %v1019_v4 = vpop.xlane.xlu0 %1018 }
 0x17d   : > { %v1033_v6 = vmul.f32 %v1019_v4, %v5037_v28  ;;  %v3839_v4 = vld [vmem:[%s5010_s17 + $0x8] sm:$0xff] }
 0x17e   : > { %1270 = vmatpush.bf16.msrb.mxu1 %v3839_v4 }
 0x17f   : > { %v1041_v7 = vadd.f32 1e-05, %v1033_v6 }
 0x181   : > { %4085 = vrsqrt.f32 %v1041_v7  ;;  %vm1091_vm4 = vweird.f32 %v1041_v7 }
 0x184   : > { %v1022_v9 = vpop.xlane.xlu1 %1021  ;;  %v961_v10 = vpop.xlane.xlu0 %960 }
 0x185   : > { %v1034_v12 = vmul.f32 %v1022_v9, %v5037_v28  ;;  %v984_v13 = vmul.f32 %v5037_v28, %v961_v10 }
 0x186   : > { %v1028_v14 = vpop.xlane.xlu2 %1027 }
 0x187   : > { %v1036_v15 = vmul.f32 %v1028_v14, %v5037_v28  ;;  %v4086_v16 = vpop.eup %4085  ;;  %v1042_v17 = vadd.f32 1e-05, %v1034_v12  ;;  %v5091_v18 = vsub.f32 %v942_v43, %v984_v13 }
 0x188   : > { %v1086_v19 = vmul.f32 %v4086_v16, %v1041_v7  ;;  %vm1092_vm3 = vweird.f32 %v4086_v16 }
 0x189   : > { %v5093_v20 = vadd.f32 1e-05, %v1036_v15  ;;  %4087 = vrsqrt.f32 %v1042_v17  ;;  %v1000_v22 = vmul.f32 %v5091_v18, %v5091_v18  ;;  %vm1093_vm5 = vmor %vm1091_vm4, %vm1092_vm3  ;;  %vm1101_vm6 = vweird.f32 %v1042_v17 }
 0x18a   : > { %v1087_v23 = vmul.f32 %v4086_v16, %v1086_v19 }
 0x18b   : > { %4089 = vrsqrt.f32 %v5093_v20  ;;  %v1014_v24 = vsel %vm949_vm1, %v1000_v22, 0.0  ;;  %vm1121_vm11 = vweird.f32 %v5093_v20 }
 0x18c   : > { %v1088_v26 = vmul.f32 0.5, %v1087_v23  ;;  %v1025_v27 = vpop.xlane.xlu1 %1024  ;;  %1015 = vadd.xlane.f32.xlu0 %v1014_v24  ;;  %v1007_v29 = vpop.xlane.xlu0 %1006 }
 0x18d   : > { %v1035_v30 = vmul.f32 %v1025_v27, %v5037_v28  ;;  %v1029_v31 = vmul.f32 %v1007_v29, %v5037_v28 }
 0x18e   : > { %v1089_v32 = vsub.f32 1.5, %v1088_v26 }
 0x18f   : > { %v4088_v35 = vpop.eup %4087  ;;  %v1043_v36 = vadd.f32 1e-05, %v1035_v30  ;;  %v5104_v37 = vadd.f32 1e-05, %v1029_v31 }
 0x190   : > { %v1090_v39 = vmul.f32 %v4086_v16, %v1089_v32  ;;  %v1096_v40 = vmul.f32 %v4088_v35, %v1042_v17  ;;  %vm1102_vm7 = vweird.f32 %v4088_v35 }
 0x191   : > { %v5106_v38 = vpop.eup %4089  ;;  %4091 = vrsqrt.f32 %v1043_v36  ;;  %vm1103_vm8 = vmor %vm1101_vm6, %vm1102_vm7  ;;  %vm1111_vm9 = vweird.f32 %v1043_v36  ;;  %vm1051_vm13 = vweird.f32 %v5104_v37 }
 0x192   : > { %v1116_v41 = vmul.f32 %v5106_v38, %v5093_v20  ;;  %v1097_v42 = vmul.f32 %v4088_v35, %v1096_v40  ;;  %4093 = vrsqrt.f32 %v5104_v37  ;;  %v1094_v46 = vsel %vm1093_vm5, %v4086_v16, %v1090_v39 }
 0x193   : > { %v1129_v56 = vmul.f32 %v1094_v46, %v5040_v33  ;;  %vm1122_vm12 = vweird.f32 %v5106_v38 }
 0x194   : > { %v1117_v43 = vmul.f32 %v5106_v38, %v1116_v41  ;;  %v1098_v49 = vmul.f32 0.5, %v1097_v42  ;;  %v1010_v50 = vpop.xlane.xlu1 %1009  ;;  %vm5142_vm0 = vmor %vm1121_vm11, %vm1122_vm12  ;;  %vm1398_vm12 = vcmask 130048  }
 0x195   : > { %v1030_v52 = vmul.f32 %v1010_v50, %v5037_v28  ;;  %v1140_v7 = vmul.f32 %v5118_v61, %v1129_v56 }
 0x196   : > { %v1099_v53 = vsub.f32 1.5, %v1098_v49  ;;  %v1118_v57 = vmul.f32 0.5, %v1117_v43 }
 0x197   : > { %v4092_v55 = vpop.eup %4091  ;;  %v1038_v60 = vadd.f32 1e-05, %v1030_v52  ;;  %v1151_v17 = vadd.f32 %v5126_v8, %v1140_v7 }
 0x198   : > { %v4094_v62 = vpop.eup %4093  ;;  %v1100_v63 = vmul.f32 %v4088_v35, %v1099_v53  ;;  %v1106_v0 = vmul.f32 %v4092_v55, %v1043_v36  ;;  %v1119_v33 = vsub.f32 1.5, %v1118_v57  ;;  %vm1112_vm10 = vweird.f32 %v4092_v55 }
 0x199   : > { %v1046_v1 = vmul.f32 %v4094_v62, %v5104_v37  ;;  %4095 = vrsqrt.f32 %v1038_v60  ;;  %vm1052_vm14 = vweird.f32 %v4094_v62  ;;  %vm5134_vm15 = vmor %vm1111_vm9, %vm1112_vm10  ;;  %vm1061_vm3 = vweird.f32 %v1038_v60 }
 0x19a   : > { %v1104_v2 = vsel %vm1103_vm8, %v4088_v35, %v1100_v63  ;;  %v1107_v3 = vmul.f32 %v4092_v55, %v1106_v0  ;;  %v1120_v14 = vmul.f32 %v5106_v38, %v1119_v33  ;;  %vm1053_vm2 = vmor %vm1051_vm13, %vm1052_vm14  ;;  %vm1481_vm13 = vcmask 261120  }
 0x19b   : > { %v1130_v5 = vmul.f32 %v1104_v2, %v5051_v45  ;;  %v1047_v6 = vmul.f32 %v4094_v62, %v1046_v1  ;;  %v3838_v45 = vld [vmem:[%s5010_s17] sm:$0xff]  ;;  %s4674_s17 = smov 32   ;;  %vm2552_vm14 = vcmask 392192  }
 0x19c   : > { %v1108_v9 = vmul.f32 0.5, %v1107_v3  ;;  %1271 = vmatpush.bf16.msrb.mxu1 %v3838_v45  ;;  %v1124_v29 = vsel %vm5142_vm0, %v5106_v38, %v1120_v14 }
 0x19d   : > { %v1048_v10 = vmul.f32 0.5, %v1047_v6  ;;  %v1141_v11 = vmul.f32 %v5118_v61, %v1130_v5  ;;  %v1132_v34 = vmul.f32 %v1124_v29, %v5049_v44 }
 0x19e   : > { %v1109_v12 = vsub.f32 1.5, %v1108_v9 }
 0x19f   : > { %v4096_v13 = vpop.eup %4095  ;;  %v1049_v16 = vsub.f32 1.5, %v1048_v10  ;;  %v1152_v19 = vadd.f32 %v5126_v8, %v1141_v11  ;;  %v1143_v41 = vmul.f32 %v5118_v61, %v1132_v34 }
 0x1a0   : > { %v1110_v22 = vmul.f32 %v4092_v55, %v1109_v12  ;;  %v1056_v23 = vmul.f32 %v4096_v13, %v1038_v60  ;;  %vm1062_vm4 = vweird.f32 %v4096_v13 }
 0x1a1   : > { %v1050_v24 = vmul.f32 %v4094_v62, %v1049_v16  ;;  %v5146_v25 = vpack.c.bf16 %v1152_v19, %v1151_v17  ;;  %vm1063_vm5 = vmor %vm1061_vm3, %vm1062_vm4 }
 0x1a2   : > { %v1114_v26 = vsel %vm5134_vm15, %v4092_v55, %v1110_v22  ;;  %v1057_v27 = vmul.f32 %v4096_v13, %v1056_v23 }
 0x1a3   : > { %3674 = vmatmul.msk.bf16.vlgmr.msra.gmra.mxu1 %vm949_vm1, %v5146_v25  ;;  %v1054_v20 = vsel %vm1053_vm2, %v4094_v62, %v1050_v24  ;;  %v1131_v31 = vmul.f32 %v1114_v26, %v5054_v47 }
 0x1a4   : > { %v1058_v30 = vmul.f32 0.5, %v1057_v27  ;;  %v1125_v35 = vmul.f32 %v1054_v20, %v5056_v48  ;;  %v1154_v48 = vadd.f32 %v5126_v8, %v1143_v41 }
 0x1a5   : > { %v1142_v37 = vmul.f32 %v5118_v61, %v1131_v31 }
 0x1a6   : > { %v1059_v32 = vsub.f32 1.5, %v1058_v30  ;;  %v1136_v40 = vmul.f32 %v5118_v61, %v1125_v35 }
 0x1a7   : > { %v1153_v47 = vadd.f32 %v5126_v8, %v1142_v37 }
 0x1a8   : > { %v1060_v36 = vmul.f32 %v4096_v13, %v1059_v32  ;;  %v1147_v43 = vadd.f32 %v5126_v8, %v1136_v40 }
 0x1a9   : > { %v1158_v49 = vpack.c.bf16 %v1154_v48, %v1153_v47 }
 0x1aa   : > { %v1064_v39 = vsel %vm1063_vm5, %v4096_v13, %v1060_v36 }
 0x1ab   : > { %v1126_v38 = vmul.f32 %v1064_v39, %v5072_v59  ;;  %v1013_v59 = vpop.xlane.xlu2 %1012 }
 0x1ac   : > { %v1031_v50 = vmul.f32 %v1013_v59, %v5037_v28 }
 0x1ad   : > { %v1137_v42 = vmul.f32 %v5118_v61, %v1126_v38 }
 0x1ae   : > { %v1039_v51 = vadd.f32 1e-05, %v1031_v50 }
 0x1af   : > { %v1148_v44 = vadd.f32 %v5126_v8, %v1137_v42 }
 0x1b0   : > { %4097 = vrsqrt.f32 %v1039_v51  ;;  %vm1071_vm6 = vweird.f32 %v1039_v51 }
 0x1b1   : > { %v1155_v46 = vpack.c.bf16 %v1148_v44, %v1147_v43 }
 0x1b3   : > { %3672 = vmatmul.msk.bf16.vlgmr.msra.gmra.mxu0 %vm949_vm1, %v1155_v46  ;;  %3675 = vmatmul.msk.bf16.gmra.mxu1 %vm949_vm1, %v1158_v49 }
 0x1b4   : > { %3712 = vmatmul.msk.bf16.vlgmr.msra.gmra.mxu2 %vm949_vm1, %v1155_v46 }
 0x1b6   : > { %v4098_v52 = vpop.eup %4097 }
 0x1b7   : > { %v1066_v53 = vmul.f32 %v4098_v52, %v1039_v51  ;;  %vm1072_vm7 = vweird.f32 %v4098_v52 }
 0x1b8   : > { %vm1073_vm8 = vmor %vm1071_vm6, %vm1072_vm7 }
 0x1b9   : > { %v1067_v54 = vmul.f32 %v4098_v52, %v1066_v53 }
 0x1bb   : > { %v1068_v60 = vmul.f32 0.5, %v1067_v54 }
 0x1bd   : > { %v1069_v62 = vsub.f32 1.5, %v1068_v60 }
 0x1bf   : > { %v1070_v0 = vmul.f32 %v4098_v52, %v1069_v62 }
 0x1c1   : > { %v1074_v3 = vsel %vm1073_vm8, %v4098_v52, %v1070_v0 }
 0x1c2   : > { %v1127_v33 = vmul.f32 %v1074_v3, %v5070_v58 }
 0x1c3   : > { %3692 = vmatmul.msk.bf16.vlgmr.msrb.gmra.mxu1 %vm949_vm1, %v1155_v46 }
 0x1c4   : > { %v1138_v10 = vmul.f32 %v5118_v61, %v1127_v33 }
 0x1c6   : > { %v1149_v12 = vadd.f32 %v5126_v8, %v1138_v10 }
 0x1ff   : > { %v1016_v55 = vpop.xlane.xlu0 %1015 }
 0x200   : > { %v1032_v56 = vmul.f32 %v1016_v55, %v5037_v28 }
 0x202   : > { %v1040_v57 = vadd.f32 1e-05, %v1032_v56 }
 0x204   : > { %4099 = vrsqrt.f32 %v1040_v57  ;;  %vm1081_vm10 = vweird.f32 %v1040_v57 }
 0x20a   : > { %v4100_v63 = vpop.eup %4099 }
 0x20b   : > { %v1076_v1 = vmul.f32 %v4100_v63, %v1040_v57  ;;  %vm1082_vm9 = vweird.f32 %v4100_v63 }
 0x20c   : > { %vm1083_vm11 = vmor %vm1081_vm10, %vm1082_vm9 }
 0x20d   : > { %v1077_v2 = vmul.f32 %v4100_v63, %v1076_v1 }
 0x20f   : > { %v1078_v4 = vmul.f32 0.5, %v1077_v2 }
 0x211   : > { %v1079_v5 = vsub.f32 1.5, %v1078_v4 }
 0x213   : > { %v1080_v6 = vmul.f32 %v4100_v63, %v1079_v5 }
 0x215   : > { %v1084_v7 = vsel %vm1083_vm11, %v4100_v63, %v1080_v6 }
 0x216   : > { %v1128_v9 = vmul.f32 %v1084_v7, %v5091_v18 }
 0x218   : > { %v1139_v11 = vmul.f32 %v5118_v61, %v1128_v9 }
 0x21a   : > { %v1150_v45 = vadd.f32 %v5126_v8, %v1139_v11 }
 0x21c   : > { %v1156_v13 = vpack.c.bf16 %v1150_v45, %v1149_v12 }
 0x21e   : > { %3673 = vmatmul.msk.bf16.gmra.mxu0 %vm949_vm1, %v1156_v13  ;;  %3693 = vmatmul.msk.bf16.gmra.mxu1 %vm949_vm1, %v1156_v13 }
 0x21f   : > { %3713 = vmatmul.msk.bf16.gmra.mxu2 %vm949_vm1, %v1156_v13 }
 0x220   : > { %v1222_v58 = vpop.f32.mrf.mxu1 }
 0x221   : > { %v1358_v50 = vpack.c.bf16 %v1222_v58, %v1222_v58 }
 0x223   : > { %v1434_v63 = vunpack.c.l.b16 %v1358_v50 }
 0x228   : > { %v1224_v14 = vpop.f32.mrf.mxu1 }
 0x229   : > { %v1359_v48 = vpack.c.bf16 %v1224_v14, %v1224_v14 }
 0x22b   : > { %v1435_v56 = vunpack.c.l.b16 %v1359_v48 }
 0x22d   : > { %v5214_v2 = vpack.c.b16 %v1435_v56, %v1434_v63 }
 0x22e   : > { %3694 = vmatmul.msk.bf16.gmra.mxu1 %vm949_vm1, %v5146_v25 }
 0x22f   : > { %3714 = vmatmul.msk.bf16.gmra.mxu2 %vm949_vm1, %v5146_v25 }
 0x230   : > { %v1212_v18 = vpop.f32.mrf.mxu0  ;;  %v5186_v61 = vpop.f32.mrf.mxu1 }
 0x231   : > { %v1354_v15 = vpack.c.bf16 %v1212_v18, %v1212_v18 }
 0x233   : > { %v1382_v19 = vunpack.c.l.b16 %v1354_v15 }
 0x237   : > { %v1334_v30 = vpop.f32.mrf.mxu2 }
 0x238   : > { %v1214_v8 = vpop.f32.mrf.mxu0  ;;  %v5188_v16 = vpop.f32.mrf.mxu1  ;;  %v1370_v57 = vpack.c.bf16 %v1334_v30, %v1334_v30 }
 0x239   : > { %v1355_v17 = vpack.c.bf16 %v1214_v8, %v1214_v8 }
 0x23a   : > { %v1592_v3 = vunpack.c.l.b16 %v1370_v57 }
 0x23b   : > { %v1383_v21 = vunpack.c.l.b16 %v1355_v17 }
 0x23d   : > { %v5190_v22 = vpack.c.b16 %v1383_v21, %v1382_v19  ;;  %v1361_v19 = vpack.c.bf16 %v5188_v16, %v5188_v16 }
 0x23e   : > { %3695 = vmatmul.msk.bf16.gmra.mxu1 %vm949_vm1, %v1158_v49 }
 0x23f   : > { %3715 = vmatmul.msk.bf16.gmra.mxu2 %vm949_vm1, %v1158_v49  ;;  %1672 = vrot.lane.b32.xlu0 %v5190_v22, %s4670_s13  ;;  %v1336_v31 = vpop.f32.mrf.mxu2  ;;  %v1437_v16 = vunpack.c.l.b16 %v1361_v19 }
 0x240   : > { %v1273_v23 = vpop.f32.mrf.mxu1  ;;  %v1371_v53 = vpack.c.bf16 %v1336_v31, %v1336_v31 }
 0x241   : > { %v1362_v24 = vpack.c.bf16 %v1273_v23, %v1273_v23 }
 0x242   : > { %v1593_v0 = vunpack.c.l.b16 %v1371_v53 }
 0x243   : > { %v1392_v27 = vunpack.c.l.b16 %v1362_v24  ;;  %v1360_v24 = vpack.c.bf16 %v5186_v61, %v5186_v61 }
 0x244   : > { %v5221_v6 = vpack.c.b16 %v1593_v0, %v1592_v3 }
 0x248   : > { %v1275_v25 = vpop.f32.mrf.mxu1 }
 0x249   : > { %v1363_v26 = vpack.c.bf16 %v1275_v25, %v1275_v25 }
 0x24b   : > { %v1393_v29 = vunpack.c.l.b16 %v1363_v26 }
 0x24d   : > { %v5196_v20 = vpack.c.b16 %v1393_v29, %v1392_v27 }
 0x24f   : > { %1676 = vrot.lane.b32.xlu2 %v5196_v20, %s4670_s13  ;;  %v1406_v33 = vsel %vm1398_vm12, %v5196_v20, 0 }
 0x29b   : > { %v1217_v32 = vpop.f32.mrf.mxu0  ;;  %v1278_v34 = vpop.f32.mrf.mxu1 }
 0x29c   : > { %v1356_v35 = vpack.c.bf16 %v1217_v32, %v1217_v32  ;;  %v1364_v36 = vpack.c.bf16 %v1278_v34, %v1278_v34  ;;  %v1436_v32 = vunpack.c.l.b16 %v1360_v24 }
 0x29e   : > { %v1384_v42 = vunpack.c.l.b16 %v1356_v35  ;;  %v1394_v47 = vunpack.c.l.b16 %v1364_v36 }
 0x2a2   : > { %v1339_v37 = vpop.f32.mrf.mxu2 }
 0x2a3   : > { %v1219_v39 = vpop.f32.mrf.mxu0  ;;  %v1280_v38 = vpop.f32.mrf.mxu1  ;;  %v1372_v59 = vpack.c.bf16 %v1339_v37, %v1339_v37 }
 0x2a4   : > { %v1357_v40 = vpack.c.bf16 %v1219_v39, %v1219_v39  ;;  %v1365_v41 = vpack.c.bf16 %v1280_v38, %v1280_v38 }
 0x2a5   : > { %v1594_v60 = vunpack.c.l.b16 %v1372_v59 }
 0x2a6   : > { %v1385_v43 = vunpack.c.l.b16 %v1357_v40  ;;  %v1395_v44 = vunpack.c.l.b16 %v1365_v41 }
 0x2a8   : > { %v5200_v46 = vpack.c.b16 %v1385_v43, %v1384_v42  ;;  %v5202_v49 = vpack.c.b16 %v1395_v44, %v1394_v47 }
 0x2aa   : > { %v1341_v51 = vpop.f32.mrf.mxu2  ;;  %1934 = vrot.lane.b32.xlu0 %v5202_v49, %s4671_s15  ;;  %1678 = vrot.lane.b32.xlu1 %v5202_v49, %s4670_s13  ;;  %v1409_v52 = vsel %vm1398_vm12, %v5202_v49, 0 }
 0x2ab   : > { %v1373_v54 = vpack.c.bf16 %v1341_v51, %v1341_v51  ;;  %1674 = vrot.lane.b32.xlu2 %v5200_v46, %s4670_s13  ;;  %v1283_v55 = vpop.f32.mrf.mxu1  ;;  %1417 = vmatpush.bf16.xpose.msra.mxu3 %v1409_v52 }
 0x2ac   : > { %v1366_v4 = vpack.c.bf16 %v1283_v55, %v1283_v55 }
 0x2ad   : > { %v1595_v62 = vunpack.c.l.b16 %v1373_v54 }
 0x2ae   : > { %v1444_v10 = vunpack.c.l.b16 %v1366_v4 }
 0x2af   : > { %v5212_v1 = vpack.c.b16 %v1595_v62, %v1594_v60 }
 0x2b1   : > { %1612 = vmatpush.bf16.msrb.mxu0 %v5212_v1  ;;  %v1673_v40 = vpop.permute.xlu0 %1672 }
 0x2b2   : > { %v1344_v5 = vpop.f32.mrf.mxu2  ;;  %1711 = vrot.lane.b32.xlu0 %v5214_v2, %s4670_s13 }
 0x2b3   : > { %v1285_v7 = vpop.f32.mrf.mxu1  ;;  %1418 = vmatpush.bf16.xpose.msra.mxu3 %v1406_v33  ;;  %v1374_v61 = vpack.c.bf16 %v1344_v5, %v1344_v5 }
 0x2b4   : > { %v1367_v9 = vpack.c.bf16 %v1285_v7, %v1285_v7 }
 0x2b5   : > { %1613 = vmatpush.bf16.msrb.mxu0 %v5221_v6  ;;  %v1639_v36 = vunpack.c.l.b16 %v1374_v61 }
 0x2b6   : > { %v1445_v11 = vunpack.c.l.b16 %v1367_v9 }
 0x2b8   : > { %v1448_v12 = vpack.c.b16 %v1445_v11, %v1444_v10 }
 0x2ba   : > { %v1346_v45 = vpop.f32.mrf.mxu2  ;;  %3716 = vmatmul.msk.bf16.vlgmr.msra.gmra.mxu3 %vm1398_vm12, %v5190_v22  ;;  %1930 = vrot.lane.b32.xlu0 %v5200_v46, %s4671_s15  ;;  %v1457_v39 = vsel %vm1398_vm12, %v1448_v12, 0 }
 0x2bb   : > { %1715 = vrot.lane.b32.xlu2 %v1448_v12, %s4670_s13  ;;  %v1288_v13 = vpop.f32.mrf.mxu1  ;;  %v1375_v27 = vpack.c.bf16 %v1346_v45, %v1346_v45 }
 0x2bc   : > { %v1368_v58 = vpack.c.bf16 %v1288_v13, %v1288_v13 }
 0x2bd   : > { %v1640_v34 = vunpack.c.l.b16 %v1375_v27 }
 0x2be   : > { %v1446_v8 = vunpack.c.l.b16 %v1368_v58 }
 0x2bf   : > { %v5250_v37 = vpack.c.b16 %v1640_v34, %v1639_v36 }
 0x2c2   : > { %v1349_v14 = vpop.f32.mrf.mxu2  ;;  %1971 = vrot.lane.b32.xlu0 %v1448_v12, %s4671_s15 }
 0x2c3   : > { %1928 = vrot.lane.b32.xlu2 %v5190_v22, %s4671_s15  ;;  %v1290_v18 = vpop.f32.mrf.mxu1  ;;  %v1376_v23 = vpack.c.bf16 %v1349_v14, %v1349_v14 }
 0x2c4   : > { %v1369_v15 = vpack.c.bf16 %v1290_v18, %v1290_v18 }
 0x2c5   : > { %v1641_v30 = vunpack.c.l.b16 %v1376_v23 }
 0x2c6   : > { %v1447_v17 = vunpack.c.l.b16 %v1369_v15 }
 0x2c8   : > { %v1449_v21 = vpack.c.b16 %v1447_v17, %v1446_v8 }
 0x2ca   : > { %v1351_v25 = vpop.f32.mrf.mxu2  ;;  %1717 = vrot.lane.b32.xlu1 %v1449_v21, %s4670_s13  ;;  %2184 = vrot.lane.b32.xlu0 %v5190_v22, %s4672_s30  ;;  %v1460_v26 = vsel %vm1398_vm12, %v1449_v21, 0  ;;  %v1439_v22 = vpack.c.b16 %v1437_v16, %v1436_v32 }
 0x2cb   : > { %v1377_v29 = vpack.c.bf16 %v1351_v25, %v1351_v25  ;;  %2188 = vrot.lane.b32.xlu2 %v5196_v20, %s4672_s30  ;;  %3717 = vmatmul.msk.bf16.gmra.mxu3 %vm1398_vm12, %v5200_v46 }
 0x2cc   : > { %1468 = vmatpush.bf16.xpose.msrb.mxu3 %v1460_v26 }
 0x2cd   : > { %v1642_v31 = vunpack.c.l.b16 %v1377_v29 }
 0x2cf   : > { %v5244_v35 = vpack.c.b16 %v1642_v31, %v1641_v30 }
 0x2d1   : > { %1659 = vmatpush.bf16.msra.mxu1 %v5244_v35 }
 0x2d2   : > { %1932 = vrot.lane.b32.xlu1 %v5196_v20, %s4671_s15  ;;  %2225 = vrot.lane.b32.xlu0 %v1439_v22, %s4672_s30  ;;  %v1677_v20 = vpop.permute.xlu2 %1676 }
 0x2d3   : > { %1969 = vrot.lane.b32.xlu2 %v1439_v22, %s4671_s15 }
 0x2d4   : > { %1469 = vmatpush.bf16.xpose.msrb.mxu3 %v1457_v39 }
 0x2d5   : > { %1660 = vmatpush.bf16.msra.mxu1 %v5250_v37 }
 0x2da   : > { %1713 = vrot.lane.b32.xlu1 %v1439_v22, %s4670_s13  ;;  %2229 = vrot.lane.b32.xlu0 %v1449_v21, %s4672_s30 }
 0x2db   : > { %2227 = vrot.lane.b32.xlu2 %v1448_v12, %s4672_s30  ;;  %3718 = vmatmul.msk.bf16.vlgmr.msrb.gmra.mxu3 %vm1398_vm12, %v5214_v2 }
 0x2e2   : > { %2190 = vrot.lane.b32.xlu1 %v5202_v49, %s4672_s30  ;;  %1856 = vrot.lane.b32.xlu0 %v5221_v6, %s4670_s13  ;;  %v1687_v49 = vsel %vm1398_vm12, %v1677_v20, 0 }
 0x2e3   : > { %1973 = vrot.lane.b32.xlu2 %v1449_v21, %s4671_s15 }
 0x2ea   : > { %1967 = vrot.lane.b32.xlu1 %v5214_v2, %s4671_s15  ;;  %1899 = vrot.lane.b32.xlu0 %v5244_v35, %s4670_s13 }
 0x2eb   : > { %2112 = vrot.lane.b32.xlu2 %v5221_v6, %s4671_s15  ;;  %3719 = vmatmul.msk.bf16.gmra.mxu3 %vm1398_vm12, %v1439_v22 }
 0x2f2   : > { %2186 = vrot.lane.b32.xlu1 %v5200_v46, %s4672_s30  ;;  %1897 = vrot.lane.b32.xlu0 %v5250_v37, %s4670_s13 }
 0x2fa   : > { %2223 = vrot.lane.b32.xlu1 %v5214_v2, %s4672_s30  ;;  %2370 = vrot.lane.b32.xlu0 %v5212_v1, %s4672_s30 }
 0x302   : > { %1858 = vrot.lane.b32.xlu1 %v5212_v1, %s4670_s13 }
 0x305   : > { %v1675_v38 = vpop.permute.xlu2 %1674 }
 0x30a   : > { %2114 = vrot.lane.b32.xlu1 %v5212_v1, %s4671_s15 }
 0x315   : > { %v1716_v41 = vpop.permute.xlu2 %1715 }
 0x316   : > { %v1726_v1 = vsel %vm1398_vm12, %v1716_v41, 0 }
 0x31c   : > { %v1935_v42 = vpop.permute.xlu0 %1934  ;;  %v1679_v47 = vpop.permute.xlu1 %1678 }
 0x31d   : > { %v1929_v43 = vpop.permute.xlu2 %1928  ;;  %v1690_v44 = vsel %vm1398_vm12, %v1679_v47, 0  ;;  %v1946_v59 = vsel %vm1398_vm12, %v1935_v42, 0 }
 0x31e   : > { %1698 = vmatpush.bf16.xpose.msrb.mxu2 %v1690_v44 }
 0x324   : > { %v1712_v48 = vpop.permute.xlu0 %1711 }
 0x325   : > { %v2189_v46 = vpop.permute.xlu2 %2188 }
 0x326   : > { %1699 = vmatpush.bf16.xpose.msrb.mxu2 %v1687_v49  ;;  %v2199_v17 = vsel %vm1398_vm12, %v2189_v46, 0 }
 0x32c   : > { %v1931_v50 = vpop.permute.xlu0 %1930 }
 0x32d   : > { %3724 = vmatmul.msk.bf16.vlgmr.msrb.gmra.mxu2 %vm1398_vm12, %v1673_v40  ;;  %v5288_v51 = vpop.permute.xlu2 %1969 }
 0x32e   : > { %1954 = vmatpush.bf16.xpose.msra.mxu2 %v1946_v59 }
 0x334   : > { %v1972_v52 = vpop.permute.xlu0 %1971 }
 0x335   : > { %v2228_v53 = vpop.permute.xlu2 %2227  ;;  %v1982_v9 = vsel %vm1398_vm12, %v1972_v52, 0 }
 0x336   : > { %v2238_v18 = vsel %vm1398_vm12, %v2228_v53, 0 }
 0x33c   : > { %v1718_v54 = vpop.permute.xlu1 %1717  ;;  %v2185_v55 = vpop.permute.xlu0 %2184 }
 0x33d   : > { %v1729_v56 = vsel %vm1398_vm12, %v1718_v54, 0  ;;  %v5291_v57 = vpop.f32.mrf.mxu3  ;;  %3725 = vmatmul.msk.bf16.gmra.mxu2 %vm1398_vm12, %v1675_v38  ;;  %v1974_v62 = vpop.permute.xlu2 %1973 }
 0x33e   : > { %1737 = vmatpush.bf16.xpose.msra.mxu3 %v1729_v56  ;;  %v1482_v60 = vsel %vm1481_vm13, %v5291_v57, -inf  ;;  %v1985_v4 = vsel %vm1398_vm12, %v1974_v62, 0 }
 0x33f   : > { %1483 = vmax.xlane.f32.xlu2 %v1482_v60 }
 0x344   : > { %v1933_v63 = vpop.permute.xlu1 %1932  ;;  %v5296_v0 = vpop.permute.xlu0 %2225 }
 0x345   : > { %v1943_v2 = vsel %vm1398_vm12, %v1933_v63, 0  ;;  %v5300_v3 = vpop.f32.mrf.mxu3  ;;  %v5350_v34 = vpop.permute.xlu2 %2112 }
 0x346   : > { %1738 = vmatpush.bf16.xpose.msra.mxu3 %v1726_v1  ;;  %1955 = vmatpush.bf16.xpose.msra.mxu2 %v1943_v2  ;;  %v1485_v5 = vsel %vm1481_vm13, %v5300_v3, -inf }
 0x347   : > { %1486 = vmax.xlane.f32.xlu1 %v1485_v5 }
 0x34c   : > { %v1714_v33 = vpop.permute.xlu1 %1713  ;;  %v2230_v7 = vpop.permute.xlu0 %2229 }
 0x34d   : > { %3726 = vmatmul.msk.bf16.vlgmr.msra.gmra.mxu3 %vm1398_vm12, %v1712_v48  ;;  %3732 = vmatmul.msk.bf16.vlgmr.msra.gmra.mxu2 %vm1398_vm12, %v1929_v43  ;;  %v2241_v11 = vsel %vm1398_vm12, %v2230_v7, 0 }
 0x34e   : > { %1993 = vmatpush.bf16.xpose.msrb.mxu3 %v1985_v4  ;;  %v5308_v10 = vpop.f32.mrf.mxu3 }
 0x34f   : > { %v1488_v12 = vsel %vm1481_vm13, %v5308_v10, -inf }
 0x350   : > { %1489 = vmax.xlane.f32.xlu0 %v1488_v12 }
 0x354   : > { %v2191_v45 = vpop.permute.xlu1 %2190  ;;  %v1857_v13 = vpop.permute.xlu0 %1856 }
 0x355   : > { %v2202_v58 = vsel %vm1398_vm12, %v2191_v45, 0 }
 0x356   : > { %1994 = vmatpush.bf16.xpose.msrb.mxu3 %v1982_v9  ;;  %v5314_v14 = vpop.f32.mrf.mxu3  ;;  %2210 = vmatpush.bf16.xpose.msrb.mxu2 %v2202_v58 }
 0x357   : > { %2153 = vrot.lane.b32.xlu2 %v5250_v37, %s4671_s15  ;;  %v1491_v61 = vsel %vm1481_vm13, %v5314_v14, -inf }
 0x35c   : > { %v1968_v15 = vpop.permute.xlu1 %1967  ;;  %v1900_v8 = vpop.permute.xlu0 %1899 }
 0x35d   : > { %3727 = vmatmul.msk.bf16.gmra.mxu3 %vm1398_vm12, %v1714_v33  ;;  %1915 = vmatpush.bf16.msrb.mxu1 %v1900_v8 }
 0x35e   : > { %2249 = vmatpush.bf16.xpose.msra.mxu3 %v2241_v11  ;;  %v5321_v19 = vpop.f32.mrf.mxu3  ;;  %3733 = vmatmul.msk.bf16.gmra.mxu2 %vm1398_vm12, %v1931_v50 }
 0x35f   : > { %2211 = vmatpush.bf16.xpose.msrb.mxu2 %v2199_v17  ;;  %v1494_v32 = vsel %vm1481_vm13, %v5321_v19, -inf }
 0x360   : > { %2155 = vrot.lane.b32.xlu1 %v5244_v35, %s4671_s15 }
 0x364   : > { %v2187_v21 = vpop.permute.xlu1 %2186  ;;  %v1898_v23 = vpop.permute.xlu0 %1897 }
 0x365   : > { %1916 = vmatpush.bf16.msrb.mxu1 %v1898_v23 }
 0x366   : > { %2250 = vmatpush.bf16.xpose.msra.mxu3 %v2238_v18  ;;  %v5326_v24 = vpop.f32.mrf.mxu3 }
 0x367   : > { %v1497_v25 = vsel %vm1481_vm13, %v5326_v24, -inf }
 0x368   : > { %1498 = vmax.xlane.f32.xlu0 %v1497_v25 }
 0x36c   : > { %v2224_v26 = vpop.permute.xlu1 %2223  ;;  %v5363_v43 = vpop.permute.xlu0 %2370 }
 0x36d   : > { %3734 = vmatmul.msk.bf16.vlgmr.msrb.gmra.mxu3 %vm1398_vm12, %v1968_v15 }
 0x36e   : > { %v5331_v27 = vpop.f32.mrf.mxu3  ;;  %3740 = vmatmul.msk.bf16.vlgmr.msrb.gmra.mxu2 %vm1398_vm12, %v2185_v55 }
 0x36f   : > { %v1500_v29 = vsel %vm1481_vm13, %v5331_v27, -inf }
 0x370   : > { %1501 = vmax.xlane.f32.xlu0 %v1500_v29 }
 0x374   : > { %v1859_v16 = vpop.permute.xlu1 %1858 }
 0x375   : > { %1874 = vmatpush.bf16.msra.mxu0 %v1859_v16 }
 0x376   : > { %v5341_v30 = vpop.f32.mrf.mxu3 }
 0x377   : > { %v1503_v31 = vsel %vm1481_vm13, %v5341_v30, -inf }
 0x379   : > { %1875 = vmatpush.bf16.msra.mxu0 %v1857_v13 }
 0x37c   : > { %v5356_v39 = vpop.permute.xlu1 %2114 }
 0x37d   : > { %3735 = vmatmul.msk.bf16.gmra.mxu3 %vm1398_vm12, %v5288_v51 }
 0x37e   : > { %3741 = vmatmul.msk.bf16.gmra.mxu2 %vm1398_vm12, %v2187_v21 }
 0x380   : > { %1492 = vmax.xlane.f32.xlu2 %v1491_v61 }
 0x388   : > { %1504 = vmax.xlane.f32.xlu2 %v1503_v31 }
 0x38a   : > { %1495 = vmax.xlane.f32.xlu1 %v1494_v32 }
 0x38d   : > { %3742 = vmatmul.msk.bf16.vlgmr.msra.gmra.mxu3 %vm1398_vm12, %v2224_v26 }
 0x39d   : > { %3743 = vmatmul.msk.bf16.gmra.mxu3 %vm1398_vm12, %v5296_v0 }
 0x3b0   : > { %v5352_v22 = vpop.f32.mrf.mxu2 }
 0x3b1   : > { %v1750_v36 = vsel %vm1481_vm13, %v5352_v22, -inf }
 0x3b2   : > { %1751 = vmax.xlane.f32.xlu2 %v1750_v36  ;;  %v1484_v20 = vpop.xlane.xlu2 %1483 }
 0x3b3   : > { %v1506_v38 = vsub.f32 %v5291_v57, %v1484_v20 }
 0x3b5   : > { %v1514_v40 = vmul.f32 1.442695, %v1506_v38 }
 0x3b7   : > { %4101 = vpow2.f32 %v1514_v40 }
 0x3b8   : > { %v5359_v41 = vpop.f32.mrf.mxu2 }
 0x3b9   : > { %v1753_v42 = vsel %vm1481_vm13, %v5359_v41, -inf }
 0x3ba   : > { %v1487_v47 = vpop.xlane.xlu1 %1486  ;;  %1754 = vmax.xlane.f32.xlu1 %v1753_v42  ;;  %v5415_v13 = vpop.permute.xlu2 %2153 }
 0x3bb   : > { %v1507_v44 = vsub.f32 %v5300_v3, %v1487_v47 }
 0x3bd   : > { %v5366_v48 = vpop.eup %4101  ;;  %v1516_v46 = vmul.f32 1.442695, %v1507_v44 }
 0x3be   : > { %v1530_v49 = vsel %vm1481_vm13, %v5366_v48, 0.0 }
 0x3bf   : > { %1531 = vadd.xlane.f32.xlu2 %v1530_v49  ;;  %4103 = vpow2.f32 %v1516_v46 }
 0x3c0   : > { %v5370_v59 = vpop.f32.mrf.mxu2 }
 0x3c1   : > { %v1756_v50 = vsel %vm1481_vm13, %v5370_v59, -inf }
 0x3c2   : > { %1757 = vmax.xlane.f32.xlu1 %v1756_v50 }
 0x3c3   : > { %v1490_v51 = vpop.xlane.xlu0 %1489 }
 0x3c4   : > { %v1508_v52 = vsub.f32 %v5308_v10, %v1490_v51 }
 0x3c5   : > { %v5375_v53 = vpop.eup %4103 }
 0x3c6   : > { %v1518_v54 = vmul.f32 1.442695, %v1508_v52  ;;  %v1533_v56 = vsel %vm1481_vm13, %v5375_v53, 0.0 }
 0x3c8   : > { %4105 = vpow2.f32 %v1518_v54  ;;  %v5377_v55 = vpop.f32.mrf.mxu2 }
 0x3c9   : > { %v1759_v57 = vsel %vm1481_vm13, %v5377_v55, -inf }
 0x3ca   : > { %1534 = vadd.xlane.f32.xlu1 %v1533_v56  ;;  %1760 = vmax.xlane.f32.xlu0 %v1759_v57 }
 0x3ce   : > { %v5383_v60 = vpop.eup %4105 }
 0x3cf   : > { %v1536_v62 = vsel %vm1481_vm13, %v5383_v60, 0.0 }
 0x3d0   : > { %1537 = vadd.xlane.f32.xlu2 %v1536_v62  ;;  %v5387_v63 = vpop.f32.mrf.mxu3  ;;  %v5389_v0 = vpop.f32.mrf.mxu2 }
 0x3d1   : > { %v1762_v1 = vsel %vm1481_vm13, %v5387_v63, -inf  ;;  %v2006_v2 = vsel %vm1481_vm13, %v5389_v0, -inf }
 0x3d2   : > { %1763 = vmax.xlane.f32.xlu0 %v1762_v1  ;;  %2007 = vmax.xlane.f32.xlu1 %v2006_v2  ;;  %v5422_v17 = vpop.permute.xlu1 %2155 }
 0x3d8   : > { %v5395_v3 = vpop.f32.mrf.mxu3  ;;  %v5397_v4 = vpop.f32.mrf.mxu2 }
 0x3d9   : > { %v2009_v5 = vsel %vm1481_vm13, %v5397_v4, -inf  ;;  %v1765_v33 = vsel %vm1481_vm13, %v5395_v3, -inf }
 0x3da   : > { %2010 = vmax.xlane.f32.xlu0 %v2009_v5  ;;  %1766 = vmax.xlane.f32.xlu2 %v1765_v33 }
 0x3db   : > { %v1499_v29 = vpop.xlane.xlu0 %1498 }
 0x3dc   : > { %v1511_v31 = vsub.f32 %v5326_v24, %v1499_v29 }
 0x3de   : > { %v1524_v40 = vmul.f32 1.442695, %v1511_v31 }
 0x3e0   : > { %v5403_v7 = vpop.f32.mrf.mxu3 }
 0x3e1   : > { %v5405_v9 = vpop.f32.mrf.mxu2  ;;  %v1768_v10 = vsel %vm1481_vm13, %v5403_v7, -inf }
 0x3e2   : > { %1769 = vmax.xlane.f32.xlu0 %v1768_v10 }
 0x3e3   : > { %v1502_v47 = vpop.xlane.xlu0 %1501 }
 0x3e4   : > { %v1512_v46 = vsub.f32 %v5331_v27, %v1502_v47 }
 0x3e6   : > { %v1526_v54 = vmul.f32 1.442695, %v1512_v46 }
 0x3e8   : > { %v5409_v11 = vpop.f32.mrf.mxu3 }
 0x3e9   : > { %v5411_v12 = vpop.f32.mrf.mxu2  ;;  %v1771_v27 = vsel %vm1481_vm13, %v5409_v11, -inf }
 0x3ea   : > { %v2015_v45 = vsel %vm1481_vm13, %v5411_v12, -inf }
 0x3eb   : > { %2016 = vmax.xlane.f32.xlu0 %v2015_v45 }
 0x3f0   : > { %v5417_v58 = vpop.f32.mrf.mxu3 }
 0x3f1   : > { %v2018_v18 = vsel %vm1481_vm13, %v5417_v58, -inf  ;;  %v5424_v23 = vpop.f32.mrf.mxu2 }
 0x3f2   : > { %v2262_v26 = vsel %vm1481_vm13, %v5424_v23, -inf }
 0x3f3   : > { %2019 = vmax.xlane.f32.xlu0 %v2018_v18  ;;  %v1493_v15 = vpop.xlane.xlu2 %1492 }
 0x3f4   : > { %v1509_v8 = vsub.f32 %v5314_v14, %v1493_v15 }
 0x3f6   : > { %v1520_v21 = vmul.f32 1.442695, %v1509_v8 }
 0x3f8   : > { %4107 = vpow2.f32 %v1520_v21  ;;  %v5426_v25 = vpop.f32.mrf.mxu3 }
 0x3f9   : > { %v2021_v45 = vsel %vm1481_vm13, %v5426_v25, -inf  ;;  %v5474_v18 = vpop.f32.mrf.mxu2 }
 0x3fa   : > { %v2265_v29 = vsel %vm1481_vm13, %v5474_v18, -inf }
 0x3fb   : > { %2263 = vmax.xlane.f32.xlu0 %v2262_v26  ;;  %v1505_v42 = vpop.xlane.xlu2 %1504 }
 0x3fc   : > { %v1513_v24 = vsub.f32 %v5341_v30, %v1505_v42 }
 0x3fd   : > { %v1496_v16 = vpop.xlane.xlu1 %1495 }
 0x3fe   : > { %v5430_v61 = vpop.eup %4107  ;;  %v1510_v14 = vsub.f32 %v5321_v19, %v1496_v16  ;;  %v2012_v19 = vsel %vm1481_vm13, %v5405_v9, -inf  ;;  %v1528_v51 = vmul.f32 1.442695, %v1513_v24 }
 0x3ff   : > { %v1539_v32 = vsel %vm1481_vm13, %v5430_v61, 0.0 }
 0x400   : > { %v1522_v36 = vmul.f32 1.442695, %v1510_v14  ;;  %v5436_v20 = vpop.f32.mrf.mxu3  ;;  %1540 = vadd.xlane.f32.xlu1 %v1539_v32 }
 0x401   : > { %v2024_v38 = vsel %vm1481_vm13, %v5436_v20, -inf  ;;  %v5483_v14 = vpop.f32.mrf.mxu2 }
 0x402   : > { %4109 = vpow2.f32 %v1522_v36 }
 0x403   : > { %2025 = vmax.xlane.f32.xlu0 %v2024_v38  ;;  %4111 = vpow2.f32 %v1524_v40 }
 0x404   : > { %4113 = vpow2.f32 %v1528_v51 }
 0x405   : > { %4115 = vpow2.f32 %v1526_v54 }
 0x408   : > { %v5443_v44 = vpop.eup %4109  ;;  %v5446_v49 = vpop.f32.mrf.mxu3  ;;  %2013 = vmax.xlane.f32.xlu1 %v2012_v19 }
 0x409   : > { %v1542_v50 = vsel %vm1481_vm13, %v5443_v44, 0.0  ;;  %v5450_v52 = vpop.eup %4111  ;;  %v2027_v42 = vsel %vm1481_vm13, %v5446_v49, -inf  ;;  %v5493_v46 = vpop.f32.mrf.mxu2 }
 0x40a   : > { %1543 = vadd.xlane.f32.xlu2 %v1542_v50  ;;  %v1545_v30 = vsel %vm1481_vm13, %v5450_v52, 0.0  ;;  %v5458_v57 = vpop.eup %4113  ;;  %v2271_v51 = vsel %vm1481_vm13, %v5493_v46, -inf }
 0x40b   : > { %v5460_v62 = vpop.eup %4115  ;;  %v1551_v1 = vsel %vm1481_vm13, %v5458_v57, 0.0 }
 0x40c   : > { %v1548_v5 = vsel %vm1481_vm13, %v5460_v62, 0.0 }
 0x410   : > { %v5454_v56 = vpop.f32.mrf.mxu3  ;;  %1546 = vadd.xlane.f32.xlu1 %v1545_v30 }
 0x412   : > { %1772 = vmax.xlane.f32.xlu2 %v1771_v27 }
 0x418   : > { %v5464_v2 = vpop.f32.mrf.mxu3  ;;  %1552 = vadd.xlane.f32.xlu1 %v1551_v1 }
 0x41a   : > { %1549 = vadd.xlane.f32.xlu2 %v1548_v5 }
 0x420   : > { %v5468_v33 = vpop.f32.mrf.mxu3 }
 0x421   : > { %v2280_v10 = vsel %vm1481_vm13, %v5468_v33, -inf }
 0x422   : > { %2281 = vmax.xlane.f32.xlu0 %v2280_v10  ;;  %2022 = vmax.xlane.f32.xlu2 %v2021_v45 }
 0x425   : > { %v1752_v15 = vpop.xlane.xlu2 %1751 }
 0x426   : > { %v1774_v8 = vsub.f32 %v5352_v22, %v1752_v15  ;;  %v2268_v22 = vsel %vm1481_vm13, %v5483_v14, -inf }
 0x428   : > { %v1782_v21 = vmul.f32 1.442695, %v1774_v8  ;;  %v5477_v26 = vpop.f32.mrf.mxu3 }
 0x429   : > { %v2283_v16 = vsel %vm1481_vm13, %v5477_v26, -inf }
 0x42a   : > { %4117 = vpow2.f32 %v1782_v21  ;;  %2266 = vmax.xlane.f32.xlu2 %v2265_v29  ;;  %2284 = vmax.xlane.f32.xlu1 %v2283_v16  ;;  %v2274_v16 = vsel %vm1481_vm13, %v5454_v56, -inf }
 0x42d   : > { %v1755_v31 = vpop.xlane.xlu1 %1754 }
 0x42e   : > { %v1775_v15 = vsub.f32 %v5359_v41, %v1755_v31 }
 0x430   : > { %v5485_v32 = vpop.eup %4117 }
 0x431   : > { %v1798_v36 = vsel %vm1481_vm13, %v5485_v32, 0.0 }
 0x432   : > { %2269 = vmax.xlane.f32.xlu2 %v2268_v22  ;;  %1799 = vadd.xlane.f32.xlu0 %v1798_v36  ;;  %v1532_v38 = vpop.xlane.xlu2 %1531  ;;  %v1784_v36 = vmul.f32 1.442695, %v1775_v15 }
 0x433   : > { %4119 = vrcp.f32 %v1532_v38 }
 0x435   : > { %v1758_v40 = vpop.xlane.xlu1 %1757 }
 0x436   : > { %v1776_v41 = vsub.f32 %v5370_v59, %v1758_v40 }
 0x439   : > { %v4120_v19 = vpop.eup %4119 }
 0x43a   : > { %2028 = vmax.xlane.f32.xlu2 %v2027_v42  ;;  %v1562_v50 = vmul.f32 %v4120_v19, %v5366_v48  ;;  %v1786_v42 = vmul.f32 1.442695, %v1776_v41 }
 0x43c   : > { %v1570_v30 = vpack.c.bf16 %v1562_v50, %v1562_v50 }
 0x43d   : > { %v1535_v47 = vpop.xlane.xlu1 %1534  ;;  %v1761_v24 = vpop.xlane.xlu0 %1760 }
 0x43e   : > { %4121 = vrcp.f32 %v1535_v47  ;;  %v1582_v21 = vunpack.c.l.b16 %v1570_v30  ;;  %v1777_v59 = vsub.f32 %v5377_v55, %v1761_v24 }
 0x440   : > { %v1788_v30 = vmul.f32 1.442695, %v1777_v59 }
 0x442   : > { %2272 = vmax.xlane.f32.xlu2 %v2271_v51 }
 0x443   : > { %v1538_v47 = vpop.xlane.xlu2 %1537 }
 0x444   : > { %v4122_v54 = vpop.eup %4121 }
 0x445   : > { %v1563_v27 = vmul.f32 %v4122_v54, %v5375_v53  ;;  %v1764_v1 = vpop.xlane.xlu0 %1763  ;;  %v2008_v10 = vpop.xlane.xlu1 %2007 }
 0x446   : > { %v1778_v5 = vsub.f32 %v5387_v63, %v1764_v1  ;;  %v2030_v48 = vsub.f32 %v5389_v0, %v2008_v10  ;;  %v2277_v0 = vsel %vm1481_vm13, %v5464_v2, -inf }
 0x447   : > { %v1571_v45 = vpack.c.bf16 %v1563_v27, %v1563_v27 }
 0x448   : > { %v1790_v8 = vmul.f32 1.442695, %v1778_v5  ;;  %v2038_v53 = vmul.f32 1.442695, %v2030_v48 }
 0x449   : > { %v1583_v29 = vunpack.c.l.b16 %v1571_v45 }
 0x44a   : > { %4123 = vpow2.f32 %v1790_v8  ;;  %2275 = vmax.xlane.f32.xlu2 %v2274_v16 }
 0x44b   : > { %v1586_v22 = vpack.c.b16 %v1583_v29, %v1582_v21  ;;  %4125 = vpow2.f32 %v1784_v36 }
 0x44c   : > { %4127 = vpow2.f32 %v2038_v53 }
 0x44d   : > { %v2011_v38 = vpop.xlane.xlu0 %2010  ;;  %3720 = vmatmul.msk.bf16.vlgmr.msrb.gmra.mxu0 %vm1481_vm13, %v1586_v22  ;;  %4129 = vpow2.f32 %v1786_v42  ;;  %v1767_v27 = vpop.xlane.xlu2 %1766 }
 0x44e   : > { %2130 = vmatpush.bf16.msrb.mxu0 %v5356_v39  ;;  %v1779_v55 = vsub.f32 %v5395_v3, %v1767_v27 }
 0x450   : > { %v5506_v63 = vpop.eup %4123  ;;  %v1792_v8 = vmul.f32 1.442695, %v1779_v55 }
 0x451   : > { %v1810_v31 = vsel %vm1481_vm13, %v5506_v63, 0.0  ;;  %v5514_v39 = vpop.eup %4125 }
 0x452   : > { %2131 = vmatpush.bf16.msrb.mxu0 %v5350_v34  ;;  %2278 = vmax.xlane.f32.xlu2 %v2277_v0  ;;  %v5517_v51 = vpop.eup %4127  ;;  %v1801_v54 = vsel %vm1481_vm13, %v5514_v39, 0.0 }
 0x453   : > { %1811 = vadd.xlane.f32.xlu1 %v1810_v31  ;;  %v2054_v34 = vsel %vm1481_vm13, %v5517_v51, 0.0  ;;  %v5524_v1 = vpop.eup %4129 }
 0x454   : > { %v1804_v45 = vsel %vm1481_vm13, %v5524_v1, 0.0 }
 0x455   : > { %v1770_v19 = vpop.xlane.xlu0 %1769 }
 0x456   : > { %v1780_v50 = vsub.f32 %v5403_v7, %v1770_v19 }
 0x458   : > { %v1794_v40 = vmul.f32 1.442695, %v1780_v50 }
 0x45a   : > { %4131 = vpow2.f32 %v1794_v40  ;;  %1802 = vadd.xlane.f32.xlu2 %v1801_v54 }
 0x45b   : > { %2055 = vadd.xlane.f32.xlu1 %v2054_v34  ;;  %4133 = vpow2.f32 %v1788_v30 }
 0x45e   : > { %v2017_v7 = vpop.xlane.xlu0 %2016 }
 0x45f   : > { %v2033_v5 = vsub.f32 %v5411_v12, %v2017_v7  ;;  %v2031_v12 = vsub.f32 %v5397_v4, %v2011_v38 }
 0x460   : > { %v5527_v10 = vpop.eup %4131 }
 0x461   : > { %v2044_v24 = vmul.f32 1.442695, %v2033_v5  ;;  %v1816_v15 = vsel %vm1481_vm13, %v5527_v10, 0.0  ;;  %v5534_v21 = vpop.eup %4133  ;;  %v2040_v16 = vmul.f32 1.442695, %v2031_v12 }
 0x462   : > { %1805 = vadd.xlane.f32.xlu2 %v1804_v45  ;;  %v1807_v3 = vsel %vm1481_vm13, %v5534_v21, 0.0 }
 0x463   : > { %4135 = vpow2.f32 %v2044_v24  ;;  %1817 = vadd.xlane.f32.xlu1 %v1816_v15 }
 0x464   : > { %4137 = vpow2.f32 %v1792_v8 }
 0x465   : > { %4139 = vrcp.f32 %v1538_v47 }
 0x466   : > { %4141 = vpow2.f32 %v2040_v16 }
 0x469   : > { %v5537_v29 = vpop.eup %4135 }
 0x46a   : > { %1808 = vadd.xlane.f32.xlu2 %v1807_v3  ;;  %v2063_v48 = vsel %vm1481_vm13, %v5537_v29, 0.0  ;;  %v5543_v22 = vpop.eup %4137 }
 0x46b   : > { %2064 = vadd.xlane.f32.xlu1 %v2063_v48  ;;  %v1813_v36 = vsel %vm1481_vm13, %v5543_v22, 0.0  ;;  %v4140_v53 = vpop.eup %4139 }
 0x46c   : > { %v5547_v38 = vpop.eup %4141  ;;  %v1564_v41 = vmul.f32 %v4140_v53, %v5383_v60  ;;  %v2020_v60 = vpop.xlane.xlu0 %2019 }
 0x46d   : > { %v2057_v0 = vsel %vm1481_vm13, %v5547_v38, 0.0  ;;  %v2034_v15 = vsub.f32 %v5417_v58, %v2020_v60 }
 0x46e   : > { %v1572_v19 = vpack.c.bf16 %v1564_v41, %v1564_v41 }
 0x470   : > { %v1584_v34 = vunpack.c.l.b16 %v1572_v19 }
 0x472   : > { %1814 = vadd.xlane.f32.xlu2 %v1813_v36  ;;  %v2046_v36 = vmul.f32 1.442695, %v2034_v15 }
 0x473   : > { %v1541_v4 = vpop.xlane.xlu1 %1540 }
 0x474   : > { %4143 = vrcp.f32 %v1541_v4  ;;  %v2264_v4 = vpop.xlane.xlu0 %2263 }
 0x475   : > { %v2286_v58 = vsub.f32 %v5424_v23, %v2264_v4 }
 0x477   : > { %v2294_v19 = vmul.f32 1.442695, %v2286_v58 }
 0x47a   : > { %v4144_v31 = vpop.eup %4143  ;;  %2058 = vadd.xlane.f32.xlu2 %v2057_v0 }
 0x47b   : > { %v2014_v42 = vpop.xlane.xlu1 %2013  ;;  %v1565_v47 = vmul.f32 %v4144_v31, %v5430_v61 }
 0x47c   : > { %v2032_v50 = vsub.f32 %v5405_v9, %v2014_v42 }
 0x47d   : > { %v1544_v59 = vpop.xlane.xlu2 %1543  ;;  %v1573_v40 = vpack.c.bf16 %v1565_v47, %v1565_v47 }
 0x47e   : > { %v2042_v54 = vmul.f32 1.442695, %v2032_v50  ;;  %4145 = vrcp.f32 %v1544_v59 }
 0x47f   : > { %v1585_v30 = vunpack.c.l.b16 %v1573_v40 }
 0x480   : > { %4147 = vpow2.f32 %v2042_v54  ;;  %v2026_v54 = vpop.xlane.xlu0 %2025 }
 0x481   : > { %v1587_v27 = vpack.c.b16 %v1585_v30, %v1584_v34 }
 0x483   : > { %v1547_v7 = vpop.xlane.xlu1 %1546  ;;  %3721 = vmatmul.msk.bf16.gmra.mxu0 %vm1481_vm13, %v1587_v27  ;;  %v2036_v27 = vsub.f32 %v5436_v20, %v2026_v54 }
 0x484   : > { %v4146_v5 = vpop.eup %4145  ;;  %4149 = vrcp.f32 %v1547_v7 }
 0x485   : > { %v1773_v55 = vpop.xlane.xlu2 %1772  ;;  %v1566_v9 = vmul.f32 %v4146_v5, %v5443_v44  ;;  %v2050_v7 = vmul.f32 1.442695, %v2036_v27 }
 0x486   : > { %v5555_v24 = vpop.eup %4147  ;;  %v1781_v61 = vsub.f32 %v5409_v11, %v1773_v55 }
 0x487   : > { %v2060_v45 = vsel %vm1481_vm13, %v5555_v24, 0.0  ;;  %v1574_v3 = vpack.c.bf16 %v1566_v9, %v1566_v9 }
 0x488   : > { %v1796_v8 = vmul.f32 1.442695, %v1781_v61  ;;  %2061 = vadd.xlane.f32.xlu2 %v2060_v45 }
 0x489   : > { %v1629_v44 = vunpack.c.l.b16 %v1574_v3 }
 0x48a   : > { %v4150_v12 = vpop.eup %4149  ;;  %4151 = vpow2.f32 %v1796_v8 }
 0x48b   : > { %v1567_v48 = vmul.f32 %v4150_v12, %v5450_v52  ;;  %v1553_v16 = vpop.xlane.xlu1 %1552 }
 0x48c   : > { %4153 = vrcp.f32 %v1553_v16 }
 0x48d   : > { %v1575_v53 = vpack.c.bf16 %v1567_v48, %v1567_v48  ;;  %v1550_v11 = vpop.xlane.xlu2 %1549 }
 0x48e   : > { %4155 = vrcp.f32 %v1550_v11 }
 0x48f   : > { %v1630_v41 = vunpack.c.l.b16 %v1575_v53  ;;  %4157 = vpow2.f32 %v2046_v36 }
 0x490   : > { %v5563_v0 = vpop.eup %4151  ;;  %4159 = vpow2.f32 %v2294_v19 }
 0x491   : > { %v1633_v31 = vpack.c.b16 %v1630_v41, %v1629_v44  ;;  %v1819_v42 = vsel %vm1481_vm13, %v5563_v0, 0.0 }
 0x492   : > { %1820 = vadd.xlane.f32.xlu0 %v1819_v42  ;;  %v4154_v52 = vpop.eup %4153 }
 0x493   : > { %3722 = vmatmul.msk.bf16.vlgmr.msra.gmra.mxu1 %vm1481_vm13, %v1633_v31  ;;  %v1569_v34 = vmul.f32 %v4154_v52, %v5458_v57 }
 0x494   : > { %v4156_v47 = vpop.eup %4155  ;;  %2171 = vmatpush.bf16.msra.mxu1 %v5422_v17 }
 0x495   : > { %v2023_v50 = vpop.xlane.xlu2 %2022  ;;  %v1568_v59 = vmul.f32 %v4156_v47, %v5460_v62  ;;  %v5571_v40 = vpop.eup %4157  ;;  %v1577_v62 = vpack.c.bf16 %v1569_v34, %v1569_v34 }
 0x496   : > { %v2035_v23 = vsub.f32 %v5426_v25, %v2023_v50  ;;  %v2066_v60 = vsel %vm1481_vm13, %v5571_v40, 0.0  ;;  %v5579_v61 = vpop.eup %4159  ;;  %v2282_v31 = vpop.xlane.xlu0 %2281 }
 0x497   : > { %v1576_v17 = vpack.c.bf16 %v1568_v59, %v1568_v59  ;;  %v1632_v57 = vunpack.c.l.b16 %v1577_v62 }
 0x498   : > { %v2048_v30 = vmul.f32 1.442695, %v2035_v23  ;;  %2172 = vmatpush.bf16.msra.mxu1 %v5415_v13  ;;  %v2310_v13 = vsel %vm1481_vm13, %v5579_v61, 0.0 }
 0x499   : > { %v1631_v55 = vunpack.c.l.b16 %v1576_v17 }
 0x49a   : > { %2067 = vadd.xlane.f32.xlu0 %v2066_v60  ;;  %4161 = vpow2.f32 %v2048_v30 }
 0x49b   : > { %4163 = vpow2.f32 %v2050_v7  ;;  %v1634_v20 = vpack.c.b16 %v1632_v57, %v1631_v55 }
 0x49d   : > { %v2267_v5 = vpop.xlane.xlu2 %2266  ;;  %v2285_v34 = vpop.xlane.xlu1 %2284 }
 0x49e   : > { %v2287_v25 = vsub.f32 %v5474_v18, %v2267_v5 }
 0x4a0   : > { %v2296_v9 = vmul.f32 1.442695, %v2287_v25  ;;  %v5582_v45 = vpop.eup %4161 }
 0x4a1   : > { %v2069_v15 = vsel %vm1481_vm13, %v5582_v45, 0.0  ;;  %v5589_v12 = vpop.eup %4163 }
 0x4a2   : > { %2311 = vadd.xlane.f32.xlu0 %v2310_v13  ;;  %4165 = vpow2.f32 %v2296_v9  ;;  %2070 = vadd.xlane.f32.xlu1 %v2069_v15  ;;  %v2072_v3 = vsel %vm1481_vm13, %v5589_v12, 0.0 }
 0x4a3   : > { %3723 = vmatmul.msk.bf16.gmra.mxu1 %vm1481_vm13, %v1634_v20  ;;  %v2292_v20 = vsub.f32 %v5468_v33, %v2282_v31 }
 0x4a5   : > { %v2270_v8 = vpop.xlane.xlu2 %2269 }
 0x4a8   : > { %v5591_v18 = vpop.eup %4165 }
 0x4a9   : > { %v2313_v48 = vsel %vm1481_vm13, %v5591_v18, 0.0 }
 0x4aa   : > { %2073 = vadd.xlane.f32.xlu1 %v2072_v3  ;;  %2314 = vadd.xlane.f32.xlu2 %v2313_v48 }
 0x4ad   : > { %v2029_v16 = vpop.xlane.xlu2 %2028 }
 0x4ae   : > { %v2037_v36 = vsub.f32 %v5446_v49, %v2029_v16  ;;  %v2293_v16 = vsub.f32 %v5477_v26, %v2285_v34 }
 0x4b0   : > { %v2052_v4 = vmul.f32 1.442695, %v2037_v36 }
 0x4b2   : > { %4167 = vpow2.f32 %v2052_v4 }
 0x4b5   : > { %v2273_v53 = vpop.xlane.xlu2 %2272 }
 0x4b6   : > { %v2289_v11 = vsub.f32 %v5493_v46, %v2273_v53  ;;  %2368 = vrot.lane.b32.xlu0 %v5221_v6, %s4672_s30  ;;  %v1800_v6 = vpop.xlane.xlu0 %1799 }
 0x4b8   : > { %v5601_v44 = vpop.eup %4167  ;;  %v2300_v41 = vmul.f32 1.442695, %v2289_v11 }
 0x4b9   : > { %v2075_v58 = vsel %vm1481_vm13, %v5601_v44, 0.0 }
 0x4ba   : > { %4169 = vpow2.f32 %v2300_v41  ;;  %2076 = vadd.xlane.f32.xlu2 %v2075_v58 }
 0x4bd   : > { %v2276_v42 = vpop.xlane.xlu2 %2275 }
 0x4be   : > { %v2290_v49 = vsub.f32 %v5454_v56, %v2276_v42  ;;  %v2288_v56 = vsub.f32 %v5483_v14, %v2270_v8  ;;  %v2306_v8 = vmul.f32 1.442695, %v2292_v20 }
 0x4c0   : > { %v5606_v52 = vpop.eup %4169  ;;  %v2302_v47 = vmul.f32 1.442695, %v2290_v49  ;;  %v2298_v27 = vmul.f32 1.442695, %v2288_v56 }
 0x4c1   : > { %v2319_v46 = vsel %vm1481_vm13, %v5606_v52, 0.0 }
 0x4c2   : > { %4171 = vpow2.f32 %v2302_v47  ;;  %2320 = vadd.xlane.f32.xlu2 %v2319_v46 }
 0x4c3   : > { %4173 = vrcp.f32 %v1800_v6 }
 0x4c5   : > { %v2279_v19 = vpop.xlane.xlu2 %2278 }
 0x4c6   : > { %v2291_v62 = vsub.f32 %v5464_v2, %v2279_v19  ;;  %v1812_v55 = vpop.xlane.xlu1 %1811 }
 0x4c8   : > { %v5610_v50 = vpop.eup %4171  ;;  %v2304_v9 = vmul.f32 1.442695, %v2291_v62 }
 0x4c9   : > { %v2322_v59 = vsel %vm1481_vm13, %v5610_v50, 0.0  ;;  %v4174_v23 = vpop.eup %4173 }
 0x4ca   : > { %2323 = vadd.xlane.f32.xlu1 %v2322_v59  ;;  %v1830_v30 = vmul.f32 %v4174_v23, %v5485_v32 }
 0x4cc   : > { %v1838_v17 = vpack.c.bf16 %v1830_v30, %v1830_v30 }
 0x4cd   : > { %v1803_v54 = vpop.xlane.xlu2 %1802 }
 0x4ce   : > { %4175 = vrcp.f32 %v1803_v54  ;;  %v1850_v57 = vunpack.c.l.b16 %v1838_v17 }
 0x4cf   : > { %4177 = vpow2.f32 %v2298_v27 }
 0x4d4   : > { %v4176_v60 = vpop.eup %4175 }
 0x4d5   : > { %v1831_v7 = vmul.f32 %v4176_v60, %v5514_v39  ;;  %v1806_v5 = vpop.xlane.xlu2 %1805  ;;  %v5620_v32 = vpop.eup %4177 }
 0x4d6   : > { %4179 = vrcp.f32 %v1806_v5  ;;  %v2316_v15 = vsel %vm1481_vm13, %v5620_v32, 0.0 }
 0x4d7   : > { %v1839_v25 = vpack.c.bf16 %v1831_v7, %v1831_v7  ;;  %4181 = vpow2.f32 %v2304_v9 }
 0x4d9   : > { %v1851_v13 = vunpack.c.l.b16 %v1839_v25 }
 0x4da   : > { %2411 = vrot.lane.b32.xlu2 %v5244_v35, %s4672_s30  ;;  %v2056_v35 = vpop.xlane.xlu1 %2055 }
 0x4db   : > { %v1854_v14 = vpack.c.b16 %v1851_v13, %v1850_v57 }
 0x4dc   : > { %v4180_v39 = vpop.eup %4179 }
 0x4dd   : > { %3728 = vmatmul.msk.bf16.vlgmr.msra.gmra.mxu0 %vm1481_vm13, %v1854_v14  ;;  %v1809_v2 = vpop.xlane.xlu2 %1808  ;;  %v1832_v3 = vmul.f32 %v4180_v39, %v5524_v1  ;;  %v5628_v48 = vpop.eup %4181  ;;  %v2308_v1 = vmul.f32 1.442695, %v2293_v16 }
 0x4de   : > { %2386 = vmatpush.bf16.msra.mxu0 %v5363_v43  ;;  %4183 = vrcp.f32 %v1809_v2  ;;  %v2325_v11 = vsel %vm1481_vm13, %v5628_v48, 0.0 }
 0x4df   : > { %4185 = vrcp.f32 %v1812_v55  ;;  %v1840_v4 = vpack.c.bf16 %v1832_v3, %v1832_v3 }
 0x4e0   : > { %2317 = vadd.xlane.f32.xlu0 %v2316_v15  ;;  %4187 = vpow2.f32 %v2306_v8 }
 0x4e2   : > { %v1818_v26 = vpop.xlane.xlu1 %1817 }
 0x4e3   : > { %2409 = vrot.lane.b32.xlu1 %v5250_v37, %s4672_s30  ;;  %v1852_v37 = vunpack.c.l.b16 %v1840_v4 }
 0x4e4   : > { %v4184_v33 = vpop.eup %4183 }
 0x4e5   : > { %v1815_v43 = vpop.xlane.xlu2 %1814  ;;  %v1833_v36 = vmul.f32 %v4184_v33, %v5534_v21  ;;  %v4186_v53 = vpop.eup %4185 }
 0x4e6   : > { %4189 = vrcp.f32 %v1815_v43  ;;  %v1834_v58 = vmul.f32 %v4186_v53, %v5506_v63  ;;  %v5637_v42 = vpop.eup %4187 }
 0x4e7   : > { %v1841_v41 = vpack.c.bf16 %v1833_v36, %v1833_v36  ;;  %4191 = vrcp.f32 %v2056_v35  ;;  %v2328_v63 = vsel %vm1481_vm13, %v5637_v42, 0.0 }
 0x4e8   : > { %2326 = vadd.xlane.f32.xlu0 %v2325_v11  ;;  %4193 = vpow2.f32 %v2308_v1  ;;  %v1842_v21 = vpack.c.bf16 %v1834_v58, %v1834_v58 }
 0x4e9   : > { %v1853_v31 = vunpack.c.l.b16 %v1841_v41 }
 0x4ea   : > { %v1891_v54 = vunpack.c.l.b16 %v1842_v21 }
 0x4eb   : > { %v1855_v49 = vpack.c.b16 %v1853_v31, %v1852_v37 }
 0x4ec   : > { %v4190_v47 = vpop.eup %4189 }
 0x4ed   : > { %v1835_v46 = vmul.f32 %v4190_v47, %v5543_v22  ;;  %3729 = vmatmul.msk.bf16.gmra.mxu0 %vm1481_vm13, %v1855_v49  ;;  %v2059_v6 = vpop.xlane.xlu2 %2058  ;;  %v4192_v19 = vpop.eup %4191 }
 0x4ee   : > { %4195 = vrcp.f32 %v2059_v6  ;;  %v2086_v23 = vmul.f32 %v4192_v19, %v5517_v51  ;;  %v5644_v34 = vpop.eup %4193  ;;  %v2065_v22 = vpop.xlane.xlu1 %2064 }
 0x4ef   : > { %v1843_v59 = vpack.c.bf16 %v1835_v46, %v1835_v46  ;;  %v2331_v7 = vsel %vm1481_vm13, %v5644_v34, 0.0  ;;  %4197 = vrcp.f32 %v2065_v22 }
 0x4f0   : > { %2329 = vadd.xlane.f32.xlu0 %v2328_v63  ;;  %v2094_v60 = vpack.c.bf16 %v2086_v23, %v2086_v23 }
 0x4f1   : > { %v1892_v56 = vunpack.c.l.b16 %v1843_v59 }
 0x4f2   : > { %v2106_v5 = vunpack.c.l.b16 %v2094_v60 }
 0x4f3   : > { %v1895_v30 = vpack.c.b16 %v1892_v56, %v1891_v54 }
 0x4f4   : > { %v4196_v27 = vpop.eup %4195 }
 0x4f5   : > { %v2087_v17 = vmul.f32 %v4196_v27, %v5547_v38  ;;  %3730 = vmatmul.msk.bf16.vlgmr.msrb.gmra.mxu1 %vm1481_vm13, %v1895_v30  ;;  %v4198_v57 = vpop.eup %4197 }
 0x4f6   : > { %v2089_v9 = vmul.f32 %v4198_v57, %v5537_v29 }
 0x4f7   : > { %v2095_v62 = vpack.c.bf16 %v2087_v17, %v2087_v17 }
 0x4f8   : > { %2332 = vadd.xlane.f32.xlu0 %v2331_v7  ;;  %v2097_v2 = vpack.c.bf16 %v2089_v9, %v2089_v9 }
 0x4f9   : > { %v2107_v55 = vunpack.c.l.b16 %v2095_v62 }
 0x4fa   : > { %v2109_v8 = vunpack.c.l.b16 %v2097_v2 }
 0x4fb   : > { %v2110_v51 = vpack.c.b16 %v2107_v55, %v2106_v5  ;;  %v2062_v25 = vpop.xlane.xlu2 %2061 }
 0x4fc   : > { %4199 = vrcp.f32 %v2062_v25 }
 0x4fd   : > { %3736 = vmatmul.msk.bf16.vlgmr.msrb.gmra.mxu0 %vm1481_vm13, %v2110_v51  ;;  %4201 = vrcp.f32 %v1818_v26 }
 0x502   : > { %v4200_v38 = vpop.eup %4199 }
 0x503   : > { %v2088_v13 = vmul.f32 %v4200_v38, %v5555_v24  ;;  %v4202_v39 = vpop.eup %4201 }
 0x504   : > { %v1836_v35 = vmul.f32 %v4202_v39, %v5527_v10 }
 0x505   : > { %v1821_v14 = vpop.xlane.xlu0 %1820  ;;  %v2096_v20 = vpack.c.bf16 %v2088_v13, %v2088_v13 }
 0x506   : > { %4203 = vrcp.f32 %v1821_v14  ;;  %v1844_v29 = vpack.c.bf16 %v1836_v35, %v1836_v35 }
 0x507   : > { %v2108_v15 = vunpack.c.l.b16 %v2096_v20 }
 0x508   : > { %v1893_v24 = vunpack.c.l.b16 %v1844_v29 }
 0x509   : > { %v2111_v3 = vpack.c.b16 %v2109_v8, %v2108_v15 }
 0x50c   : > { %v4204_v33 = vpop.eup %4203 }
 0x50d   : > { %v2068_v16 = vpop.xlane.xlu0 %2067  ;;  %3737 = vmatmul.msk.bf16.gmra.mxu0 %vm1481_vm13, %v2111_v3  ;;  %v1837_v43 = vmul.f32 %v4204_v33, %v5563_v0 }
 0x50e   : > { %4205 = vrcp.f32 %v2068_v16 }
 0x50f   : > { %v1845_v36 = vpack.c.bf16 %v1837_v43, %v1837_v43 }
 0x511   : > { %v1894_v4 = vunpack.c.l.b16 %v1845_v36 }
 0x513   : > { %v1896_v53 = vpack.c.b16 %v1894_v4, %v1893_v24 }
 0x514   : > { %v4206_v41 = vpop.eup %4205 }
 0x515   : > { %3731 = vmatmul.msk.bf16.gmra.mxu1 %vm1481_vm13, %v1896_v53  ;;  %v2071_v11 = vpop.xlane.xlu1 %2070  ;;  %v2312_v1 = vpop.xlane.xlu0 %2311  ;;  %v2090_v10 = vmul.f32 %v4206_v41, %v5571_v40 }
 0x516   : > { %4207 = vrcp.f32 %v2071_v11 }
 0x517   : > { %4209 = vrcp.f32 %v2312_v1  ;;  %v2098_v37 = vpack.c.bf16 %v2090_v10, %v2090_v10 }
 0x519   : > { %v2147_v47 = vunpack.c.l.b16 %v2098_v37 }
 0x51c   : > { %v4208_v58 = vpop.eup %4207 }
 0x51d   : > { %v2091_v31 = vmul.f32 %v4208_v58, %v5582_v45  ;;  %v2315_v0 = vpop.xlane.xlu2 %2314  ;;  %v4210_v26 = vpop.eup %4209 }
 0x51e   : > { %4211 = vrcp.f32 %v2315_v0  ;;  %v2342_v46 = vmul.f32 %v4210_v26, %v5579_v61  ;;  %v2074_v19 = vpop.xlane.xlu1 %2073 }
 0x51f   : > { %v2099_v49 = vpack.c.bf16 %v2091_v31, %v2091_v31  ;;  %4213 = vrcp.f32 %v2074_v19 }
 0x520   : > { %v2350_v63 = vpack.c.bf16 %v2342_v46, %v2342_v46 }
 0x521   : > { %v2148_v21 = vunpack.c.l.b16 %v2099_v49 }
 0x522   : > { %v2362_v45 = vunpack.c.l.b16 %v2350_v63 }
 0x523   : > { %v2151_v6 = vpack.c.b16 %v2148_v21, %v2147_v47 }
 0x524   : > { %v4212_v59 = vpop.eup %4211 }
 0x525   : > { %3738 = vmatmul.msk.bf16.vlgmr.msra.gmra.mxu1 %vm1481_vm13, %v2151_v6  ;;  %v2343_v40 = vmul.f32 %v4212_v59, %v5591_v18  ;;  %v4214_v60 = vpop.eup %4213  ;;  %v5665_v18 = vpop.f32.mrf.mxu0 }
 0x526   : > { %v2092_v61 = vmul.f32 %v4214_v60, %v5589_v12  ;;  %v5672_v12 = vpop.f32.mrf.mxu1 }
 0x527   : > { %v2351_v23 = vpack.c.bf16 %v2343_v40, %v2343_v40 }
 0x528   : > { %v2369_v54 = vpop.permute.xlu0 %2368  ;;  %v2100_v7 = vpack.c.bf16 %v2092_v61, %v2092_v61 }
 0x529   : > { %2387 = vmatpush.bf16.msra.mxu0 %v2369_v54  ;;  %v2363_v56 = vunpack.c.l.b16 %v2351_v23 }
 0x52a   : > { %v2149_v55 = vunpack.c.l.b16 %v2100_v7 }
 0x52b   : > { %v2366_v30 = vpack.c.b16 %v2363_v56, %v2362_v45 }
 0x52d   : > { %v2077_v27 = vpop.xlane.xlu2 %2076  ;;  %3744 = vmatmul.msk.bf16.vlgmr.msra.gmra.mxu0 %vm1481_vm13, %v2366_v30  ;;  %v5668_v9 = vpop.f32.mrf.mxu0 }
 0x52e   : > { %4215 = vrcp.f32 %v2077_v27  ;;  %v5676_v39 = vpop.f32.mrf.mxu1 }
 0x534   : > { %v4216_v22 = vpop.eup %4215 }
 0x535   : > { %v2321_v17 = vpop.xlane.xlu2 %2320  ;;  %v2093_v62 = vmul.f32 %v4216_v22, %v5601_v44  ;;  %v5670_v38 = vpop.f32.mrf.mxu0 }
 0x536   : > { %4217 = vrcp.f32 %v2321_v17  ;;  %v5681_v53 = vpop.f32.mrf.mxu1 }
 0x537   : > { %v2101_v5 = vpack.c.bf16 %v2093_v62, %v2093_v62 }
 0x539   : > { %v2150_v51 = vunpack.c.l.b16 %v2101_v5 }
 0x53b   : > { %v2152_v25 = vpack.c.b16 %v2150_v51, %v2149_v55 }
 0x53c   : > { %v4218_v20 = vpop.eup %4217 }
 0x53d   : > { %3739 = vmatmul.msk.bf16.gmra.mxu1 %vm1481_vm13, %v2152_v25  ;;  %v2412_v57 = vpop.permute.xlu2 %2411  ;;  %v2324_v13 = vpop.xlane.xlu1 %2323  ;;  %v2345_v15 = vmul.f32 %v4218_v20, %v5606_v52 }
 0x53e   : > { %2427 = vmatpush.bf16.msrb.mxu1 %v2412_v57  ;;  %v5674_v44 = vpop.f32.mrf.mxu0  ;;  %v5686_v26 = vpop.f32.mrf.mxu1 }
 0x53f   : > { %v2353_v16 = vpack.c.bf16 %v2345_v15, %v2345_v15 }
 0x541   : > { %v2365_v4 = vunpack.c.l.b16 %v2353_v16 }
 0x553   : > { %v2318_v14 = vpop.xlane.xlu0 %2317 }
 0x554   : > { %4219 = vrcp.f32 %v2318_v14 }
 0x555   : > { %v2410_v2 = vpop.permute.xlu1 %2409  ;;  %4221 = vrcp.f32 %v2324_v13 }
 0x556   : > { %2428 = vmatpush.bf16.msrb.mxu1 %v2410_v2 }
 0x55a   : > { %v4220_v8 = vpop.eup %4219  ;;  %v1877_v35 = vpop.f32.mrf.mxu0 }
 0x55b   : > { %v2327_v3 = vpop.xlane.xlu0 %2326  ;;  %v2344_v33 = vmul.f32 %v4220_v8, %v5620_v32  ;;  %v4222_v43 = vpop.eup %4221 }
 0x55c   : > { %4223 = vrcp.f32 %v2327_v3  ;;  %v2346_v36 = vmul.f32 %v4222_v43, %v5610_v50 }
 0x55d   : > { %v2352_v29 = vpack.c.bf16 %v2344_v33, %v2344_v33 }
 0x55e   : > { %v2354_v10 = vpack.c.bf16 %v2346_v36, %v2346_v36  ;;  %v3848_v36 = vld [vmem:[%s4969_s3 + $0x10] sm:$0xff] }
 0x55f   : > { %v2364_v24 = vunpack.c.l.b16 %v2352_v29  ;;  %v3849_v29 = vld [vmem:[%s4969_s3 + $0x18] sm:$0xff] }
 0x560   : > { %v2403_v50 = vunpack.c.l.b16 %v2354_v10  ;;  %2617 = vmatpush.bf16.msra.mxu2 %v3849_v29 }
 0x561   : > { %v2367_v11 = vpack.c.b16 %v2365_v4, %v2364_v24  ;;  %v3847_v4 = vld [vmem:[%s4969_s3 + $0x8] sm:$0xff] }
 0x562   : > { %v4224_v41 = vpop.eup %4223  ;;  %v1879_v1 = vpop.f32.mrf.mxu0 }
 0x563   : > { %v2347_v52 = vmul.f32 %v4224_v41, %v5628_v48  ;;  %v4016_v58 = vpack.i.bf16 %v1879_v1, %v1877_v35  ;;  %v2330_v37 = vpop.xlane.xlu0 %2329  ;;  %3745 = vmatmul.msk.bf16.gmra.mxu0 %vm1481_vm13, %v2367_v11  ;;  %v3846_v1 = vld [vmem:[%s4969_s3] sm:$0xff] }
 0x564   : > { %4225 = vrcp.f32 %v2330_v37  ;;  %2618 = vmatpush.bf16.msra.mxu2 %v3848_v36 }
 0x565   : > { %v2355_v32 = vpack.c.bf16 %v2347_v52, %v2347_v52  ;;  %4017 = vrot.lane.b32.xlu0 %v4016_v58, %s4673_s23 }
 0x567   : > { %v2404_v31 = vunpack.c.l.b16 %v2355_v32 }
 0x568   : > { %2619 = vmatpush.bf16.msra.mxu2 %v3847_v4 }
 0x569   : > { %v2407_v0 = vpack.c.b16 %v2404_v31, %v2403_v50 }
 0x56a   : > { %v1882_v49 = vpop.f32.mrf.mxu0  ;;  %v4226_v21 = vpop.eup %4225 }
 0x56b   : > { %v2333_v47 = vpop.xlane.xlu0 %2332  ;;  %3746 = vmatmul.msk.bf16.vlgmr.msrb.gmra.mxu1 %vm1481_vm13, %v2407_v0  ;;  %v2348_v48 = vmul.f32 %v4226_v21, %v5637_v42 }
 0x56c   : > { %4227 = vrcp.f32 %v2333_v47  ;;  %2620 = vmatpush.bf16.msra.mxu2 %v3846_v1 }
 0x56d   : > { %v2356_v59 = vpack.c.bf16 %v2348_v48, %v2348_v48 }
 0x56f   : > { %v2405_v54 = vunpack.c.l.b16 %v2356_v59 }
 0x572   : > { %v4228_v46 = vpop.eup %4227  ;;  %v1884_v6 = vpop.f32.mrf.mxu0 }
 0x573   : > { %v1918_v19 = vpop.f32.mrf.mxu1  ;;  %v2349_v63 = vmul.f32 %v4228_v46, %v5644_v34  ;;  %v4031_v42 = vpack.i.bf16 %v1884_v6, %v1882_v49 }
 0x575   : > { %v2357_v40 = vpack.c.bf16 %v2349_v63, %v2349_v63 }
 0x577   : > { %v2406_v23 = vunpack.c.l.b16 %v2357_v40 }
 0x579   : > { %v2408_v45 = vpack.c.b16 %v2406_v23, %v2405_v54 }
 0x57a   : > { %v2133_v30 = vpop.f32.mrf.mxu0 }
 0x57b   : > { %v1920_v56 = vpop.f32.mrf.mxu1  ;;  %3747 = vmatmul.msk.bf16.gmra.mxu1 %vm1481_vm13, %v2408_v45 }
 0x57c   : > { %v4046_v27 = vpack.i.bf16 %v1920_v56, %v1918_v19 }
 0x57e   : > { %4047 = vrot.lane.b32.xlu0 %v4046_v27, %s4673_s23 }
 0x582   : > { %v2135_v60 = vpop.f32.mrf.mxu0 }
 0x583   : > { %v4021_v61 = vpack.i.bf16 %v2135_v60, %v2133_v30 }
 0x585   : > { %4022 = vrot.lane.b32.xlu2 %v4021_v61, %s4674_s17 }
 0x58a   : > { %v2138_v34 = vpop.f32.mrf.mxu0 }
 0x58d   : > { %4032 = vrot.lane.b32.xlu2 %v4031_v42, %s4673_s23 }
 0x592   : > { %v1923_v22 = vpop.f32.mrf.mxu1  ;;  %v2140_v7 = vpop.f32.mrf.mxu0 }
 0x593   : > { %v4036_v13 = vpack.i.bf16 %v2140_v7, %v2138_v34 }
 0x59a   : > { %v1925_v17 = vpop.f32.mrf.mxu1 }
 0x59b   : > { %v4061_v62 = vpack.i.bf16 %v1925_v17, %v1923_v22 }
 0x59d   : > { %4062 = vrot.lane.b32.xlu0 %v4061_v62, %s4673_s23 }
 0x5a2   : > { %v2174_v55 = vpop.f32.mrf.mxu1 }
 0x5aa   : > { %v2389_v5 = vpop.f32.mrf.mxu0  ;;  %v2176_v57 = vpop.f32.mrf.mxu1 }
 0x5ab   : > { %v4051_v20 = vpack.i.bf16 %v2176_v57, %v2174_v55 }
 0x5b2   : > { %v2391_v51 = vpop.f32.mrf.mxu0 }
 0x5b3   : > { %v4026_v25 = vpack.i.bf16 %v2391_v51, %v2389_v5 }
 0x5b5   : > { %4027 = vrot.lane.b32.xlu1 %v4026_v25, %s4675_s18 }
 0x5ba   : > { %v2179_v14 = vpop.f32.mrf.mxu1 }
 0x5bd   : > { %4037 = vrot.lane.b32.xlu1 %v4036_v13, %s4674_s17 }
 0x5c2   : > { %v2181_v2 = vpop.f32.mrf.mxu1 }
 0x5c3   : > { %v4066_v15 = vpack.i.bf16 %v2181_v2, %v2179_v14 }
 0x5c5   : > { %4052 = vrot.lane.b32.xlu1 %v4051_v20, %s4674_s17 }
 0x5cd   : > { %4067 = vrot.lane.b32.xlu1 %v4066_v15, %s4674_s17 }
 0x5d7   : > { %v4018_v10 = vpop.permute.xlu0 %4017 }
 0x5d8   : > { %v4020_v58 = vunpack.i.h.bf16 %v4018_v10  ;;  %v4019_v37 = vunpack.i.l.bf16 %v4018_v10 }
 0x5da   : > { %v2537_v0 = vsel %vm1398_vm12, %v5668_v9, %v4020_v58  ;;  %v2536_v49 = vsel %vm1398_vm12, %v5665_v18, %v4019_v37  ;;  %v4078_v37 = vld [vmem:[%s910_s5] ss:$0 sm:$0xff] }
 0x5df   : > { %v4023_v52 = vpop.permute.xlu2 %4022 }
 0x5e0   : > { %v2394_v8 = vpop.f32.mrf.mxu0  ;;  %v4025_v32 = vunpack.i.h.bf16 %v4023_v52  ;;  %v4024_v50 = vunpack.i.l.bf16 %v4023_v52 }
 0x5e2   : > { %v2545_v48 = vsel %vm1481_vm13, %v2537_v0, %v4025_v32  ;;  %v2544_v46 = vsel %vm1481_vm13, %v2536_v49, %v4024_v50  ;;  %v4261_v50 = vld [vmem:[#allocation2] sm:$0xff] }
 0x5e7   : > { %v4033_v63 = vpop.permute.xlu2 %4032 }
 0x5e8   : > { %v2396_v35 = vpop.f32.mrf.mxu0  ;;  %v2430_v3 = vpop.f32.mrf.mxu1  ;;  %v4035_v54 = vunpack.i.h.bf16 %v4033_v63  ;;  %v4034_v9 = vunpack.i.l.bf16 %v4033_v63 }
 0x5e9   : > { %v4041_v33 = vpack.i.bf16 %v2396_v35, %v2394_v8 }
 0x5ea   : > { %v2539_v56 = vsel %vm1398_vm12, %v5674_v44, %v4035_v54  ;;  %v2538_v30 = vsel %vm1398_vm12, %v5670_v38, %v4034_v9  ;;  %v4264_v9 = vld [vmem:[#allocation2 + $0x18] sm:$0xff] }
 0x5eb   : > { %4042 = vrot.lane.b32.xlu2 %v4041_v33, %s4675_s18 }
 0x5f0   : > { %v2432_v16 = vpop.f32.mrf.mxu1  ;;  %v4048_v62 = vpop.permute.xlu0 %4047 }
 0x5f1   : > { %v4056_v43 = vpack.i.bf16 %v2432_v16, %v2430_v3  ;;  %v4050_v44 = vunpack.i.h.bf16 %v4048_v62  ;;  %v4049_v55 = vunpack.i.l.bf16 %v4048_v62 }
 0x5f3   : > { %4057 = vrot.lane.b32.xlu2 %v4056_v43, %s4675_s18  ;;  %v2541_v13 = vsel %vm1398_vm12, %v5676_v39, %v4050_v44  ;;  %v2540_v14 = vsel %vm1398_vm12, %v5672_v12, %v4049_v55 }
 0x5f8   : > { %v2435_v24 = vpop.f32.mrf.mxu1 }
 0x600   : > { %v2437_v11 = vpop.f32.mrf.mxu1 }
 0x601   : > { %v4071_v41 = vpack.i.bf16 %v2437_v11, %v2435_v24 }
 0x603   : > { %4072 = vrot.lane.b32.xlu2 %v4071_v41, %s4675_s18 }
 0x60f   : > { %v4063_v3 = vpop.permute.xlu0 %4062 }
 0x610   : > { %v4065_v43 = vunpack.i.h.bf16 %v4063_v3  ;;  %v4064_v39 = vunpack.i.l.bf16 %v4063_v3 }
 0x612   : > { %v2543_v4 = vsel %vm1398_vm12, %v5686_v26, %v4065_v43  ;;  %v2542_v11 = vsel %vm1398_vm12, %v5681_v53, %v4064_v39 }
 0x627   : > { %v4028_v31 = vpop.permute.xlu1 %4027 }
 0x628   : > { %v4030_v47 = vunpack.i.h.bf16 %v4028_v31  ;;  %v4029_v21 = vunpack.i.l.bf16 %v4028_v31 }
 0x62a   : > { %v2553_v6 = vsel %vm2552_vm14, %v2544_v46, %v4029_v21  ;;  %v2554_v19 = vsel %vm2552_vm14, %v2545_v48, %v4030_v47  ;;  %v4262_v47 = vld [vmem:[#allocation2 + $0x8] sm:$0xff] }
 0x62b   : > { %v2561_v59 = vpack.c.bf16 %v2554_v19, %v2553_v6  ;;  %v4263_v19 = vld [vmem:[#allocation2 + $0x10] sm:$0xff] }
 0x62d   : > { %3764 = vmatmul.msk.bf16.vlgmr.msra.gmra.mxu2 %vm949_vm1, %v2561_v59 }
 0x62f   : > { %v4038_v40 = vpop.permute.xlu1 %4037 }
 0x630   : > { %v4040_v23 = vunpack.i.h.bf16 %v4038_v40  ;;  %v4039_v45 = vunpack.i.l.bf16 %v4038_v40 }
 0x632   : > { %v2546_v61 = vsel %vm1481_vm13, %v2538_v30, %v4039_v45  ;;  %v2547_v42 = vsel %vm1481_vm13, %v2539_v56, %v4040_v23  ;;  %v4265_v30 = vld [vmem:[#allocation2 + $0x20] sm:$0xff] }
 0x637   : > { %v4053_v7 = vpop.permute.xlu1 %4052 }
 0x638   : > { %v4055_v51 = vunpack.i.h.bf16 %v4053_v7  ;;  %v4054_v38 = vunpack.i.l.bf16 %v4053_v7 }
 0x63a   : > { %v2549_v20 = vsel %vm1481_vm13, %v2541_v13, %v4055_v51  ;;  %v2548_v2 = vsel %vm1481_vm13, %v2540_v14, %v4054_v38 }
 0x63f   : > { %v4068_v33 = vpop.permute.xlu1 %4067 }
 0x640   : > { %v4070_v29 = vunpack.i.h.bf16 %v4068_v33  ;;  %v4069_v36 = vunpack.i.l.bf16 %v4068_v33 }
 0x642   : > { %v2551_v41 = vsel %vm1481_vm13, %v2543_v4, %v4070_v29  ;;  %v2550_v1 = vsel %vm1481_vm13, %v2542_v11, %v4069_v36 }
 0x645   : > { %v4043_v18 = vpop.permute.xlu2 %4042 }
 0x646   : > { %v4045_v27 = vunpack.i.h.bf16 %v4043_v18  ;;  %v4044_v60 = vunpack.i.l.bf16 %v4043_v18 }
 0x648   : > { %v2555_v22 = vsel %vm2552_vm14, %v2546_v61, %v4044_v60  ;;  %v2556_v34 = vsel %vm2552_vm14, %v2547_v42, %v4045_v27 }
 0x649   : > { %v2562_v17 = vpack.c.bf16 %v2556_v34, %v2555_v22  ;;  %v4266_v22 = vld [vmem:[#allocation2 + $0x28] sm:$0xff] }
 0x64b   : > { %3765 = vmatmul.msk.bf16.gmra.mxu2 %vm949_vm1, %v2562_v17 }
 0x64d   : > { %v4058_v5 = vpop.permute.xlu2 %4057 }
 0x64e   : > { %v4060_v25 = vunpack.i.h.bf16 %v4058_v5  ;;  %v4059_v57 = vunpack.i.l.bf16 %v4058_v5  ;;  %v4267_v5 = vld [vmem:[#allocation2 + $0x30] sm:$0xff] }
 0x650   : > { %v2558_v15 = vsel %vm2552_vm14, %v2549_v20, %v4060_v25  ;;  %v2557_v8 = vsel %vm2552_vm14, %v2548_v2, %v4059_v57 }
 0x651   : > { %v2563_v35 = vpack.c.bf16 %v2558_v15, %v2557_v8  ;;  %v4268_v8 = vld [vmem:[#allocation2 + $0x38] sm:$0xff] }
 0x65b   : > { %3766 = vmatmul.msk.bf16.gmra.mxu2 %vm949_vm1, %v2563_v35 }
 0x65d   : > { %v4073_v16 = vpop.permute.xlu2 %4072 }
 0x65e   : > { %v4075_v12 = vunpack.i.h.bf16 %v4073_v16  ;;  %v4074_v24 = vunpack.i.l.bf16 %v4073_v16 }
 0x660   : > { %v2560_v10 = vsel %vm2552_vm14, %v2551_v41, %v4075_v12  ;;  %v2559_v52 = vsel %vm2552_vm14, %v2550_v1, %v4074_v24 }
 0x661   : > { %v2564_v58 = vpack.c.bf16 %v2560_v10, %v2559_v52 }
 0x66b   : > { %3767 = vmatmul.msk.bf16.gmra.mxu2 %vm949_vm1, %v2564_v58 }
 0x6b0   : > { %v2622_v26 = vpop.f32.mrf.mxu2 }
 0x6b1   : > { %v2623_v32 = vadd.f32 %v4078_v37, %v2622_v26 }
 0x6b3   : > { %v5740_v53 = vadd.f32 %v4261_v50, %v2623_v32 }
 0x6b5   : > { %v2652_v31 = vsel %vm949_vm1, %v5740_v53, 0.0 }
 0x6b6   : > { %2653 = vadd.xlane.f32.xlu0 %v2652_v31 }
 0x6b8   : > { %v2624_v0 = vpop.f32.mrf.mxu2 }
 0x6b9   : > { %v2625_v49 = vadd.f32 %v4078_v37, %v2624_v0 }
 0x6bb   : > { %v5744_v21 = vadd.f32 %v4262_v47, %v2625_v49 }
 0x6bd   : > { %v2655_v48 = vsel %vm949_vm1, %v5744_v21, 0.0 }
 0x6be   : > { %2656 = vadd.xlane.f32.xlu1 %v2655_v48 }
 0x6ce   : > { %v2627_v46 = vpop.f32.mrf.mxu2 }
 0x6cf   : > { %v2628_v6 = vadd.f32 %v4078_v37, %v2627_v46 }
 0x6d1   : > { %v5748_v59 = vadd.f32 %v4263_v19, %v2628_v6 }
 0x6d3   : > { %v2658_v63 = vsel %vm949_vm1, %v5748_v59, 0.0 }
 0x6d4   : > { %2659 = vadd.xlane.f32.xlu2 %v2658_v63 }
 0x6d6   : > { %v2629_v40 = vpop.f32.mrf.mxu2 }
 0x6d7   : > { %v2630_v54 = vadd.f32 %v4078_v37, %v2629_v40  ;;  %v3853_v40 = vld [vmem:[%s4977_s12 + $0x18] sm:$0xff] }
 0x6d8   : > { %2906 = vmatpush.bf16.msrb.mxu3 %v3853_v40 }
 0x6d9   : > { %v5752_v23 = vadd.f32 %v4264_v9, %v2630_v54  ;;  %v3852_v54 = vld [vmem:[%s4977_s12 + $0x10] sm:$0xff]  ;;  %v3851_v9 = vld [vmem:[%s4977_s12 + $0x8] sm:$0xff] }
 0x6db   : > { %v2661_v45 = vsel %vm949_vm1, %v5752_v23, 0.0 }
 0x6dc   : > { %2662 = vadd.xlane.f32.xlu0 %v2661_v45  ;;  %2907 = vmatpush.bf16.msrb.mxu3 %v3852_v54 }
 0x6de   : > { %v2632_v18 = vpop.f32.mrf.mxu2 }
 0x6df   : > { %v2633_v56 = vadd.f32 %v4078_v37, %v2632_v18 }
 0x6e0   : > { %2908 = vmatpush.bf16.msrb.mxu3 %v3851_v9 }
 0x6e1   : > { %v5756_v27 = vadd.f32 %v4265_v30, %v2633_v56  ;;  %v3850_v56 = vld [vmem:[%s4977_s12] sm:$0xff]  ;;  %s6208_s12 = scalar_lea.vmem [#allocation9], %s4954_s10 }
 0x6e3   : > { %v2664_v60 = vsel %vm949_vm1, %v5756_v27, 0.0 }
 0x6e4   : > { %2665 = vadd.xlane.f32.xlu1 %v2664_v60  ;;  %2909 = vmatpush.bf16.msrb.mxu3 %v3850_v56 }
 0x6e6   : > { %v2634_v61 = vpop.f32.mrf.mxu2 }
 0x6e7   : > { %v2635_v42 = vadd.f32 %v4078_v37, %v2634_v61 }
 0x6e9   : > { %v5760_v34 = vadd.f32 %v4266_v22, %v2635_v42 }
 0x6eb   : > { %v2667_v17 = vsel %vm949_vm1, %v5760_v34, 0.0 }
 0x6ec   : > { %2668 = vadd.xlane.f32.xlu2 %v2667_v17 }
 0x6ee   : > { %v2637_v62 = vpop.f32.mrf.mxu2 }
 0x6ef   : > { %v2638_v7 = vadd.f32 %v4078_v37, %v2637_v62 }
 0x6f1   : > { %v5764_v44 = vadd.f32 %v4267_v5, %v2638_v7 }
 0x6f3   : > { %v2670_v55 = vsel %vm949_vm1, %v5764_v44, 0.0 }
 0x6f4   : > { %2671 = vadd.xlane.f32.xlu2 %v2670_v55 }
 0x6f6   : > { %v2639_v57 = vpop.f32.mrf.mxu2 }
 0x6f7   : > { %v2640_v14 = vadd.f32 %v4078_v37, %v2639_v57 }
 0x6f9   : > { %v5776_v35 = vadd.f32 %v4268_v8, %v2640_v14 }
 0x6fb   : > { %v2673_v43 = vsel %vm949_vm1, %v5776_v35, 0.0 }
 0x729   : > { %v2654_v51 = vpop.xlane.xlu0 %2653 }
 0x72a   : > { %v2676_v38 = vmul.f32 %v2654_v51, %v5037_v28 }
 0x72c   : > { %v5770_v25 = vsub.f32 %v5740_v53, %v2676_v38 }
 0x72e   : > { %v2692_v13 = vmul.f32 %v5770_v25, %v5770_v25 }
 0x730   : > { %v2700_v20 = vsel %vm949_vm1, %v2692_v13, 0.0 }
 0x731   : > { %v2657_v2 = vpop.xlane.xlu1 %2656  ;;  %2701 = vadd.xlane.f32.xlu0 %v2700_v20 }
 0x732   : > { %v2677_v15 = vmul.f32 %v2657_v2, %v5037_v28 }
 0x734   : > { %v5779_v3 = vsub.f32 %v5744_v21, %v2677_v15 }
 0x736   : > { %v2693_v33 = vmul.f32 %v5779_v3, %v5779_v3 }
 0x738   : > { %v2703_v16 = vsel %vm949_vm1, %v2693_v33, 0.0 }
 0x739   : > { %2704 = vadd.xlane.f32.xlu1 %v2703_v16  ;;  %2674 = vadd.xlane.f32.xlu0 %v2673_v43  ;;  %v5836_v43 = vld [vmem:[%s6208_s12] ss:$0 sm:$0xff] }
 0x747   : > { %v2660_v39 = vpop.xlane.xlu2 %2659 }
 0x748   : > { %v2678_v29 = vmul.f32 %v2660_v39, %v5037_v28 }
 0x74a   : > { %v5788_v36 = vsub.f32 %v5748_v59, %v2678_v29 }
 0x74c   : > { %v2694_v12 = vmul.f32 %v5788_v36, %v5788_v36 }
 0x74e   : > { %v2706_v24 = vsel %vm949_vm1, %v2694_v12, 0.0 }
 0x74f   : > { %2707 = vadd.xlane.f32.xlu1 %v2706_v24  ;;  %v2663_v4 = vpop.xlane.xlu0 %2662 }
 0x750   : > { %v2679_v11 = vmul.f32 %v2663_v4, %v5037_v28 }
 0x752   : > { %v5795_v41 = vsub.f32 %v5752_v23, %v2679_v11  ;;  %v5842_v11 = vld [vmem:[%s6209_s24] ss:$0 sm:$0xff] }
 0x754   : > { %v2695_v1 = vmul.f32 %v5795_v41, %v5795_v41 }
 0x756   : > { %v2709_v10 = vsel %vm949_vm1, %v2695_v1, 0.0 }
 0x757   : > { %v2666_v52 = vpop.xlane.xlu1 %2665  ;;  %2710 = vadd.xlane.f32.xlu2 %v2709_v10 }
 0x758   : > { %v2680_v58 = vmul.f32 %v2666_v52, %v5037_v28 }
 0x75a   : > { %v5802_v37 = vsub.f32 %v5756_v27, %v2680_v58 }
 0x75c   : > { %v2696_v26 = vmul.f32 %v5802_v37, %v5802_v37 }
 0x75e   : > { %v2712_v32 = vsel %vm949_vm1, %v2696_v26, 0.0 }
 0x75f   : > { %v2669_v50 = vpop.xlane.xlu2 %2668  ;;  %2713 = vadd.xlane.f32.xlu0 %v2712_v32 }
 0x760   : > { %v2681_v31 = vmul.f32 %v2669_v50, %v5037_v28 }
 0x762   : > { %v5809_v0 = vsub.f32 %v5760_v34, %v2681_v31 }
 0x764   : > { %v2697_v49 = vmul.f32 %v5809_v0, %v5809_v0 }
 0x766   : > { %v2715_v47 = vsel %vm949_vm1, %v2697_v49, 0.0 }
 0x767   : > { %v2672_v48 = vpop.xlane.xlu2 %2671  ;;  %2716 = vadd.xlane.f32.xlu1 %v2715_v47 }
 0x768   : > { %v2682_v46 = vmul.f32 %v2672_v48, %v5037_v28 }
 0x76a   : > { %v5816_v6 = vsub.f32 %v5764_v44, %v2682_v46 }
 0x76c   : > { %v2698_v19 = vmul.f32 %v5816_v6, %v5816_v6 }
 0x76e   : > { %v2718_v63 = vsel %vm949_vm1, %v2698_v19, 0.0 }
 0x76f   : > { %2719 = vadd.xlane.f32.xlu2 %v2718_v63 }
 0x7a4   : > { %v2702_v45 = vpop.xlane.xlu0 %2701 }
 0x7a5   : > { %v2724_v18 = vmul.f32 %v2702_v45, %v5037_v28 }
 0x7a7   : > { %v2732_v30 = vadd.f32 1e-05, %v2724_v18 }
 0x7a9   : > { %4229 = vrsqrt.f32 %v2732_v30  ;;  %vm2746_vm0 = vweird.f32 %v2732_v30 }
 0x7ac   : > { %v2705_v60 = vpop.xlane.xlu1 %2704  ;;  %v2675_v61 = vpop.xlane.xlu0 %2674 }
 0x7ad   : > { %v2725_v42 = vmul.f32 %v2705_v60, %v5037_v28  ;;  %v2683_v22 = vmul.f32 %v2675_v61, %v5037_v28 }
 0x7af   : > { %v4230_v17 = vpop.eup %4229  ;;  %v2733_v62 = vadd.f32 1e-05, %v2725_v42  ;;  %v5829_v7 = vsub.f32 %v5776_v35, %v2683_v22 }
 0x7b0   : > { %v2741_v5 = vmul.f32 %v4230_v17, %v2732_v30  ;;  %vm2747_vm15 = vweird.f32 %v4230_v17 }
 0x7b1   : > { %4231 = vrsqrt.f32 %v2733_v62  ;;  %v2699_v55 = vmul.f32 %v5829_v7, %v5829_v7  ;;  %vm2748_vm2 = vmor %vm2746_vm0, %vm2747_vm15  ;;  %vm2756_vm4 = vweird.f32 %v2733_v62 }
 0x7b2   : > { %v2742_v51 = vmul.f32 %v4230_v17, %v2741_v5 }
 0x7b3   : > { %v2721_v38 = vsel %vm949_vm1, %v2699_v55, 0.0 }
 0x7b4   : > { %v2743_v57 = vmul.f32 0.5, %v2742_v51  ;;  %2722 = vadd.xlane.f32.xlu0 %v2721_v38 }
 0x7b6   : > { %v2744_v13 = vsub.f32 1.5, %v2743_v57 }
 0x7b7   : > { %v4232_v14 = vpop.eup %4231 }
 0x7b8   : > { %v2745_v20 = vmul.f32 %v4230_v17, %v2744_v13  ;;  %v2751_v2 = vmul.f32 %v4232_v14, %v2733_v62  ;;  %vm2757_vm3 = vweird.f32 %v4232_v14 }
 0x7b9   : > { %vm2758_vm5 = vmor %vm2756_vm4, %vm2757_vm3 }
 0x7ba   : > { %v2752_v15 = vmul.f32 %v4232_v14, %v2751_v2  ;;  %v2749_v8 = vsel %vm2748_vm2, %v4230_v17, %v2745_v20 }
 0x7bb   : > { %v2820_v39 = vmul.f32 %v2749_v8, %v5770_v25 }
 0x7bc   : > { %v2753_v33 = vmul.f32 0.5, %v2752_v15 }
 0x7bd   : > { %v2831_v1 = vmul.f32 %v5836_v43, %v2820_v39 }
 0x7be   : > { %v2754_v16 = vsub.f32 1.5, %v2753_v33 }
 0x7bf   : > { %v2842_v25 = vadd.f32 %v5842_v11, %v2831_v1 }
 0x7c0   : > { %v2755_v29 = vmul.f32 %v4232_v14, %v2754_v16 }
 0x7c2   : > { %v2708_v12 = vpop.xlane.xlu1 %2707  ;;  %v2759_v4 = vsel %vm2758_vm5, %v4232_v14, %v2755_v29 }
 0x7c3   : > { %v2726_v24 = vmul.f32 %v2708_v12, %v5037_v28  ;;  %v2821_v10 = vmul.f32 %v2759_v4, %v5779_v3 }
 0x7c5   : > { %v2734_v52 = vadd.f32 1e-05, %v2726_v24  ;;  %v2832_v58 = vmul.f32 %v5836_v43, %v2821_v10 }
 0x7c7   : > { %4233 = vrsqrt.f32 %v2734_v52  ;;  %v2843_v26 = vadd.f32 %v5842_v11, %v2832_v58  ;;  %vm2766_vm7 = vweird.f32 %v2734_v52 }
 0x7c9   : > { %v2850_v31 = vpack.c.bf16 %v2843_v26, %v2842_v25 }
 0x7ca   : > { %v2711_v32 = vpop.xlane.xlu2 %2710 }
 0x7cb   : > { %v2727_v50 = vmul.f32 %v2711_v32, %v5037_v28  ;;  %3784 = vmatmul.msk.bf16.vlgmr.msrb.gmra.mxu3 %vm949_vm1, %v2850_v31 }
 0x7cd   : > { %v4234_v49 = vpop.eup %4233  ;;  %v2735_v47 = vadd.f32 1e-05, %v2727_v50 }
 0x7ce   : > { %v2761_v48 = vmul.f32 %v4234_v49, %v2734_v52  ;;  %vm2767_vm6 = vweird.f32 %v4234_v49 }
 0x7cf   : > { %4235 = vrsqrt.f32 %v2735_v47  ;;  %vm2768_vm8 = vmor %vm2766_vm7, %vm2767_vm6  ;;  %vm2776_vm10 = vweird.f32 %v2735_v47 }
 0x7d0   : > { %v2762_v46 = vmul.f32 %v4234_v49, %v2761_v48 }
 0x7d2   : > { %v2763_v3 = vmul.f32 0.5, %v2762_v46  ;;  %v2714_v19 = vpop.xlane.xlu0 %2713 }
 0x7d3   : > { %v2728_v63 = vmul.f32 %v2714_v19, %v5037_v28 }
 0x7d4   : > { %v2764_v40 = vsub.f32 1.5, %v2763_v3 }
 0x7d5   : > { %v4236_v54 = vpop.eup %4235  ;;  %v2736_v9 = vadd.f32 1e-05, %v2728_v63 }
 0x7d6   : > { %v2765_v45 = vmul.f32 %v4234_v49, %v2764_v40  ;;  %v2771_v18 = vmul.f32 %v4236_v54, %v2735_v47  ;;  %vm2777_vm9 = vweird.f32 %v4236_v54 }
 0x7d7   : > { %4237 = vrsqrt.f32 %v2736_v9  ;;  %vm2778_vm11 = vmor %vm2776_vm10, %vm2777_vm9  ;;  %vm2786_vm13 = vweird.f32 %v2736_v9 }
 0x7d8   : > { %v2772_v56 = vmul.f32 %v4236_v54, %v2771_v18  ;;  %v2769_v30 = vsel %vm2768_vm8, %v4234_v49, %v2765_v45 }
 0x7d9   : > { %v2822_v62 = vmul.f32 %v2769_v30, %v5788_v36  ;;  %v3860_v30 = vld [vmem:[%s5025_s8 + $0x30] sm:$0xff] }
 0x7da   : > { %v2773_v60 = vmul.f32 0.5, %v2772_v56  ;;  %v2717_v61 = vpop.xlane.xlu1 %2716 }
 0x7db   : > { %v2729_v42 = vmul.f32 %v2717_v61, %v5037_v28  ;;  %v2833_v14 = vmul.f32 %v5836_v43, %v2822_v62 }
 0x7dc   : > { %v2774_v22 = vsub.f32 1.5, %v2773_v60 }
 0x7dd   : > { %v4238_v17 = vpop.eup %4237  ;;  %v2737_v5 = vadd.f32 1e-05, %v2729_v42  ;;  %v2844_v33 = vadd.f32 %v5842_v11, %v2833_v14 }
 0x7de   : > { %v2775_v55 = vmul.f32 %v4236_v54, %v2774_v22  ;;  %v2781_v51 = vmul.f32 %v4238_v17, %v2736_v9  ;;  %vm2787_vm12 = vweird.f32 %v4238_v17  ;;  %v3861_v9 = vld [vmem:[%s5025_s8 + $0x38] sm:$0xff]  ;;  %v3859_v22 = vld [vmem:[%s5025_s8 + $0x28] sm:$0xff] }
 0x7df   : > { %4239 = vrsqrt.f32 %v2737_v5  ;;  %vm2788_vm14 = vmor %vm2786_vm13, %vm2787_vm12  ;;  %vm2796_vm0 = vweird.f32 %v2737_v5  ;;  %3075 = vmatpush.bf16.msrb.mxu0 %v3861_v9 }
 0x7e0   : > { %v2779_v38 = vsel %vm2778_vm11, %v4236_v54, %v2775_v55  ;;  %v2782_v57 = vmul.f32 %v4238_v17, %v2781_v51  ;;  %v3858_v55 = vld [vmem:[%s5025_s8 + $0x20] sm:$0xff] }
 0x7e1   : > { %v2823_v13 = vmul.f32 %v2779_v38, %v5795_v41 }
 0x7e2   : > { %v2783_v20 = vmul.f32 0.5, %v2782_v57  ;;  %v2720_v49 = vpop.xlane.xlu2 %2719 }
 0x7e3   : > { %v2834_v2 = vmul.f32 %v5836_v43, %v2823_v13  ;;  %3076 = vmatpush.bf16.msrb.mxu0 %v3860_v30  ;;  %v3857_v13 = vld [vmem:[%s5025_s8 + $0x18] sm:$0xff] }
 0x7e4   : > { %v2784_v15 = vsub.f32 1.5, %v2783_v20  ;;  %v3856_v20 = vld [vmem:[%s5025_s8 + $0x10] sm:$0xff] }
 0x7e5   : > { %v4240_v8 = vpop.eup %4239  ;;  %v2845_v36 = vadd.f32 %v5842_v11, %v2834_v2 }
 0x7e6   : > { %v2785_v16 = vmul.f32 %v4238_v17, %v2784_v15  ;;  %v2791_v39 = vmul.f32 %v4240_v8, %v2737_v5  ;;  %vm2797_vm15 = vweird.f32 %v4240_v8 }
 0x7e7   : > { %v2851_v29 = vpack.c.bf16 %v2845_v36, %v2844_v33  ;;  %vm2798_vm2 = vmor %vm2796_vm0, %vm2797_vm15  ;;  %3077 = vmatpush.bf16.msrb.mxu0 %v3859_v22  ;;  %v5885_v33 = vld [vmem:[%s6210_s6] ss:$0 sm:$0xff] }
 0x7e8   : > { %v2792_v12 = vmul.f32 %v4240_v8, %v2791_v39  ;;  %v2789_v41 = vsel %vm2788_vm14, %v4238_v17, %v2785_v16 }
 0x7e9   : > { %3785 = vmatmul.msk.bf16.gmra.mxu3 %vm949_vm1, %v2851_v29  ;;  %v2824_v1 = vmul.f32 %v2789_v41, %v5802_v37  ;;  %v2730_v37 = vmul.f32 %v2720_v49, %v5037_v28 }
 0x7ea   : > { %v2793_v24 = vmul.f32 0.5, %v2792_v12 }
 0x7eb   : > { %v2835_v25 = vmul.f32 %v5836_v43, %v2824_v1  ;;  %v2738_v47 = vadd.f32 1e-05, %v2730_v37  ;;  %3078 = vmatpush.bf16.msrb.mxu0 %v3858_v55 }
 0x7ec   : > { %v2794_v4 = vsub.f32 1.5, %v2793_v24 }
 0x7ed   : > { %v2846_v32 = vadd.f32 %v5842_v11, %v2835_v25  ;;  %4241 = vrsqrt.f32 %v2738_v47  ;;  %vm2806_vm4 = vweird.f32 %v2738_v47 }
 0x7ee   : > { %v2795_v10 = vmul.f32 %v4240_v8, %v2794_v4 }
 0x7ef   : > { %3079 = vmatpush.bf16.msrb.mxu0 %v3857_v13 }
 0x7f0   : > { %v2799_v52 = vsel %vm2798_vm2, %v4240_v8, %v2795_v10  ;;  %v3855_v8 = vld [vmem:[%s5025_s8 + $0x8] sm:$0xff] }
 0x7f1   : > { %v2825_v58 = vmul.f32 %v2799_v52, %v5809_v0 }
 0x7f3   : > { %v2836_v26 = vmul.f32 %v5836_v43, %v2825_v58  ;;  %v4242_v48 = vpop.eup %4241  ;;  %3080 = vmatpush.bf16.msrb.mxu0 %v3856_v20 }
 0x7f4   : > { %v2801_v0 = vmul.f32 %v4242_v48, %v2738_v47  ;;  %vm2807_vm3 = vweird.f32 %v4242_v48 }
 0x7f5   : > { %v2847_v50 = vadd.f32 %v5842_v11, %v2836_v26  ;;  %vm2808_vm5 = vmor %vm2806_vm4, %vm2807_vm3 }
 0x7f6   : > { %v2802_v46 = vmul.f32 %v4242_v48, %v2801_v0 }
 0x7f7   : > { %v2852_v31 = vpack.c.bf16 %v2847_v50, %v2846_v32  ;;  %3081 = vmatpush.bf16.msrb.mxu0 %v3855_v8 }
 0x7f8   : > { %v2803_v40 = vmul.f32 0.5, %v2802_v46 }
 0x7f9   : > { %3786 = vmatmul.msk.bf16.gmra.mxu3 %vm949_vm1, %v2852_v31 }
 0x7fa   : > { %v2804_v54 = vsub.f32 1.5, %v2803_v40 }
 0x7fc   : > { %v2805_v18 = vmul.f32 %v4242_v48, %v2804_v54 }
 0x7fe   : > { %v2809_v61 = vsel %vm2808_vm5, %v4242_v48, %v2805_v18 }
 0x7ff   : > { %v2826_v62 = vmul.f32 %v2809_v61, %v5816_v6 }
 0x801   : > { %v2837_v57 = vmul.f32 %v5836_v43, %v2826_v62 }
 0x803   : > { %v2848_v6 = vadd.f32 %v5842_v11, %v2837_v57 }
 0x827   : > { %v2723_v3 = vpop.xlane.xlu0 %2722 }
 0x828   : > { %v2731_v19 = vmul.f32 %v2723_v3, %v5037_v28 }
 0x82a   : > { %v2739_v63 = vadd.f32 1e-05, %v2731_v19 }
 0x82c   : > { %4243 = vrsqrt.f32 %v2739_v63  ;;  %vm2816_vm7 = vweird.f32 %v2739_v63 }
 0x832   : > { %v4244_v45 = vpop.eup %4243 }
 0x833   : > { %v2811_v56 = vmul.f32 %v4244_v45, %v2739_v63  ;;  %vm2817_vm6 = vweird.f32 %v4244_v45 }
 0x834   : > { %vm2818_vm8 = vmor %vm2816_vm7, %vm2817_vm6 }
 0x835   : > { %v2812_v60 = vmul.f32 %v4244_v45, %v2811_v56 }
 0x837   : > { %v2813_v42 = vmul.f32 0.5, %v2812_v60 }
 0x839   : > { %v2814_v17 = vsub.f32 1.5, %v2813_v42 }
 0x83b   : > { %v2815_v5 = vmul.f32 %v4244_v45, %v2814_v17 }
 0x83d   : > { %v2819_v51 = vsel %vm2818_vm8, %v4244_v45, %v2815_v5 }
 0x83e   : > { %v2827_v38 = vmul.f32 %v2819_v51, %v5829_v7  ;;  %v3854_v7 = vld [vmem:[%s5025_s8] sm:$0xff] }
 0x83f   : > { %3082 = vmatpush.bf16.msrb.mxu0 %v3854_v7 }
 0x840   : > { %v2838_v14 = vmul.f32 %v5836_v43, %v2827_v38 }
 0x842   : > { %v2849_v2 = vadd.f32 %v5842_v11, %v2838_v14 }
 0x844   : > { %v2853_v15 = vpack.c.bf16 %v2849_v2, %v2848_v6 }
 0x846   : > { %3787 = vmatmul.msk.bf16.gmra.mxu3 %vm949_vm1, %v2853_v15 }
 0x84e   : > { %v2911_v36 = vpop.f32.mrf.mxu3 }
 0x84f   : > { %v2912_v43 = vadd.f32 %v5885_v33, %v2911_v36 }
 0x851   : > { %v2939_v16 = vmul.f32 0.044715, %v2912_v43  ;;  %v2931_v31 = vmul.f32 0.5, %v2912_v43 }
 0x853   : > { %v2947_v39 = vmul.f32 %v2939_v16, %v2912_v43 }
 0x855   : > { %v2955_v29 = vmul.f32 %v2947_v39, %v2912_v43 }
 0x856   : > { %v2913_v12 = vpop.f32.mrf.mxu3 }
 0x857   : > { %v2963_v41 = vadd.f32 %v2955_v29, %v2912_v43  ;;  %v2914_v11 = vadd.f32 %v5885_v33, %v2913_v12 }
 0x859   : > { %v2940_v24 = vmul.f32 0.044715, %v2914_v11  ;;  %v2971_v4 = vmul.f32 0.7978846, %v2963_v41  ;;  %v2932_v49 = vmul.f32 0.5, %v2914_v11 }
 0x85b   : > { %v2948_v1 = vmul.f32 %v2940_v24, %v2914_v11  ;;  %4245 = vtanh.f32 %v2971_v4 }
 0x85d   : > { %v2956_v10 = vmul.f32 %v2948_v1, %v2914_v11 }
 0x85f   : > { %v2964_v52 = vadd.f32 %v2956_v10, %v2914_v11 }
 0x861   : > { %v2972_v58 = vmul.f32 0.7978846, %v2964_v52  ;;  %v4246_v25 = vpop.eup %4245 }
 0x862   : > { %v2987_v26 = vadd.f32 1.0, %v4246_v25 }
 0x863   : > { %4247 = vtanh.f32 %v2972_v58 }
 0x864   : > { %v2995_v48 = vmul.f32 %v2987_v26, %v2931_v31 }
 0x869   : > { %v4248_v32 = vpop.eup %4247 }
 0x86a   : > { %v2988_v37 = vadd.f32 1.0, %v4248_v32 }
 0x86c   : > { %v2916_v50 = vpop.f32.mrf.mxu3  ;;  %v2996_v0 = vmul.f32 %v2988_v37, %v2932_v49 }
 0x86d   : > { %v2917_v47 = vadd.f32 %v5885_v33, %v2916_v50 }
 0x86e   : > { %v3003_v3 = vpack.c.bf16 %v2996_v0, %v2995_v48 }
 0x86f   : > { %v2941_v46 = vmul.f32 0.044715, %v2917_v47  ;;  %v2933_v6 = vmul.f32 0.5, %v2917_v47 }
 0x870   : > { %3083 = vmatmul.bf16.vlgmr.msrb.gmra.mxu0 %v3003_v3 }
 0x871   : > { %v2949_v19 = vmul.f32 %v2941_v46, %v2917_v47 }
 0x873   : > { %v2957_v63 = vmul.f32 %v2949_v19, %v2917_v47 }
 0x874   : > { %v2918_v40 = vpop.f32.mrf.mxu3 }
 0x875   : > { %v2919_v54 = vadd.f32 %v5885_v33, %v2918_v40  ;;  %v2965_v9 = vadd.f32 %v2957_v63, %v2917_v47 }
 0x877   : > { %v2942_v45 = vmul.f32 0.044715, %v2919_v54  ;;  %v2973_v56 = vmul.f32 0.7978846, %v2965_v9  ;;  %v2934_v2 = vmul.f32 0.5, %v2919_v54 }
 0x879   : > { %v2950_v18 = vmul.f32 %v2942_v45, %v2919_v54  ;;  %4249 = vtanh.f32 %v2973_v56 }
 0x87b   : > { %v2958_v30 = vmul.f32 %v2950_v18, %v2919_v54 }
 0x87c   : > { %v2921_v60 = vpop.f32.mrf.mxu3 }
 0x87d   : > { %v2922_v61 = vadd.f32 %v5885_v33, %v2921_v60  ;;  %v2966_v42 = vadd.f32 %v2958_v30, %v2919_v54 }
 0x87f   : > { %v2943_v22 = vmul.f32 0.044715, %v2922_v61  ;;  %v2974_v17 = vmul.f32 0.7978846, %v2966_v42  ;;  %v4250_v5 = vpop.eup %4249  ;;  %v2935_v4 = vmul.f32 0.5, %v2922_v61 }
 0x880   : > { %v2989_v13 = vadd.f32 1.0, %v4250_v5 }
 0x881   : > { %v2951_v62 = vmul.f32 %v2943_v22, %v2922_v61  ;;  %4251 = vtanh.f32 %v2974_v17 }
 0x882   : > { %v2997_v36 = vmul.f32 %v2989_v13, %v2933_v6 }
 0x883   : > { %v2959_v55 = vmul.f32 %v2951_v62, %v2922_v61 }
 0x884   : > { %v2923_v51 = vpop.f32.mrf.mxu3 }
 0x885   : > { %v2924_v38 = vadd.f32 %v5885_v33, %v2923_v51  ;;  %v2967_v57 = vadd.f32 %v2959_v55, %v2922_v61 }
 0x887   : > { %v4252_v14 = vpop.eup %4251  ;;  %v2944_v20 = vmul.f32 0.044715, %v2924_v38  ;;  %v2975_v7 = vmul.f32 0.7978846, %v2967_v57  ;;  %v2936_v1 = vmul.f32 0.5, %v2924_v38 }
 0x888   : > { %v2990_v15 = vadd.f32 1.0, %v4252_v14 }
 0x889   : > { %v2952_v8 = vmul.f32 %v2944_v20, %v2924_v38  ;;  %4253 = vtanh.f32 %v2975_v7 }
 0x88a   : > { %v2998_v43 = vmul.f32 %v2990_v15, %v2934_v2 }
 0x88b   : > { %v2960_v16 = vmul.f32 %v2952_v8, %v2924_v38 }
 0x88c   : > { %v3004_v39 = vpack.c.bf16 %v2998_v43, %v2997_v36 }
 0x88d   : > { %v2968_v29 = vadd.f32 %v2960_v16, %v2924_v38 }
 0x88e   : > { %3088 = vmatmul.bf16.gmra.mxu0 %v3004_v39 }
 0x88f   : > { %v2976_v12 = vmul.f32 0.7978846, %v2968_v29  ;;  %v4254_v41 = vpop.eup %4253 }
 0x890   : > { %v2991_v11 = vadd.f32 1.0, %v4254_v41 }
 0x891   : > { %4255 = vtanh.f32 %v2976_v12 }
 0x892   : > { %v2999_v52 = vmul.f32 %v2991_v11, %v2935_v4 }
 0x897   : > { %v4256_v24 = vpop.eup %4255 }
 0x898   : > { %v2992_v10 = vadd.f32 1.0, %v4256_v24 }
 0x89a   : > { %v3000_v58 = vmul.f32 %v2992_v10, %v2936_v1 }
 0x89c   : > { %v3005_v25 = vpack.c.bf16 %v3000_v58, %v2999_v52 }
 0x89e   : > { %3093 = vmatmul.bf16.gmra.mxu0 %v3005_v25 }
 0x8c9   : > { %v2926_v26 = vpop.f32.mrf.mxu3 }
 0x8ca   : > { %v2927_v32 = vadd.f32 %v5885_v33, %v2926_v26 }
 0x8cc   : > { %v2945_v50 = vmul.f32 0.044715, %v2927_v32  ;;  %v2937_v18 = vmul.f32 0.5, %v2927_v32 }
 0x8ce   : > { %v2953_v31 = vmul.f32 %v2945_v50, %v2927_v32 }
 0x8d0   : > { %v2961_v49 = vmul.f32 %v2953_v31, %v2927_v32 }
 0x8d1   : > { %v2928_v37 = vpop.f32.mrf.mxu3 }
 0x8d2   : > { %v2929_v47 = vadd.f32 %v5885_v33, %v2928_v37  ;;  %v2969_v48 = vadd.f32 %v2961_v49, %v2927_v32  ;;  %v4082_v33 = vld [vmem:[%s6211_s20] ss:$0 sm:$0xff] }
 0x8d4   : > { %v2946_v0 = vmul.f32 0.044715, %v2929_v47  ;;  %v2977_v3 = vmul.f32 0.7978846, %v2969_v48  ;;  %v2938_v56 = vmul.f32 0.5, %v2929_v47 }
 0x8d6   : > { %v2954_v46 = vmul.f32 %v2946_v0, %v2929_v47  ;;  %4257 = vtanh.f32 %v2977_v3 }
 0x8d8   : > { %v2962_v19 = vmul.f32 %v2954_v46, %v2929_v47 }
 0x8da   : > { %v2970_v63 = vadd.f32 %v2962_v19, %v2929_v47 }
 0x8dc   : > { %v2978_v40 = vmul.f32 0.7978846, %v2970_v63  ;;  %v4258_v54 = vpop.eup %4257 }
 0x8dd   : > { %v2993_v9 = vadd.f32 1.0, %v4258_v54 }
 0x8de   : > { %4259 = vtanh.f32 %v2978_v40 }
 0x8df   : > { %v3001_v60 = vmul.f32 %v2993_v9, %v2937_v18 }
 0x8e4   : > { %v4260_v45 = vpop.eup %4259 }
 0x8e5   : > { %v2994_v30 = vadd.f32 1.0, %v4260_v45 }
 0x8e7   : > { %v3002_v61 = vmul.f32 %v2994_v30, %v2938_v56 }
 0x8e9   : > { %v3006_v42 = vpack.c.bf16 %v3002_v61, %v3001_v60 }
 0x8eb   : > { %3098 = vmatmul.bf16.gmra.mxu0 %v3006_v42 }
 0x8ed   : > { %v3084_v22 = vpop.f32.mrf.mxu0 }
 0x8ee   : > { %v3085_v17 = vadd.f32 %v4082_v33, %v3084_v22 }
 0x8f0   : > { %v3104_v62 = vadd.f32 %v3085_v17, %v5740_v53 }
 0x8f2   : > { %3112 = vst.msk [vmem:[#allocation2] sm:$0xff] %vm949_vm1, %v3104_v62 }
 0x8f5   : > { %v3086_v5 = vpop.f32.mrf.mxu0 }
 0x8f6   : > { %v3087_v55 = vadd.f32 %v4082_v33, %v3086_v5 }
 0x8f8   : > { %v5901_v51 = vadd.f32 %v3087_v55, %v5744_v21 }
 0x8fa   : > { %3113 = vst.msk [vmem:[#allocation2 + $0x8] sm:$0xff] %vm949_vm1, %v5901_v51 }
 0x90b   : > { %v3089_v38 = vpop.f32.mrf.mxu0 }
 0x90c   : > { %v3090_v57 = vadd.f32 %v4082_v33, %v3089_v38 }
 0x90e   : > { %v3106_v13 = vadd.f32 %v3090_v57, %v5748_v59 }
 0x910   : > { %3114 = vst.msk [vmem:[#allocation2 + $0x10] sm:$0xff] %vm949_vm1, %v3106_v13 }
 0x913   : > { %v3091_v14 = vpop.f32.mrf.mxu0 }
 0x914   : > { %v3092_v20 = vadd.f32 %v4082_v33, %v3091_v14 }
 0x916   : > { %v3107_v53 = vadd.f32 %v3092_v20, %v5752_v23 }
 0x918   : > { %3115 = vst.msk [vmem:[#allocation2 + $0x18] sm:$0xff] %vm949_vm1, %v3107_v53 }
 0x91b   : > { %v3094_v6 = vpop.f32.mrf.mxu0 }
 0x91c   : > { %v3095_v2 = vadd.f32 %v4082_v33, %v3094_v6 }
 0x91e   : > { %v3108_v21 = vadd.f32 %v3095_v2, %v5756_v27 }
 0x920   : > { %3116 = vst.msk [vmem:[#allocation2 + $0x20] sm:$0xff] %vm949_vm1, %v3108_v21 }
 0x923   : > { %v3096_v15 = vpop.f32.mrf.mxu0 }
 0x924   : > { %v3097_v8 = vadd.f32 %v4082_v33, %v3096_v15 }
 0x926   : > { %v3109_v7 = vadd.f32 %v3097_v8, %v5760_v34 }
 0x928   : > { %3117 = vst.msk [vmem:[#allocation2 + $0x28] sm:$0xff] %vm949_vm1, %v3109_v7 }
 0x968   : > { %v3099_v59 = vpop.f32.mrf.mxu0 }
 0x969   : > { %v3100_v36 = vadd.f32 %v4082_v33, %v3099_v59 }
 0x96b   : > { %v3110_v43 = vadd.f32 %v3100_v36, %v5764_v44 }
 0x96d   : > { %3118 = vst.msk [vmem:[#allocation2 + $0x30] sm:$0xff] %vm949_vm1, %v3110_v43 }
 0x970   : > { %v3101_v23 = vpop.f32.mrf.mxu0 }
 0x971   : > { %v3102_v16 = vadd.f32 %v4082_v33, %v3101_v23  ;;  %3123 = sbr.rel (%p3820_p10) target bundleno = 2716 (0xa9c), region = 124 }
 0x973   : > { %v3111_v39 = vadd.f32 %v3102_v16, %v5776_v35 }
 0x975   : > { %3119 = vst.msk [vmem:[#allocation2 + $0x38] sm:$0xff] %vm949_vm1, %v3111_v39 }
 0x976   : > { %v3138_v27 = vsel %vm949_vm1, %v3108_v21, 0.0  ;;  %v3132_v34 = vsel %vm949_vm1, %v3106_v13, 0.0  ;;  %v3126_v29 = vsel %vm949_vm1, %v3104_v62, 0.0  ;;  %v3141_v44 = vsel %vm949_vm1, %v3109_v7, 0.0 }
 0x977   : > { %3139 = vadd.xlane.f32.xlu2 %v3138_v27  ;;  %3133 = vadd.xlane.f32.xlu1 %v3132_v34  ;;  %v3135_v12 = vsel %vm949_vm1, %v3107_v53, 0.0  ;;  %v3129_v35 = vsel %vm949_vm1, %v5901_v51, 0.0  ;;  %v3147_v41 = vsel %vm949_vm1, %v3111_v39, 0.0  ;;  %v3144_v11 = vsel %vm949_vm1, %v3110_v43, 0.0 }
 0x978   : > { %3127 = vadd.xlane.f32.xlu0 %v3126_v29 }
 0x97f   : > { %3142 = vadd.xlane.f32.xlu2 %v3141_v44  ;;  %3136 = vadd.xlane.f32.xlu1 %v3135_v12 }
 0x980   : > { %3130 = vadd.xlane.f32.xlu0 %v3129_v35 }
 0x987   : > { %3148 = vadd.xlane.f32.xlu1 %v3147_v41 }
 0x988   : > { %3145 = vadd.xlane.f32.xlu0 %v3144_v11 }
 0x9ea   : > { %v3140_v24 = vpop.xlane.xlu2 %3139  ;;  %v3134_v4 = vpop.xlane.xlu1 %3133 }
 0x9eb   : > { %v3152_v1 = vmul.f32 %v3134_v4, %v5037_v28  ;;  %v3128_v10 = vpop.xlane.xlu0 %3127  ;;  %v3154_v46 = vmul.f32 %v3140_v24, %v5037_v28 }
 0x9ec   : > { %v3150_v52 = vmul.f32 %v3128_v10, %v5037_v28 }
 0x9ed   : > { %v5929_v58 = vsub.f32 %v3106_v13, %v3152_v1  ;;  %v5954_v45 = vsub.f32 %v3108_v21, %v3154_v46 }
 0x9ee   : > { %v5931_v25 = vsub.f32 %v3104_v62, %v3150_v52 }
 0x9ef   : > { %v3168_v26 = vmul.f32 %v5929_v58, %v5929_v58  ;;  %v3170_v17 = vmul.f32 %v5954_v45, %v5954_v45 }
 0x9f0   : > { %v3166_v32 = vmul.f32 %v5931_v25, %v5931_v25 }
 0x9f1   : > { %v3180_v50 = vsel %vm949_vm1, %v3168_v26, 0.0  ;;  %v3186_v55 = vsel %vm949_vm1, %v3170_v17, 0.0 }
 0x9f2   : > { %v3143_v31 = vpop.xlane.xlu2 %3142  ;;  %3181 = vadd.xlane.f32.xlu1 %v3180_v50  ;;  %v3137_v49 = vpop.xlane.xlu1 %3136  ;;  %v3174_v37 = vsel %vm949_vm1, %v3166_v32, 0.0 }
 0x9f3   : > { %v3155_v47 = vmul.f32 %v3143_v31, %v5037_v28  ;;  %v3153_v48 = vmul.f32 %v3137_v49, %v5037_v28  ;;  %3175 = vadd.xlane.f32.xlu2 %v3174_v37  ;;  %v3131_v0 = vpop.xlane.xlu0 %3130 }
 0x9f4   : > { %v3151_v3 = vmul.f32 %v3131_v0, %v5037_v28 }
 0x9f5   : > { %v5943_v19 = vsub.f32 %v3109_v7, %v3155_v47  ;;  %v5945_v63 = vsub.f32 %v3107_v53, %v3153_v48  ;;  %v5995_v48 = vld [vmem:[%s6212_s16] ss:$0 sm:$0xff] }
 0x9f6   : > { %v5948_v40 = vsub.f32 %v5901_v51, %v3151_v3 }
 0x9f7   : > { %v3171_v54 = vmul.f32 %v5943_v19, %v5943_v19  ;;  %v3169_v9 = vmul.f32 %v5945_v63, %v5945_v63 }
 0x9f8   : > { %v3167_v18 = vmul.f32 %v5948_v40, %v5948_v40 }
 0x9f9   : > { %v3189_v56 = vsel %vm949_vm1, %v3171_v54, 0.0  ;;  %v3183_v30 = vsel %vm949_vm1, %v3169_v9, 0.0 }
 0x9fa   : > { %3190 = vadd.xlane.f32.xlu1 %v3189_v56  ;;  %v3177_v60 = vsel %vm949_vm1, %v3167_v18, 0.0  ;;  %v3149_v61 = vpop.xlane.xlu1 %3148 }
 0x9fb   : > { %3184 = vadd.xlane.f32.xlu2 %v3183_v30  ;;  %3178 = vadd.xlane.f32.xlu0 %v3177_v60  ;;  %v3146_v42 = vpop.xlane.xlu0 %3145  ;;  %v3157_v22 = vmul.f32 %v3149_v61, %v5037_v28  ;;  %v6005_v30 = vld [vmem:[%s6213_s19] ss:$0 sm:$0xff] }
 0x9fc   : > { %v3156_v33 = vmul.f32 %v3146_v42, %v5037_v28 }
 0x9fd   : > { %v5967_v5 = vsub.f32 %v3111_v39, %v3157_v22 }
 0x9fe   : > { %v5965_v62 = vsub.f32 %v3110_v43, %v3156_v33 }
 0x9ff   : > { %v3173_v57 = vmul.f32 %v5967_v5, %v5967_v5 }
 0xa00   : > { %v3172_v51 = vmul.f32 %v5965_v62, %v5965_v62 }
 0xa01   : > { %v3195_v13 = vsel %vm949_vm1, %v3173_v57, 0.0 }
 0xa02   : > { %v3192_v38 = vsel %vm949_vm1, %v3172_v51, 0.0 }
 0xa03   : > { %3187 = vadd.xlane.f32.xlu0 %v3186_v55  ;;  %3193 = vadd.xlane.f32.xlu2 %v3192_v38 }
 0xa0b   : > { %3196 = vadd.xlane.f32.xlu0 %v3195_v13 }
 0xa65   : > { %v3182_v14 = vpop.xlane.xlu1 %3181 }
 0xa66   : > { %v3200_v20 = vmul.f32 %v3182_v14, %v5037_v28  ;;  %v3176_v53 = vpop.xlane.xlu2 %3175 }
 0xa67   : > { %v3198_v6 = vmul.f32 %v3176_v53, %v5037_v28 }
 0xa68   : > { %v3208_v2 = vadd.f32 1e-05, %v3200_v20 }
 0xa69   : > { %v3206_v21 = vadd.f32 1e-05, %v3198_v6 }
 0xa6a   : > { %4271 = vrsqrt.f32 %v3208_v2  ;;  %vm3240_vm9 = vweird.f32 %v3208_v2 }
 0xa6b   : > { %4273 = vrsqrt.f32 %v3206_v21  ;;  %vm3220_vm13 = vweird.f32 %v3206_v21 }
 0xa6d   : > { %v3191_v15 = vpop.xlane.xlu1 %3190 }
 0xa6e   : > { %v3203_v8 = vmul.f32 %v3191_v15, %v5037_v28  ;;  %v3185_v7 = vpop.xlane.xlu2 %3184  ;;  %v3179_v59 = vpop.xlane.xlu0 %3178 }
 0xa6f   : > { %v3201_v36 = vmul.f32 %v3185_v7, %v5037_v28  ;;  %v3199_v43 = vmul.f32 %v3179_v59, %v5037_v28 }
 0xa70   : > { %v4272_v23 = vpop.eup %4271  ;;  %v3211_v16 = vadd.f32 1e-05, %v3203_v8 }
 0xa71   : > { %v4274_v39 = vpop.eup %4273  ;;  %v3235_v27 = vmul.f32 %v4272_v23, %v3208_v2  ;;  %v5981_v34 = vadd.f32 1e-05, %v3201_v36  ;;  %v5983_v29 = vadd.f32 1e-05, %v3199_v43  ;;  %vm3241_vm10 = vweird.f32 %v4272_v23 }
 0xa72   : > { %v3215_v44 = vmul.f32 %v4274_v39, %v3206_v21  ;;  %4275 = vrsqrt.f32 %v3211_v16  ;;  %vm3221_vm11 = vweird.f32 %v4274_v39  ;;  %vm3242_vm12 = vmor %vm3240_vm9, %vm3241_vm10  ;;  %vm3270_vm15 = vweird.f32 %v3211_v16 }
 0xa73   : > { %v3236_v12 = vmul.f32 %v4272_v23, %v3235_v27  ;;  %4277 = vrsqrt.f32 %v5981_v34  ;;  %vm3222_vm14 = vmor %vm3220_vm13, %vm3221_vm11  ;;  %vm3250_vm2 = vweird.f32 %v5981_v34  ;;  %vm3230_vm7 = vweird.f32 %v5983_v29 }
 0xa74   : > { %v3216_v35 = vmul.f32 %v4274_v39, %v3215_v44  ;;  %4279 = vrsqrt.f32 %v5983_v29 }
 0xa75   : > { %v3237_v41 = vmul.f32 0.5, %v3236_v12 }
 0xa76   : > { %v3217_v11 = vmul.f32 0.5, %v3216_v35  ;;  %v3194_v24 = vpop.xlane.xlu2 %3193  ;;  %v3188_v4 = vpop.xlane.xlu0 %3187 }
 0xa77   : > { %v3238_v1 = vsub.f32 1.5, %v3237_v41  ;;  %v3204_v10 = vmul.f32 %v3194_v24, %v5037_v28  ;;  %v3202_v52 = vmul.f32 %v3188_v4, %v5037_v28 }
 0xa78   : > { %v4276_v26 = vpop.eup %4275  ;;  %v3218_v32 = vsub.f32 1.5, %v3217_v11 }
 0xa79   : > { %v4278_v50 = vpop.eup %4277  ;;  %v3239_v31 = vmul.f32 %v4272_v23, %v3238_v1  ;;  %v3265_v49 = vmul.f32 %v4276_v26, %v3211_v16  ;;  %v5989_v37 = vadd.f32 1e-05, %v3204_v10  ;;  %v5998_v3 = vadd.f32 1e-05, %v3202_v52 }
 0xa7a   : > { %v4280_v47 = vpop.eup %4279  ;;  %v3219_v0 = vmul.f32 %v4274_v39, %v3218_v32  ;;  %v3245_v46 = vmul.f32 %v4278_v50, %v5981_v34  ;;  %vm3271_vm0 = vweird.f32 %v4276_v26  ;;  %vm3251_vm4 = vweird.f32 %v4278_v50 }
 0xa7b   : > { %v3243_v54 = vsel %vm3242_vm12, %v4272_v23, %v3239_v31  ;;  %v3266_v9 = vmul.f32 %v4276_v26, %v3265_v49  ;;  %v3225_v18 = vmul.f32 %v4280_v47, %v5983_v29  ;;  %4281 = vrsqrt.f32 %v5989_v37  ;;  %vm6016_vm3 = vmor %vm3270_vm15, %vm3271_vm0 }
 0xa7c   : > { %v3296_v56 = vmul.f32 %v3243_v54, %v5929_v58  ;;  %v3223_v60 = vsel %vm3222_vm14, %v4274_v39, %v3219_v0  ;;  %v3246_v61 = vmul.f32 %v4278_v50, %v3245_v46  ;;  %4283 = vrsqrt.f32 %v5998_v3  ;;  %vm3252_vm6 = vmor %vm3250_vm2, %vm3251_vm4 }
 0xa7d   : > { %v3294_v42 = vmul.f32 %v3223_v60, %v5931_v25  ;;  %v3267_v33 = vmul.f32 0.5, %v3266_v9  ;;  %v3226_v22 = vmul.f32 %v4280_v47, %v3225_v18  ;;  %vm3231_vm5 = vweird.f32 %v4280_v47 }
 0xa7e   : > { %v3307_v17 = vmul.f32 %v5995_v48, %v3296_v56  ;;  %v3247_v55 = vmul.f32 0.5, %v3246_v61  ;;  %v3197_v58 = vpop.xlane.xlu0 %3196  ;;  %vm3232_vm8 = vmor %vm3230_vm7, %vm3231_vm5  ;;  %vm3280_vm9 = vweird.f32 %v5989_v37  ;;  %vm3260_vm13 = vweird.f32 %v5998_v3 }
 0xa7f   : > { %v3305_v51 = vmul.f32 %v5995_v48, %v3294_v42  ;;  %v3268_v38 = vsub.f32 1.5, %v3267_v33  ;;  %v3227_v57 = vmul.f32 0.5, %v3226_v22  ;;  %v3205_v13 = vmul.f32 %v3197_v58, %v5037_v28 }
 0xa80   : > { %v3318_v25 = vadd.f32 %v6005_v30, %v3307_v17  ;;  %v3248_v20 = vsub.f32 1.5, %v3247_v55 }
 0xa81   : > { %v3316_v53 = vadd.f32 %v6005_v30, %v3305_v51  ;;  %v3269_v6 = vmul.f32 %v4276_v26, %v3268_v38  ;;  %v3228_v2 = vsub.f32 1.5, %v3227_v57  ;;  %v3213_v21 = vadd.f32 1e-05, %v3205_v13  ;;  %v4282_v15 = vpop.eup %4281 }
 0xa82   : > { %3326 = vst.msk [vmem:[%s5027_s26 + $0x10] sm:$0xff] %vm949_vm1, %v3318_v25  ;;  %v3249_v8 = vmul.f32 %v4278_v50, %v3248_v20  ;;  %v3275_v59 = vmul.f32 %v4282_v15, %v5989_v37  ;;  %v4284_v36 = vpop.eup %4283  ;;  %vm3281_vm10 = vweird.f32 %v4282_v15 }
 0xa83   : > { %3324 = vst.msk [vmem:[%s5027_s26] sm:$0xff] %vm949_vm1, %v3316_v53  ;;  %v3273_v28 = vsel %vm6016_vm3, %v4276_v26, %v3269_v6  ;;  %v3229_v7 = vmul.f32 %v4280_v47, %v3228_v2  ;;  %4285 = vrsqrt.f32 %v3213_v21  ;;  %v3255_v34 = vmul.f32 %v4284_v36, %v5998_v3  ;;  %vm3282_vm12 = vmor %vm3280_vm9, %vm3281_vm10 }
 0xa84   : > { %v3299_v43 = vmul.f32 %v3273_v28, %v5943_v19  ;;  %v3253_v23 = vsel %vm3252_vm6, %v4278_v50, %v3249_v8  ;;  %v3276_v27 = vmul.f32 %v4282_v15, %v3275_v59  ;;  %vm3261_vm11 = vweird.f32 %v4284_v36 }
 0xa85   : > { %v3297_v16 = vmul.f32 %v3253_v23, %v5945_v63  ;;  %v3233_v39 = vsel %vm3232_vm8, %v4280_v47, %v3229_v7  ;;  %v3256_v19 = vmul.f32 %v4284_v36, %v3255_v34  ;;  %vm3262_vm14 = vmor %vm3260_vm13, %vm3261_vm11  ;;  %vm3290_vm0 = vweird.f32 %v3213_v21 }
 0xa86   : > { %v3310_v44 = vmul.f32 %v5995_v48, %v3299_v43  ;;  %v3295_v29 = vmul.f32 %v3233_v39, %v5948_v40  ;;  %v3277_v35 = vmul.f32 0.5, %v3276_v27 }
 0xa87   : > { %v3308_v12 = vmul.f32 %v5995_v48, %v3297_v16  ;;  %v3257_v4 = vmul.f32 0.5, %v3256_v19 }
 0xa88   : > { %v3321_v41 = vadd.f32 %v6005_v30, %v3310_v44  ;;  %v3306_v11 = vmul.f32 %v5995_v48, %v3295_v29  ;;  %v3278_v24 = vsub.f32 1.5, %v3277_v35 }
 0xa89   : > { %v3319_v63 = vadd.f32 %v6005_v30, %v3308_v12  ;;  %v4286_v1 = vpop.eup %4285  ;;  %v3258_v52 = vsub.f32 1.5, %v3257_v4 }
 0xa8a   : > { %3329 = vst.msk [vmem:[%s5027_s26 + $0x28] sm:$0xff] %vm949_vm1, %v3321_v41  ;;  %v3317_v40 = vadd.f32 %v6005_v30, %v3306_v11  ;;  %v3279_v10 = vmul.f32 %v4282_v15, %v3278_v24  ;;  %v3285_v26 = vmul.f32 %v4286_v1, %v3213_v21  ;;  %vm3291_vm15 = vweird.f32 %v4286_v1 }
 0xa8b   : > { %3327 = vst.msk [vmem:[%s5027_s26 + $0x18] sm:$0xff] %vm949_vm1, %v3319_v63  ;;  %v3259_v50 = vmul.f32 %v4284_v36, %v3258_v52  ;;  %vm3292_vm2 = vmor %vm3290_vm0, %vm3291_vm15 }
 0xa8c   : > { %3325 = vst.msk [vmem:[%s5027_s26 + $0x8] sm:$0xff] %vm949_vm1, %v3317_v40  ;;  %v3283_v32 = vsel %vm3282_vm12, %v4282_v15, %v3279_v10  ;;  %v3286_v31 = vmul.f32 %v4286_v1, %v3285_v26 }
 0xa8d   : > { %v3300_v49 = vmul.f32 %v3283_v32, %v5965_v62  ;;  %v3263_v37 = vsel %vm3262_vm14, %v4284_v36, %v3259_v50 }
 0xa8e   : > { %v3287_v47 = vmul.f32 0.5, %v3286_v31  ;;  %v3298_v46 = vmul.f32 %v3263_v37, %v5954_v45 }
 0xa8f   : > { %v3311_v0 = vmul.f32 %v5995_v48, %v3300_v49 }
 0xa90   : > { %v3288_v54 = vsub.f32 1.5, %v3287_v47  ;;  %v3309_v18 = vmul.f32 %v5995_v48, %v3298_v46 }
 0xa91   : > { %v3322_v9 = vadd.f32 %v6005_v30, %v3311_v0 }
 0xa92   : > { %v3289_v56 = vmul.f32 %v4286_v1, %v3288_v54  ;;  %v3320_v62 = vadd.f32 %v6005_v30, %v3309_v18 }
 0xa93   : > { %3330 = vst.msk [vmem:[%s5027_s26 + $0x30] sm:$0xff] %vm949_vm1, %v3322_v9 }
 0xa94   : > { %v3293_v3 = vsel %vm3292_vm2, %v4286_v1, %v3289_v56  ;;  %3328 = vst.msk [vmem:[%s5027_s26 + $0x20] sm:$0xff] %vm949_vm1, %v3320_v62 }
 0xa95   : > { %v3301_v60 = vmul.f32 %v3293_v3, %v5967_v5 }
 0xa97   : > { %v3312_v45 = vmul.f32 %v5995_v48, %v3301_v60 }
 0xa99   : > { %v3323_v61 = vadd.f32 %v6005_v30, %v3312_v45 }
 0xa9b   : > { %3331 = vst.msk [vmem:[%s5027_s26 + $0x38] sm:$0xff] %vm949_vm1, %v3323_v61 }
 0xa9c PF: > { %s3863_s1 = sshll.u32 %s4653_s28, 6  ;;  %s6217_s8 = sld [smem:[#allocation51_spill]] }
 0xa9d   : > { %s3346_s11 = sshll.u32 %s5027_s26, 4  ;;  %s6218_s15 = sand.u32 1, %s4629_s22   ;;  %s3347_s11 = int_to_ptr.vmem [resolvable:$true] %s3346_s11 }
 0xa9e   : > { %s3333_s30 = scalar_lea.sflag [#allocation5], %s6218_s15 }
 0xaa2   : > { %s3345_s9 = scalar_lea.hbm %s6217_s8, %s3863_s1  ;;  %s4547_s28 = scalar_lea.hbm %s6217_s8, 128 }
 0xaa3   : > { %s3348_s13 = sshll.u32 %s3345_s9, 4  ;;  %s3349_s13 = int_to_ptr.hbm [resolvable:$true] %s3348_s13 }
 0xaa4   : > { %s4541_s23 = sshra.s32 %s3349_s13, 4  ;;  %s4542_s23 = int_to_ptr.hbm [resolvable:$true] %s4541_s23 }
 0xaa5   : > { %s4543_s17 = scalar_lea.hbm %s4542_s23, 64  ;;  %p4548_p1 = scmp.lt.s32.totalorder %s4542_s23, %s6217_s8 }
 0xaa6   : > { %p4544_p11 = scmp.ne.s32.totalorder %s4542_s23, %s4543_s17  ;;  %p4549_p4 = scmp.lt.s32.totalorder %s4547_s28, %s4543_s17 }
 0xaa8   : > { %p4545_p13 = pnand %p4544_p11, %p4855_p12  ;;  %p4550_p3 = por %p4549_p4, %p4548_p1 }
 0xaaa   : > { %p4546_p0 = pneg %p4545_p13 }
 0xaac   : > { %p4551_p5 = pnand %p4550_p3, %p4546_p0 }
 0xaae   : > { %4554 = shalt.err (!%p4551_p5)
}
 0xaaf   : > { %s4676_s26 = smov 128   ;;  %s4677_s12 = smov 8  }
 0xab0   : > { %3884 = dma.vmem_to_hbm [thread:$0]  (%p4855_p12), %s3347_s11, 1024, %s3349_s13, %s3333_s30, %s4676_s26, %s4676_s26, %s4677_s12  }
 0xab1 PF: > { %s6219_s24 = sld [smem:[#allocation28_spill]] }
 0xab2   : > { %s6220_s6 = sld [smem:[#allocation24_spill]] }
 0xab7   : > { %p3916_p6 = scmp.ge.s32.totalorder %s6219_s24, 2 }
 0xab8   : > { %s3363_s27 = sand.u32 1, %s6220_s6  }
 0xab9   : > { %p3912_p7 = pnand %p3916_p6, %p4865_p2  ;;  %s3364_s10 = scalar_lea.sflag [#allocation5], %s3363_s27 }
 0xabb   : > { %p3913_p9 = pneg %p3912_p7 }
 0xabd   : > { %4620 = dma.done.wait (%p3913_p9), %s3364_s10, 1024  }
 0xabe   : > { %4622 = vsyncadd (%p3913_p9), %s3364_s10, 4294966272  ;;  %s44_s0 = sadd.s32 1, %s6219_s24   ;;  %s6222_s16 = sld [smem:[#allocation25_spill]] }
 0xabf   : > { %p41_p8 = scmp.ge.s32.totalorder %s44_s0, 6   ;;  %s6223_s23 = sld [smem:[#allocation32_spill]] }
 0xac0   : > { %s6224_s14 = sld [smem:[#allocation26_spill]]  ;;  %s6229_s21 = smov %s4629_s22 }
 0xac1   : > { %s6225_s26 = sld [smem:[#allocation31_spill]]  ;;  %s6231_s24 = smov %s4641_s25 }
 0xac2   : > { %s6226_s28 = sld [smem:[#allocation27_spill]]  ;;  %s6233_s27 = smov %s4657_s29 }
 0xac3   : > { %s6227_s7 = sld [smem:[#allocation29_spill]] }
 0xac4   : > { %s6228_s30 = sld [smem:[#allocation30_spill]]  ;;  %s6230_s22 = smov %s6222_s16 }
 0xac5   :  { %43 = sbr.rel (!%p41_p8) target bundleno = 35 (0x23), region = 240 }
 0xac6   : > { %s6232_s25 = smov %s6224_s14 }
 0xac9   : > { %s6234_s29 = smov %s6227_s7 }
 0xaca   :  { %3370 = vsyncpa [#allocation4], 1 }
 0xacb   :  { %3372 = vsyncpa [#allocation4 + $0x1], 1 }
 0xacc   :  { %3373 = vsyncpa [#allocation7], 1 }
 0xacd   :  { %3375 = vsyncpa [#allocation7 + $0x1], 1 }
 0xace   :  { %3376 = vsyncpa [#allocation10], 1 }
 0xacf   :  { %3378 = vsyncpa [#allocation10 + $0x1], 1 }
 0xad0   :  { %3379 = vsyncpa [#allocation13], 1 }
 0xad1   :  { %3381 = vsyncpa [#allocation13 + $0x1], 1 }
 0xad2   :  { %3382 = vsyncpa [#allocation16], 1 }
 0xad3   :  { %3384 = vsyncpa [#allocation16 + $0x1], 1 }
 0xad4   :  { %3385 = vsyncpa [#allocation5], 1 }
 0xad5   :  { %3387 = vsyncpa [#allocation5 + $0x1], 1 }

</bundles_post_ra>
